<compile_context>
chip_gen: v6e
topology: v6e:2x2x1
jax: 0.10.0
libtpu: 0.0.40
codegen_flags: <defaults>
</compile_context>

<pallas_src>
import jax
import jax.numpy as jnp
from jax.experimental import pallas as pl
from jax.experimental.pallas import tpu as pltpu


def _round_up(n, m):
    return ((n + m - 1) // m) * m


def _softplus(x):
    # Numerically stable log(1 + exp(x)).
    return jnp.maximum(x, 0.0) + jnp.log(1.0 + jnp.exp(-jnp.abs(x)))


def _make_mi_kernel(batch, tile_rows):
    n_valid_rows = 2 * batch        # rows [0, B) are "pos", [B, 2B) are "neg"
    inv_b = 1.0 / float(batch)      # Python-constant reciprocal

    def kernel(x_ref, w1_ref, b1_ref, w2_ref, b2_ref, w3_ref, b3_ref,
               out_ref, acc_ref):
        step = pl.program_id(0)

        @pl.when(step == 0)
        def _init():
            acc_ref[0] = 0.0
            acc_ref[1] = 0.0
            acc_ref[2] = 0.0
            acc_ref[3] = 0.0
            out_ref[0, 0] = 0.0
            out_ref[0, 1] = 0.0

        # Fused MLP on the stacked [pos; neg] tile.
        x = x_ref[...]
        h1 = jnp.dot(x, w1_ref[...], preferred_element_type=jnp.float32) + b1_ref[...]
        h1 = jnp.maximum(h1, 0.0)
        h2 = jnp.dot(h1, w2_ref[...], preferred_element_type=jnp.float32) + b2_ref[...]
        h2 = jnp.maximum(h2, 0.0)
        # Final [H -> 1] layer as VPU multiply + XLU row reduction.
        logits = jnp.sum(h2 * w3_ref[...], axis=1, keepdims=True) + b3_ref[...]  # [TB, 1]

        # Row masks route contributions to the pos / neg accumulators; padded
        # rows (>= 2B) contribute nothing.
        row = step * tile_rows + jax.lax.broadcasted_iota(jnp.int32, (tile_rows, 1), 0)
        is_pos = row < batch
        is_neg = jnp.logical_and(row >= batch, row < n_valid_rows)
        zero = jnp.zeros_like(logits)

        acc_ref[0] += jnp.sum(jnp.where(is_pos, _softplus(-logits), zero))
        acc_ref[1] += jnp.sum(jnp.where(is_neg, _softplus(logits), zero))
        acc_ref[2] += jnp.sum(jnp.where(is_pos, logits, zero))
        acc_ref[3] += jnp.sum(jnp.where(is_neg, jnp.exp(logits), zero))

        @pl.when(step == pl.num_programs(0) - 1)
        def _finalize():
            out_ref[0, 0] = -(acc_ref[0] + acc_ref[1]) * inv_b
            out_ref[0, 1] = (acc_ref[2] - acc_ref[3]) * inv_b + 1.0

    return kernel


def mi_estimator(x1, x2, params, *, max_tile_rows=512):
    """Pallas forward pass of MIEstimator. Returns (mi_lower_bound, second_term)."""
    w1, b1, w2, b2, w3, b3 = params
    batch = x1.shape[0]
    d_in = x1.shape[1] + x2.shape[1]
    hidden = w1.shape[1]

    # Stack the pos / neg inputs so the shared net runs once over [2B, D].
    x_pos = jnp.concatenate([x1, x2], axis=1)
    x_neg = jnp.concatenate([jnp.roll(x1, 1, axis=0), x2], axis=1)
    x_all = jnp.concatenate([x_pos, x_neg], axis=0).astype(jnp.float32)  # [2B, D]

    rows = 2 * batch
    tile_rows = min(max_tile_rows, _round_up(rows, 8))
    rows_pad = _round_up(rows, tile_rows)
    if rows_pad != rows:
        x_all = jnp.pad(x_all, ((0, rows_pad - rows), (0, 0)))
    grid = (rows_pad // tile_rows,)

    w3_row = w3.reshape(1, hidden)   # transposed final weight (lane-dense)
    b3_2d = b3.reshape(1, 1)

    kernel = _make_mi_kernel(batch, tile_rows)
    const = lambda i: (0, 0)         # weights/biases: DMA'd once, stay resident

    cost = pl.CostEstimate(
        flops=int(2 * rows_pad * hidden * (d_in + hidden + 1)),
        transcendentals=int(5 * rows_pad),
        bytes_accessed=int(x_all.size * 4
                           + (d_in * hidden + hidden * hidden + 3 * hidden + 1) * 4
                           + 8),
    )

    out = pl.pallas_call(
        kernel,
        out_shape=jax.ShapeDtypeStruct((1, 2), jnp.float32),
        grid_spec=pltpu.PrefetchScalarGridSpec(
            num_scalar_prefetch=0,
            grid=grid,
            in_specs=[
                pl.BlockSpec((tile_rows, d_in), lambda i: (i, 0)),  # x tiles stream in
                pl.BlockSpec((d_in, hidden), const),                # w1
                pl.BlockSpec((1, hidden), const),                   # b1
                pl.BlockSpec((hidden, hidden), const),              # w2
                pl.BlockSpec((1, hidden), const),                   # b2
                pl.BlockSpec((1, hidden), const),                   # w3 (as row)
                pl.BlockSpec((1, 1), const),                        # b3
            ],
            out_specs=pl.BlockSpec(memory_space=pltpu.MemorySpace.SMEM),
            scratch_shapes=[pltpu.SMEM((4,), jnp.float32)],
        ),
        compiler_params=pltpu.CompilerParams(
            dimension_semantics=("arbitrary",),  # accumulator carried across steps
        ),
        cost_estimate=cost,
    )(x_all, w1, b1, w2, b2, w3_row, b3_2d)
    return out[0, 0], out[0, 1]


def init_params(key, size1, size2, hidden=1024):
    """Deterministic init mimicking nn.Linear's U(-1/sqrt(fan_in), 1/sqrt(fan_in))."""
    d_in = size1 + size2
    keys = jax.random.split(key, 6)

    def lin(kw, kb, fan_in, fan_out):
        bound = 1.0 / jnp.sqrt(float(fan_in))
        w = jax.random.uniform(kw, (fan_in, fan_out), jnp.float32, -bound, bound)
        b = jax.random.uniform(kb, (1, fan_out), jnp.float32, -bound, bound)
        return w, b

    w1, b1 = lin(keys[0], keys[1], d_in, hidden)
    w2, b2 = lin(keys[2], keys[3], hidden, hidden)
    w3, b3 = lin(keys[4], keys[5], hidden, 1)
    return (w1, b1, w2, b2, w3, b3)


if __name__ == "__main__":
    size1, size2, hidden, batch = 16, 16, 1024, 8

    key = jax.random.PRNGKey(0)
    k1, k2, kp = jax.random.split(key, 3)
    x1 = jax.random.normal(k1, (batch, size1), jnp.float32)
    x2 = jax.random.normal(k2, (batch, size2), jnp.float32)
    params = init_params(kp, size1, size2, hidden)

    mi_lb, second = mi_estimator(x1, x2, params)
    jax.block_until_ready((mi_lb, second))

    # Pure-JAX reference mirroring the PyTorch forward.
    w1, b1, w2, b2, w3, b3 = params

    def net(x):
        h1 = jnp.maximum(x @ w1 + b1, 0.0)
        h2 = jnp.maximum(h1 @ w2 + b2, 0.0)
        return h2 @ w3 + b3

    pos = net(jnp.concatenate([x1, x2], axis=1))
    neg = net(jnp.concatenate([jnp.roll(x1, 1, axis=0), x2], axis=1))
    sp = lambda v: jnp.maximum(v, 0.0) + jnp.log1p(jnp.exp(-jnp.abs(v)))
    ref0 = -jnp.mean(sp(-pos)) - jnp.mean(sp(neg))
    ref1 = jnp.mean(pos) - jnp.mean(jnp.exp(neg)) + 1.0

    assert jnp.allclose(mi_lb, ref0, rtol=1e-4, atol=1e-4), (mi_lb, ref0)
    assert jnp.allclose(second, ref1, rtol=1e-4, atol=1e-4), (second, ref1)

    print("KERNEL_OK")
</pallas_src>

<mosaic_0001>
module attributes {stable_mosaic.version = 11 : i64} {
  func.func @kernel(%arg0: i32, %arg1: memref<16x32xf32, #tpu.memory_space<vmem>>, %arg2: memref<32x1024xf32, #tpu.memory_space<vmem>>, %arg3: memref<1x1024xf32, #tpu.memory_space<vmem>>, %arg4: memref<1024x1024xf32, #tpu.memory_space<vmem>>, %arg5: memref<1x1024xf32, #tpu.memory_space<vmem>>, %arg6: memref<1x1024xf32, #tpu.memory_space<vmem>>, %arg7: memref<1x1xf32, #tpu.memory_space<vmem>>, %arg8: memref<1x2xf32, #tpu.memory_space<smem>>, %arg9: memref<4xf32, #tpu.memory_space<smem>>) attributes {dimension_semantics = [#tpu.dimension_semantics<arbitrary>], iteration_bounds = array<i64: 1>, scalar_prefetch = 0 : i64, scratch_operands = 1 : i64, tpu.core_type = #tpu.core_type<tc>, window_params = [{transform_indices = @transform_0, window_bounds = array<i64: 16, 32>}, {pipeline_mode = #tpu.pipeline_mode<synchronous>, transform_indices = @transform_1, window_bounds = array<i64: 32, 1024>}, {pipeline_mode = #tpu.pipeline_mode<synchronous>, transform_indices = @transform_2, window_bounds = array<i64: 1, 1024>}, {pipeline_mode = #tpu.pipeline_mode<synchronous>, transform_indices = @transform_3, window_bounds = array<i64: 1024, 1024>}, {pipeline_mode = #tpu.pipeline_mode<synchronous>, transform_indices = @transform_4, window_bounds = array<i64: 1, 1024>}, {pipeline_mode = #tpu.pipeline_mode<synchronous>, transform_indices = @transform_5, window_bounds = array<i64: 1, 1024>}, {pipeline_mode = #tpu.pipeline_mode<synchronous>, transform_indices = @transform_6, window_bounds = array<i64: 1, 1>}, {transform_indices = @transform_7, window_bounds = array<i64: 1, 2>}]} {
    %c0_i32 = arith.constant 0 : i32
    %0 = arith.cmpi eq, %arg0, %c0_i32 : i32
    %1 = arith.extui %0 : i1 to i32
    %c0_i32_0 = arith.constant 0 : i32
    %2 = arith.cmpi ne, %1, %c0_i32_0 : i32
    scf.if %2 {
      %cst_39 = arith.constant 0.000000e+00 : f32
      %c0_40 = arith.constant 0 : index
      %96 = memref.load %arg9[%c0_40] : memref<4xf32, #tpu.memory_space<smem>>
      memref.store %cst_39, %arg9[%c0_40] : memref<4xf32, #tpu.memory_space<smem>>
      %cst_41 = arith.constant 0.000000e+00 : f32
      %c1_42 = arith.constant 1 : index
      %97 = memref.load %arg9[%c1_42] : memref<4xf32, #tpu.memory_space<smem>>
      memref.store %cst_41, %arg9[%c1_42] : memref<4xf32, #tpu.memory_space<smem>>
      %cst_43 = arith.constant 0.000000e+00 : f32
      %c2_44 = arith.constant 2 : index
      %98 = memref.load %arg9[%c2_44] : memref<4xf32, #tpu.memory_space<smem>>
      memref.store %cst_43, %arg9[%c2_44] : memref<4xf32, #tpu.memory_space<smem>>
      %cst_45 = arith.constant 0.000000e+00 : f32
      %c3_46 = arith.constant 3 : index
      %99 = memref.load %arg9[%c3_46] : memref<4xf32, #tpu.memory_space<smem>>
      memref.store %cst_45, %arg9[%c3_46] : memref<4xf32, #tpu.memory_space<smem>>
      %cst_47 = arith.constant 0.000000e+00 : f32
      %c0_48 = arith.constant 0 : index
      %c0_49 = arith.constant 0 : index
      %100 = memref.load %arg8[%c0_48, %c0_49] : memref<1x2xf32, #tpu.memory_space<smem>>
      memref.store %cst_47, %arg8[%c0_48, %c0_49] : memref<1x2xf32, #tpu.memory_space<smem>>
      %cst_50 = arith.constant 0.000000e+00 : f32
      %c0_51 = arith.constant 0 : index
      %c1_52 = arith.constant 1 : index
      %101 = memref.load %arg8[%c0_51, %c1_52] : memref<1x2xf32, #tpu.memory_space<smem>>
      memref.store %cst_50, %arg8[%c0_51, %c1_52] : memref<1x2xf32, #tpu.memory_space<smem>>
    } else {
    }
    %c0 = arith.constant 0 : index
    %c0_1 = arith.constant 0 : index
    %3 = vector.load %arg1[%c0, %c0_1] : memref<16x32xf32, #tpu.memory_space<vmem>>, vector<16x32xf32>
    %c0_2 = arith.constant 0 : index
    %c0_3 = arith.constant 0 : index
    %4 = vector.load %arg2[%c0_2, %c0_3] : memref<32x1024xf32, #tpu.memory_space<vmem>>, vector<32x1024xf32>
    %cst = arith.constant dense<0.000000e+00> : vector<16x1024xf32>
    %5 = tpu.matmul %3, %4, %cst {dimension_numbers = #tpu.dot_dimension_numbers<[1], [0], [0], [1], [0, 0, 1, 1], [], []>} : vector<16x32xf32>, vector<32x1024xf32>, vector<16x1024xf32> -> vector<16x1024xf32>
    %c0_4 = arith.constant 0 : index
    %c0_5 = arith.constant 0 : index
    %6 = vector.load %arg3[%c0_4, %c0_5] : memref<1x1024xf32, #tpu.memory_space<vmem>>, vector<1x1024xf32>
    %7 = vector.broadcast %6 : vector<1x1024xf32> to vector<16x1024xf32>
    %8 = arith.addf %5, %7 : vector<16x1024xf32>
    %cst_6 = arith.constant 0.000000e+00 : f32
    %9 = vector.broadcast %cst_6 : f32 to vector<16x1024xf32>
    %10 = arith.maximumf %8, %9 : vector<16x1024xf32>
    %c0_7 = arith.constant 0 : index
    %c0_8 = arith.constant 0 : index
    %11 = vector.load %arg4[%c0_7, %c0_8] : memref<1024x1024xf32, #tpu.memory_space<vmem>>, vector<1024x1024xf32>
    %cst_9 = arith.constant dense<0.000000e+00> : vector<16x1024xf32>
    %12 = tpu.matmul %10, %11, %cst_9 {dimension_numbers = #tpu.dot_dimension_numbers<[1], [0], [0], [1], [0, 0, 1, 1], [], []>} : vector<16x1024xf32>, vector<1024x1024xf32>, vector<16x1024xf32> -> vector<16x1024xf32>
    %c0_10 = arith.constant 0 : index
    %c0_11 = arith.constant 0 : index
    %13 = vector.load %arg5[%c0_10, %c0_11] : memref<1x1024xf32, #tpu.memory_space<vmem>>, vector<1x1024xf32>
    %14 = vector.broadcast %13 : vector<1x1024xf32> to vector<16x1024xf32>
    %15 = arith.addf %12, %14 : vector<16x1024xf32>
    %cst_12 = arith.constant 0.000000e+00 : f32
    %16 = vector.broadcast %cst_12 : f32 to vector<16x1024xf32>
    %17 = arith.maximumf %15, %16 : vector<16x1024xf32>
    %c0_13 = arith.constant 0 : index
    %c0_14 = arith.constant 0 : index
    %18 = vector.load %arg6[%c0_13, %c0_14] : memref<1x1024xf32, #tpu.memory_space<vmem>>, vector<1x1024xf32>
    %19 = vector.broadcast %18 : vector<1x1024xf32> to vector<16x1024xf32>
    %20 = arith.mulf %17, %19 : vector<16x1024xf32>
    %cst_15 = arith.constant dense<0.000000e+00> : vector<16xf32>
    %21 = vector.multi_reduction <add>, %20, %cst_15 [1] : vector<16x1024xf32> to vector<16xf32>
    %22 = vector.shape_cast %21 : vector<16xf32> to vector<16x1xf32>
    %c0_16 = arith.constant 0 : index
    %c0_17 = arith.constant 0 : index
    %23 = vector.load %arg7[%c0_16, %c0_17] : memref<1x1xf32, #tpu.memory_space<vmem>>, vector<1x1xf32>
    %24 = vector.broadcast %23 : vector<1x1xf32> to vector<16x1xf32>
    %25 = arith.addf %22, %24 : vector<16x1xf32>
    %c16_i32 = arith.constant 16 : i32
    %26 = arith.muli %arg0, %c16_i32 : i32
    %27 = tpu.iota {dimensions = array<i32: 0>} : vector<16x1xi32>
    %28 = vector.broadcast %26 : i32 to vector<16x1xi32>
    %29 = arith.addi %28, %27 : vector<16x1xi32>
    %c8_i32 = arith.constant 8 : i32
    %30 = vector.broadcast %c8_i32 : i32 to vector<16x1xi32>
    %31 = arith.cmpi slt, %29, %30 : vector<16x1xi32>
    %c8_i32_18 = arith.constant 8 : i32
    %32 = vector.broadcast %c8_i32_18 : i32 to vector<16x1xi32>
    %33 = arith.cmpi sge, %29, %32 : vector<16x1xi32>
    %c16_i32_19 = arith.constant 16 : i32
    %34 = vector.broadcast %c16_i32_19 : i32 to vector<16x1xi32>
    %35 = arith.cmpi slt, %29, %34 : vector<16x1xi32>
    %36 = arith.andi %33, %35 : vector<16x1xi1>
    %cst_20 = arith.constant 0.000000e+00 : f32
    %37 = vector.broadcast %cst_20 : f32 to vector<16x1xf32>
    %c0_21 = arith.constant 0 : index
    %38 = memref.load %arg9[%c0_21] : memref<4xf32, #tpu.memory_space<smem>>
    %cst_22 = arith.constant 0.000000e+00 : f32
    %39 = vector.broadcast %cst_22 : f32 to vector<16x1xf32>
    %40 = arith.subf %39, %25 : vector<16x1xf32>
    %cst_23 = arith.constant 0.000000e+00 : f32
    %41 = vector.broadcast %cst_23 : f32 to vector<16x1xf32>
    %42 = arith.maximumf %40, %41 : vector<16x1xf32>
    %43 = math.absf %40 : vector<16x1xf32>
    %cst_24 = arith.constant 0.000000e+00 : f32
    %44 = vector.broadcast %cst_24 : f32 to vector<16x1xf32>
    %45 = arith.subf %44, %43 : vector<16x1xf32>
    %46 = math.exp %45 : vector<16x1xf32>
    %cst_25 = arith.constant 1.000000e+00 : f32
    %47 = vector.broadcast %cst_25 : f32 to vector<16x1xf32>
    %48 = arith.addf %47, %46 : vector<16x1xf32>
    %49 = math.log %48 : vector<16x1xf32>
    %50 = arith.addf %42, %49 : vector<16x1xf32>
    %51 = arith.select %31, %50, %37 : vector<16x1xi1>, vector<16x1xf32>
    %52 = vector.shape_cast %51 : vector<16x1xf32> to vector<1x16x1xf32>
    %cst_26 = arith.constant dense<0.000000e+00> : vector<1xf32>
    %53 = vector.multi_reduction <add>, %52, %cst_26 [1, 2] : vector<1x16x1xf32> to vector<1xf32>
    %54 = vector.shape_cast %53 : vector<1xf32> to vector<1x1x1xf32>
    %55 = vector.extract %54[0, 0, 0] : f32 from vector<1x1x1xf32>
    %56 = arith.addf %38, %55 : f32
    %c0_27 = arith.constant 0 : index
    %57 = memref.load %arg9[%c0_27] : memref<4xf32, #tpu.memory_space<smem>>
    memref.store %56, %arg9[%c0_27] : memref<4xf32, #tpu.memory_space<smem>>
    %c1 = arith.constant 1 : index
    %58 = memref.load %arg9[%c1] : memref<4xf32, #tpu.memory_space<smem>>
    %cst_28 = arith.constant 0.000000e+00 : f32
    %59 = vector.broadcast %cst_28 : f32 to vector<16x1xf32>
    %60 = arith.maximumf %25, %59 : vector<16x1xf32>
    %61 = math.absf %25 : vector<16x1xf32>
    %cst_29 = arith.constant 0.000000e+00 : f32
    %62 = vector.broadcast %cst_29 : f32 to vector<16x1xf32>
    %63 = arith.subf %62, %61 : vector<16x1xf32>
    %64 = math.exp %63 : vector<16x1xf32>
    %cst_30 = arith.constant 1.000000e+00 : f32
    %65 = vector.broadcast %cst_30 : f32 to vector<16x1xf32>
    %66 = arith.addf %65, %64 : vector<16x1xf32>
    %67 = math.log %66 : vector<16x1xf32>
    %68 = arith.addf %60, %67 : vector<16x1xf32>
    %69 = arith.select %36, %68, %37 : vector<16x1xi1>, vector<16x1xf32>
    %70 = vector.shape_cast %69 : vector<16x1xf32> to vector<1x16x1xf32>
    %cst_31 = arith.constant dense<0.000000e+00> : vector<1xf32>
    %71 = vector.multi_reduction <add>, %70, %cst_31 [1, 2] : vector<1x16x1xf32> to vector<1xf32>
    %72 = vector.shape_cast %71 : vector<1xf32> to vector<1x1x1xf32>
    %73 = vector.extract %72[0, 0, 0] : f32 from vector<1x1x1xf32>
    %74 = arith.addf %58, %73 : f32
    %c1_32 = arith.constant 1 : index
    %75 = memref.load %arg9[%c1_32] : memref<4xf32, #tpu.memory_space<smem>>
    memref.store %74, %arg9[%c1_32] : memref<4xf32, #tpu.memory_space<smem>>
    %c2 = arith.constant 2 : index
    %76 = memref.load %arg9[%c2] : memref<4xf32, #tpu.memory_space<smem>>
    %77 = arith.select %31, %25, %37 : vector<16x1xi1>, vector<16x1xf32>
    %78 = vector.shape_cast %77 : vector<16x1xf32> to vector<1x16x1xf32>
    %cst_33 = arith.constant dense<0.000000e+00> : vector<1xf32>
    %79 = vector.multi_reduction <add>, %78, %cst_33 [1, 2] : vector<1x16x1xf32> to vector<1xf32>
    %80 = vector.shape_cast %79 : vector<1xf32> to vector<1x1x1xf32>
    %81 = vector.extract %80[0, 0, 0] : f32 from vector<1x1x1xf32>
    %82 = arith.addf %76, %81 : f32
    %c2_34 = arith.constant 2 : index
    %83 = memref.load %arg9[%c2_34] : memref<4xf32, #tpu.memory_space<smem>>
    memref.store %82, %arg9[%c2_34] : memref<4xf32, #tpu.memory_space<smem>>
    %c3 = arith.constant 3 : index
    %84 = memref.load %arg9[%c3] : memref<4xf32, #tpu.memory_space<smem>>
    %85 = math.exp %25 : vector<16x1xf32>
    %86 = arith.select %36, %85, %37 : vector<16x1xi1>, vector<16x1xf32>
    %87 = vector.shape_cast %86 : vector<16x1xf32> to vector<1x16x1xf32>
    %cst_35 = arith.constant dense<0.000000e+00> : vector<1xf32>
    %88 = vector.multi_reduction <add>, %87, %cst_35 [1, 2] : vector<1x16x1xf32> to vector<1xf32>
    %89 = vector.shape_cast %88 : vector<1xf32> to vector<1x1x1xf32>
    %90 = vector.extract %89[0, 0, 0] : f32 from vector<1x1x1xf32>
    %91 = arith.addf %84, %90 : f32
    %c3_36 = arith.constant 3 : index
    %92 = memref.load %arg9[%c3_36] : memref<4xf32, #tpu.memory_space<smem>>
    memref.store %91, %arg9[%c3_36] : memref<4xf32, #tpu.memory_space<smem>>
    %c0_i32_37 = arith.constant 0 : i32
    %93 = arith.cmpi eq, %arg0, %c0_i32_37 : i32
    %94 = arith.extui %93 : i1 to i32
    %c0_i32_38 = arith.constant 0 : i32
    %95 = arith.cmpi ne, %94, %c0_i32_38 : i32
    scf.if %95 {
      %c0_39 = arith.constant 0 : index
      %96 = memref.load %arg9[%c0_39] : memref<4xf32, #tpu.memory_space<smem>>
      %c1_40 = arith.constant 1 : index
      %97 = memref.load %arg9[%c1_40] : memref<4xf32, #tpu.memory_space<smem>>
      %98 = arith.addf %96, %97 : f32
      %cst_41 = arith.constant 0.000000e+00 : f32
      %99 = arith.subf %cst_41, %98 : f32
      %cst_42 = arith.constant 1.250000e-01 : f32
      %100 = arith.mulf %99, %cst_42 : f32
      %c0_43 = arith.constant 0 : index
      %c0_44 = arith.constant 0 : index
      %101 = memref.load %arg8[%c0_43, %c0_44] : memref<1x2xf32, #tpu.memory_space<smem>>
      memref.store %100, %arg8[%c0_43, %c0_44] : memref<1x2xf32, #tpu.memory_space<smem>>
      %c2_45 = arith.constant 2 : index
      %102 = memref.load %arg9[%c2_45] : memref<4xf32, #tpu.memory_space<smem>>
      %c3_46 = arith.constant 3 : index
      %103 = memref.load %arg9[%c3_46] : memref<4xf32, #tpu.memory_space<smem>>
      %104 = arith.subf %102, %103 : f32
      %cst_47 = arith.constant 1.250000e-01 : f32
      %105 = arith.mulf %104, %cst_47 : f32
      %cst_48 = arith.constant 1.000000e+00 : f32
      %106 = arith.addf %105, %cst_48 : f32
      %c0_49 = arith.constant 0 : index
      %c1_50 = arith.constant 1 : index
      %107 = memref.load %arg8[%c0_49, %c1_50] : memref<1x2xf32, #tpu.memory_space<smem>>
      memref.store %106, %arg8[%c0_49, %c1_50] : memref<1x2xf32, #tpu.memory_space<smem>>
    } else {
    }
    return
  }
  func.func @transform_0(%arg0: i32) -> (i32, i32) {
    %c0_i32 = arith.constant 0 : i32
    %c0_i32_0 = arith.constant 0 : i32
    return %arg0, %c0_i32 : i32, i32
  }
  func.func @transform_1(%arg0: i32) -> (i32, i32) {
    %c0_i32 = arith.constant 0 : i32
    %c0_i32_0 = arith.constant 0 : i32
    %c0_i32_1 = arith.constant 0 : i32
    return %c0_i32, %c0_i32_0 : i32, i32
  }
  func.func @transform_2(%arg0: i32) -> (i32, i32) {
    %c0_i32 = arith.constant 0 : i32
    %c0_i32_0 = arith.constant 0 : i32
    %c0_i32_1 = arith.constant 0 : i32
    return %c0_i32, %c0_i32_0 : i32, i32
  }
  func.func @transform_3(%arg0: i32) -> (i32, i32) {
    %c0_i32 = arith.constant 0 : i32
    %c0_i32_0 = arith.constant 0 : i32
    %c0_i32_1 = arith.constant 0 : i32
    return %c0_i32, %c0_i32_0 : i32, i32
  }
  func.func @transform_4(%arg0: i32) -> (i32, i32) {
    %c0_i32 = arith.constant 0 : i32
    %c0_i32_0 = arith.constant 0 : i32
    %c0_i32_1 = arith.constant 0 : i32
    return %c0_i32, %c0_i32_0 : i32, i32
  }
  func.func @transform_5(%arg0: i32) -> (i32, i32) {
    %c0_i32 = arith.constant 0 : i32
    %c0_i32_0 = arith.constant 0 : i32
    %c0_i32_1 = arith.constant 0 : i32
    return %c0_i32, %c0_i32_0 : i32, i32
  }
  func.func @transform_6(%arg0: i32) -> (i32, i32) {
    %c0_i32 = arith.constant 0 : i32
    %c0_i32_0 = arith.constant 0 : i32
    %c0_i32_1 = arith.constant 0 : i32
    return %c0_i32, %c0_i32_0 : i32, i32
  }
  func.func @transform_7(%arg0: i32) -> (i32, i32) {
    %c0_i32 = arith.constant 0 : i32
    %c0_i32_0 = arith.constant 0 : i32
    %c0_i32_1 = arith.constant 0 : i32
    return %c0_i32, %c0_i32_0 : i32, i32
  }
}

</mosaic_0001>

<bundles_post_ra>
// kernel: tpu_custom_call.1
= control target key start
LH: loop header
LB: loop body
LE: loop exit
PB: predicated region body
PF: predicated region fallthrough
CT: control target
= control target key end

     0   :  { %s3605_s0 = inlined_call_operand.hbm [shape: f32[16,32], index: 0, kind: input, shape index: {}]   ;;  %s3606_s1 = inlined_call_operand.hbm [shape: f32[32,1024], index: 1, kind: input, shape index: {}]   ;;  %s3607_s2 = inlined_call_operand.hbm [shape: f32[1,1024], index: 2, kind: input, shape index: {}]   ;;  %s3608_s3 = inlined_call_operand.hbm [shape: f32[1024,1024], index: 3, kind: input, shape index: {}]   ;;  %s3609_s4 = inlined_call_operand.hbm [shape: f32[1,1024], index: 4, kind: input, shape index: {}]   ;;  %s3610_s5 = inlined_call_operand.hbm [shape: f32[1,1024], index: 5, kind: input, shape index: {}]   ;;  %s3611_s6 = inlined_call_operand.<no memory space> [shape: f32[1,1], index: 6, kind: input, shape index: {}]   ;;  %s3612_s7 = inlined_call_operand.hbm [shape: f32[1,2], index: 7, kind: output, shape index: {}]  }
   0x1   :  { %v12_v0 = vstv %s3611_s6 }
   0x2   :  { %13 = vst [vmem:[#allocation3] sm:$0x1] %v12_v0 }
   0x3   :  { %14 = vsyncpa [#allocation5], 0 }
   0x4   :  { %15 = vsyncpa [#allocation8], 0 }
   0x5   :  { %16 = vsyncpa [#allocation11], 0 }
   0x6   :  { %17 = vsyncpa [#allocation14], 0 }
   0x7   :  { %18 = vsyncpa [#allocation6], 0  ;;  %s3275_s26 = smov [#allocation7]  }
   0x8   :  { %s36_s27 = sshll.u32 %s3275_s26, 4  ;;  %s37_s27 = int_to_ptr.vmem [resolvable:$true] %s36_s27 }
   0x9   :  { %s3145_s28 = scalar_lea.vmem %s37_s27, 4096  ;;  %p3150_p1 = scmp.lt.s32.totalorder %s37_s27, %s37_s27 }
   0xa   :  { %p3146_p0 = scmp.ne.s32.totalorder %s37_s27, %s3145_s28  ;;  %p3151_p2 = scmp.lt.s32.totalorder %s3145_s28, %s3145_s28 }
   0xc   :  { %p3152_p3 = por %p3151_p2, %p3150_p1 }
   0xe   :  { %p3153_p4 = pnand %p3152_p3, %p3146_p0 }
  0x10   :  { %3156 = shalt.err (!%p3153_p4)
}
  0x11   :  { %s3276_s29 = smov 1024   ;;  %s3277_s30 = smov 64  }
  0x12   :  { %42 = dma.hbm_to_vmem [thread:$0]  %s3606_s1, 4096, %s37_s27, [#allocation8], %s3276_s29, %s3276_s29, %s3277_s30  }
  0x13   :  { %s3278_s9 = smov [#allocation10]   ;;  %s3279_s11 = smov [#allocation4]  }
  0x14   :  { %s58_s10 = sshll.u32 %s3278_s9, 4  ;;  %s24_s12 = sshll.u32 %s3279_s11, 4  ;;  %s59_s10 = int_to_ptr.vmem [resolvable:$true] %s58_s10  ;;  %s25_s12 = int_to_ptr.vmem [resolvable:$true] %s24_s12 }
  0x15   :  { %s3165_s13 = scalar_lea.vmem %s59_s10, 131072  ;;  %p3170_p6 = scmp.lt.s32.totalorder %s59_s10, %s59_s10 }
  0x16   :  { %p3166_p5 = scmp.ne.s32.totalorder %s59_s10, %s3165_s13  ;;  %p3171_p7 = scmp.lt.s32.totalorder %s3165_s13, %s3165_s13 }
  0x18   :  { %p3172_p8 = por %p3171_p7, %p3170_p6 }
  0x1a   :  { %p3173_p9 = pnand %p3172_p8, %p3166_p5 }
  0x1c   :  { %3176 = shalt.err (!%p3173_p9)
}
  0x1d   :  { %64 = dma.hbm_to_vmem [thread:$0]  %s3608_s3, 131072, %s59_s10, [#allocation11], %s3276_s29, %s3276_s29, %s3277_s30  }
  0x1e   :  { %s3185_s16 = scalar_lea.vmem %s25_s12, 256  ;;  %p3190_p11 = scmp.lt.s32.totalorder %s25_s12, %s25_s12 }
  0x1f   :  { %p3186_p10 = scmp.ne.s32.totalorder %s25_s12, %s3185_s16  ;;  %p3191_p12 = scmp.lt.s32.totalorder %s3185_s16, %s3185_s16 }
  0x21   :  { %p3192_p13 = por %p3191_p12, %p3190_p11 }
  0x23   :  { %p3193_p0 = pnand %p3192_p13, %p3186_p10 }
  0x25   :  { %3196 = shalt.err (!%p3193_p0)
}
  0x26   :  { %s3280_s1 = smov 128   ;;  %s3281_s17 = smov 8  }
  0x27   :  { %30 = dma.hbm_to_vmem [thread:$0]  %s3605_s0, 256, %s25_s12, [#allocation5], %s3280_s1, %s3280_s1, %s3281_s17  }
  0x28   :  { %s3282_s20 = smov [#allocation9]   ;;  %s3283_s22 = smov [#allocation12]  }
  0x29   :  { %s49_s21 = sshll.u32 %s3282_s20, 4  ;;  %s71_s23 = sshll.u32 %s3283_s22, 4  ;;  %s50_s21 = int_to_ptr.vmem [resolvable:$true] %s49_s21  ;;  %s72_s23 = int_to_ptr.vmem [resolvable:$true] %s71_s23 }
  0x2a   :  { %s3205_s3 = scalar_lea.vmem %s50_s21, 128  ;;  %p3210_p2 = scmp.lt.s32.totalorder %s50_s21, %s50_s21 }
  0x2b   :  { %p3206_p1 = scmp.ne.s32.totalorder %s50_s21, %s3205_s3  ;;  %p3211_p3 = scmp.lt.s32.totalorder %s3205_s3, %s3205_s3 }
  0x2d   :  { %p3212_p4 = por %p3211_p3, %p3210_p2 }
  0x2f   :  { %p3213_p5 = pnand %p3212_p4, %p3206_p1 }
  0x31   :  { %3216 = shalt.err (!%p3213_p5)
}
  0x32   :  { %52 = dma.hbm_to_vmem [thread:$0]  %s3607_s2, 128, %s50_s21, [#allocation8]  }
  0x33   :  { %s3225_s26 = scalar_lea.vmem %s72_s23, 128  ;;  %p3230_p7 = scmp.lt.s32.totalorder %s72_s23, %s72_s23 }
  0x34   :  { %p3226_p6 = scmp.ne.s32.totalorder %s72_s23, %s3225_s26  ;;  %p3231_p8 = scmp.lt.s32.totalorder %s3225_s26, %s3225_s26 }
  0x36   :  { %p3232_p9 = por %p3231_p8, %p3230_p7 }
  0x38   :  { %p3233_p10 = pnand %p3232_p9, %p3226_p6 }
  0x3a   :  { %3236 = shalt.err (!%p3233_p10)
}
  0x3b   :  { %74 = dma.hbm_to_vmem [thread:$0]  %s3609_s4, 128, %s72_s23, [#allocation11]  }
  0x3c   :  { %s3284_s28 = smov [#allocation13]  }
  0x3d   :  { %s81_s29 = sshll.u32 %s3284_s28, 4  ;;  %s82_s29 = int_to_ptr.vmem [resolvable:$true] %s81_s29 }
  0x3e   :  { %s3245_s30 = scalar_lea.vmem %s82_s29, 128  ;;  %p3250_p12 = scmp.lt.s32.totalorder %s82_s29, %s82_s29 }
  0x3f   :  { %p3246_p11 = scmp.ne.s32.totalorder %s82_s29, %s3245_s30  ;;  %p3251_p13 = scmp.lt.s32.totalorder %s3245_s30, %s3245_s30 }
  0x41   :  { %p3252_p0 = por %p3251_p13, %p3250_p12 }
  0x43   :  { %p3253_p1 = pnand %p3252_p0, %p3246_p11 }
  0x45   :  { %3256 = shalt.err (!%p3253_p1)
}
  0x46   :  { %84 = dma.hbm_to_vmem [thread:$0]  %s3610_s5, 128, %s82_s29, [#allocation14]  }
  0x47   :  { %3265 = dma.done.wait [#allocation5], 256  }
  0x48   :  { %3266 = vsyncadd [#allocation5], 4294967040 }
  0x49   :  { %3267 = dma.done.wait [#allocation8], 4224  }
  0x4a   :  { %3268 = vsyncadd [#allocation8], 4294963072 }
  0x4b   :  { %3269 = dma.done.wait [#allocation11], 131200  }
  0x4c   :  { %3270 = vsyncadd [#allocation11], 4294836096 }
  0x4d   :  { %3271 = dma.done.wait [#allocation14], 128  }
  0x4e   :  { %3272 = vsyncadd [#allocation14], 4294967168  ;;  %v3285_v1 = vmov 0.0   ;;  %v148_v2 = vld [vmem:[#allocation7 + $0xc8] sm:$0xff]  ;;  %v150_v3 = vld [vmem:[#allocation7 + $0xd8] sm:$0xff]  ;;  %vm197_vm0 = vcmask 261120  }
  0x4f   :  { %268 = vmatprep.mubr.f32.mxu0 %v3285_v1  ;;  %345 = vmatprep.mubr.f32.mxu1 %v3285_v1  ;;  %v147_v4 = vld [vmem:[#allocation7 + $0xc0] sm:$0xff]  ;;  %v149_v5 = vld [vmem:[#allocation7 + $0xd0] sm:$0xff]  ;;  %v140_v6 = vld [vmem:[#allocation7 + $0x88] sm:$0xff]  ;;  %vm2965_vm1 = vcmask 7168   ;;  %s3286_s16 = smov [#allocation15]  }
  0x50   :  { %228 = vmatprep.subr.mxu0 %v148_v2  ;;  %305 = vmatprep.subr.mxu1 %v150_v3  ;;  %v142_v7 = vld [vmem:[#allocation7 + $0x98] sm:$0xff]  ;;  %v139_v8 = vld [vmem:[#allocation7 + $0x80] sm:$0xff]  ;;  %v141_v9 = vld [vmem:[#allocation7 + $0x90] sm:$0xff] }
  0x51   :  { %229 = vmatpush1.msra.mxu0 %v147_v4  ;;  %306 = vmatpush1.msra.mxu1 %v149_v5  ;;  %v132_v10 = vld [vmem:[#allocation7 + $0x48] sm:$0xff]  ;;  %v134_v11 = vld [vmem:[#allocation7 + $0x58] sm:$0xff]  ;;  %v131_v12 = vld [vmem:[#allocation7 + $0x40] sm:$0xff] }
  0x52   :  { %230 = vmatprep.subr.mxu0 %v140_v6  ;;  %307 = vmatprep.subr.mxu1 %v142_v7  ;;  %v133_v13 = vld [vmem:[#allocation7 + $0x50] sm:$0xff]  ;;  %v124_v14 = vld [vmem:[#allocation7 + $0x8] sm:$0xff]  ;;  %v126_v15 = vld [vmem:[#allocation7 + $0x18] sm:$0xff] }
  0x53   :  { %231 = vmatpush1.msra.mxu0 %v139_v8  ;;  %308 = vmatpush1.msra.mxu1 %v141_v9  ;;  %v123_v16 = vld [vmem:[#allocation7] sm:$0xff]  ;;  %v125_v17 = vld [vmem:[#allocation7 + $0x10] sm:$0xff]  ;;  %v152_v19 = vld [vmem:[#allocation7 + $0xe8] sm:$0xff] }
  0x54   :  { %232 = vmatprep.subr.mxu0 %v132_v10  ;;  %309 = vmatprep.subr.mxu1 %v134_v11  ;;  %v121_v18 = vld [vmem:[#allocation4] sm:$0xff]  ;;  %v151_v20 = vld [vmem:[#allocation7 + $0xe0] sm:$0xff]  ;;  %v154_v21 = vld [vmem:[#allocation7 + $0xf8] sm:$0xff] }
  0x55   :  { %233 = vmatpush1.msra.mxu0 %v131_v12  ;;  %310 = vmatpush1.msra.mxu1 %v133_v13  ;;  %v144_v22 = vld [vmem:[#allocation7 + $0xa8] sm:$0xff]  ;;  %v122_v23 = vld [vmem:[#allocation4 + $0x8] sm:$0xff]  ;;  %v153_v24 = vld [vmem:[#allocation7 + $0xf0] sm:$0xff] }
  0x56   :  { %234 = vmatprep.subr.mxu0 %v124_v14  ;;  %311 = vmatprep.subr.mxu1 %v126_v15  ;;  %v143_v25 = vld [vmem:[#allocation7 + $0xa0] sm:$0xff]  ;;  %v146_v26 = vld [vmem:[#allocation7 + $0xb8] sm:$0xff]  ;;  %v136_v27 = vld [vmem:[#allocation7 + $0x68] sm:$0xff] }
  0x57   :  { %235 = vmatpush1.msra.mxu0 %v123_v16  ;;  %312 = vmatpush1.msra.mxu1 %v125_v17  ;;  %v145_v28 = vld [vmem:[#allocation7 + $0xb0] sm:$0xff]  ;;  %v135_v29 = vld [vmem:[#allocation7 + $0x60] sm:$0xff]  ;;  %v138_v30 = vld [vmem:[#allocation7 + $0x78] sm:$0xff] }
  0x58   :  { %3091 = vmatmul.mubr.msk.f32.vlgmr.msra.gmra.mxu0 %vm197_vm0, %v121_v18  ;;  %3093 = vmatmul.mubr.msk.f32.vlgmr.msra.gmra.mxu1 %vm197_vm0, %v121_v18  ;;  %v128_v31 = vld [vmem:[#allocation7 + $0x28] sm:$0xff]  ;;  %v137_v32 = vld [vmem:[#allocation7 + $0x70] sm:$0xff]  ;;  %v127_v33 = vld [vmem:[#allocation7 + $0x20] sm:$0xff] }
  0x59   :  { %274 = vmatprep.mubr.f32.mxu0 %v3285_v1  ;;  %382 = vmatprep.subr.mxu0 %v152_v19  ;;  %v130_v34 = vld [vmem:[#allocation7 + $0x38] sm:$0xff]  ;;  %v129_v35 = vld [vmem:[#allocation7 + $0x30] sm:$0xff]  ;;  %v904_v38 = vld [vmem:[#allocation10 + $0xbc0] sm:$0xff] }
  0x5a   :  { %383 = vmatpush1.msra.mxu0 %v151_v20  ;;  %459 = vmatprep.subr.mxu1 %v154_v21  ;;  %v649_v36 = vld [vmem:[#allocation10 + $0x3c8] sm:$0xff]  ;;  %v648_v39 = vld [vmem:[#allocation10 + $0x3c0] sm:$0xff] }
  0x5b   :  { %351 = vmatprep.mubr.f32.mxu1 %v3285_v1  ;;  %384 = vmatprep.subr.mxu0 %v144_v22  ;;  %v905_v37 = vld [vmem:[#allocation10 + $0xbc8] sm:$0xff]  ;;  %v640_v42 = vld [vmem:[#allocation10 + $0x380] sm:$0xff] }
  0x5c   :  { %3092 = vmatmul.mubr.msk.f32.gmra.mxu0 %vm197_vm0, %v122_v23  ;;  %460 = vmatpush1.msra.mxu1 %v153_v24  ;;  %v897_v40 = vld [vmem:[#allocation10 + $0xb88] sm:$0xff]  ;;  %v896_v43 = vld [vmem:[#allocation10 + $0xb80] sm:$0xff] }
  0x5d   :  { %3094 = vmatmul.mubr.msk.f32.gmra.mxu1 %vm197_vm0, %v122_v23  ;;  %385 = vmatpush1.msra.mxu0 %v143_v25  ;;  %v641_v41 = vld [vmem:[#allocation10 + $0x388] sm:$0xff]  ;;  %v632_v46 = vld [vmem:[#allocation10 + $0x340] sm:$0xff] }
  0x5e   :  { %461 = vmatprep.subr.mxu1 %v146_v26  ;;  %386 = vmatprep.subr.mxu0 %v136_v27  ;;  %v633_v44 = vld [vmem:[#allocation10 + $0x348] sm:$0xff]  ;;  %v888_v47 = vld [vmem:[#allocation10 + $0xb40] sm:$0xff] }
  0x5f   :  { %462 = vmatpush1.msra.mxu1 %v145_v28  ;;  %387 = vmatpush1.msra.mxu0 %v135_v29  ;;  %v889_v45 = vld [vmem:[#allocation10 + $0xb48] sm:$0xff]  ;;  %v624_v50 = vld [vmem:[#allocation10 + $0x300] sm:$0xff] }
  0x60   :  { %463 = vmatprep.subr.mxu1 %v138_v30  ;;  %388 = vmatprep.subr.mxu0 %v128_v31  ;;  %v625_v48 = vld [vmem:[#allocation10 + $0x308] sm:$0xff]  ;;  %v880_v51 = vld [vmem:[#allocation10 + $0xb00] sm:$0xff] }
  0x61   :  { %464 = vmatpush1.msra.mxu1 %v137_v32  ;;  %389 = vmatpush1.msra.mxu0 %v127_v33  ;;  %v881_v49 = vld [vmem:[#allocation10 + $0xb08] sm:$0xff]  ;;  %v616_v54 = vld [vmem:[#allocation10 + $0x2c0] sm:$0xff] }
  0x62   :  { %422 = vmatprep.mubr.f32.mxu0 %v3285_v1  ;;  %465 = vmatprep.subr.mxu1 %v130_v34  ;;  %v617_v52 = vld [vmem:[#allocation10 + $0x2c8] sm:$0xff]  ;;  %v872_v55 = vld [vmem:[#allocation10 + $0xac0] sm:$0xff] }
  0x63   :  { %3095 = vmatmul.mubr.msk.f32.vlgmr.msra.gmra.mxu0 %vm197_vm0, %v121_v18  ;;  %466 = vmatpush1.msra.mxu1 %v129_v35  ;;  %v873_v53 = vld [vmem:[#allocation10 + $0xac8] sm:$0xff]  ;;  %v608_v58 = vld [vmem:[#allocation10 + $0x280] sm:$0xff] }
  0x64   :  { %499 = vmatprep.mubr.f32.mxu1 %v3285_v1  ;;  %428 = vmatprep.mubr.f32.mxu0 %v3285_v1  ;;  %v609_v56 = vld [vmem:[#allocation10 + $0x288] sm:$0xff]  ;;  %v864_v59 = vld [vmem:[#allocation10 + $0xa80] sm:$0xff] }
  0x65   :  { %3097 = vmatmul.mubr.msk.f32.vlgmr.msra.gmra.mxu1 %vm197_vm0, %v121_v18  ;;  %1594 = vmatprep.subr.mxu0 %v649_v36  ;;  %v865_v57 = vld [vmem:[#allocation10 + $0xa88] sm:$0xff]  ;;  %v600_v62 = vld [vmem:[#allocation10 + $0x240] sm:$0xff] }
  0x66   :  { %505 = vmatprep.mubr.f32.mxu1 %v3285_v1  ;;  %1671 = vmatprep.subr.mxu1 %v905_v37  ;;  %v601_v60 = vld [vmem:[#allocation10 + $0x248] sm:$0xff]  ;;  %v856_v63 = vld [vmem:[#allocation10 + $0xa40] sm:$0xff] }
  0x67   :  { %3096 = vmatmul.mubr.msk.f32.gmra.mxu0 %vm197_vm0, %v122_v23  ;;  %1672 = vmatpush1.msra.mxu1 %v904_v38  ;;  %v857_v61 = vld [vmem:[#allocation10 + $0xa48] sm:$0xff]  ;;  %v592_v2 = vld [vmem:[#allocation10 + $0x200] sm:$0xff] }
  0x68   :  { %1595 = vmatpush1.msra.mxu0 %v648_v39  ;;  %1673 = vmatprep.subr.mxu1 %v897_v40  ;;  %v593_v0 = vld [vmem:[#allocation10 + $0x208] sm:$0xff]  ;;  %v848_v3 = vld [vmem:[#allocation10 + $0xa00] sm:$0xff] }
  0x69   :  { %3098 = vmatmul.mubr.msk.f32.gmra.mxu1 %vm197_vm0, %v122_v23  ;;  %1596 = vmatprep.subr.mxu0 %v641_v41  ;;  %v849_v1 = vld [vmem:[#allocation10 + $0xa08] sm:$0xff]  ;;  %v584_v6 = vld [vmem:[#allocation10 + $0x1c0] sm:$0xff] }
  0x6a   :  { %1597 = vmatpush1.msra.mxu0 %v640_v42  ;;  %1674 = vmatpush1.msra.mxu1 %v896_v43  ;;  %v585_v4 = vld [vmem:[#allocation10 + $0x1c8] sm:$0xff]  ;;  %v840_v7 = vld [vmem:[#allocation10 + $0x9c0] sm:$0xff] }
  0x6b   :  { %1598 = vmatprep.subr.mxu0 %v633_v44  ;;  %1675 = vmatprep.subr.mxu1 %v889_v45  ;;  %v841_v5 = vld [vmem:[#allocation10 + $0x9c8] sm:$0xff]  ;;  %v576_v10 = vld [vmem:[#allocation10 + $0x180] sm:$0xff] }
  0x6c   :  { %1599 = vmatpush1.msra.mxu0 %v632_v46  ;;  %1676 = vmatpush1.msra.mxu1 %v888_v47  ;;  %v577_v8 = vld [vmem:[#allocation10 + $0x188] sm:$0xff]  ;;  %v832_v11 = vld [vmem:[#allocation10 + $0x980] sm:$0xff] }
  0x6d   :  { %1600 = vmatprep.subr.mxu0 %v625_v48  ;;  %1677 = vmatprep.subr.mxu1 %v881_v49  ;;  %v833_v9 = vld [vmem:[#allocation10 + $0x988] sm:$0xff]  ;;  %v568_v14 = vld [vmem:[#allocation10 + $0x140] sm:$0xff] }
  0x6e   :  { %1601 = vmatpush1.msra.mxu0 %v624_v50  ;;  %1678 = vmatpush1.msra.mxu1 %v880_v51  ;;  %v569_v12 = vld [vmem:[#allocation10 + $0x148] sm:$0xff]  ;;  %v824_v15 = vld [vmem:[#allocation10 + $0x940] sm:$0xff] }
  0x6f   :  { %1602 = vmatprep.subr.mxu0 %v617_v52  ;;  %1679 = vmatprep.subr.mxu1 %v873_v53  ;;  %v825_v13 = vld [vmem:[#allocation10 + $0x948] sm:$0xff]  ;;  %v560_v18 = vld [vmem:[#allocation10 + $0x100] sm:$0xff] }
  0x70   :  { %1603 = vmatpush1.msra.mxu0 %v616_v54  ;;  %1680 = vmatpush1.msra.mxu1 %v872_v55  ;;  %v561_v16 = vld [vmem:[#allocation10 + $0x108] sm:$0xff]  ;;  %v816_v19 = vld [vmem:[#allocation10 + $0x900] sm:$0xff] }
  0x71   :  { %1604 = vmatprep.subr.mxu0 %v609_v56  ;;  %1681 = vmatprep.subr.mxu1 %v865_v57  ;;  %v817_v17 = vld [vmem:[#allocation10 + $0x908] sm:$0xff]  ;;  %v552_v22 = vld [vmem:[#allocation10 + $0xc0] sm:$0xff] }
  0x72   :  { %1605 = vmatpush1.msra.mxu0 %v608_v58  ;;  %1682 = vmatpush1.msra.mxu1 %v864_v59  ;;  %v553_v20 = vld [vmem:[#allocation10 + $0xc8] sm:$0xff]  ;;  %v808_v23 = vld [vmem:[#allocation10 + $0x8c0] sm:$0xff] }
  0x73   :  { %1606 = vmatprep.subr.mxu0 %v601_v60  ;;  %1683 = vmatprep.subr.mxu1 %v857_v61  ;;  %v809_v21 = vld [vmem:[#allocation10 + $0x8c8] sm:$0xff]  ;;  %v544_v26 = vld [vmem:[#allocation10 + $0x80] sm:$0xff] }
  0x74   :  { %1607 = vmatpush1.msra.mxu0 %v600_v62  ;;  %1684 = vmatpush1.msra.mxu1 %v856_v63  ;;  %v545_v24 = vld [vmem:[#allocation10 + $0x88] sm:$0xff]  ;;  %v800_v27 = vld [vmem:[#allocation10 + $0x880] sm:$0xff] }
  0x75   :  { %1608 = vmatprep.subr.mxu0 %v593_v0  ;;  %1685 = vmatprep.subr.mxu1 %v849_v1  ;;  %v801_v25 = vld [vmem:[#allocation10 + $0x888] sm:$0xff]  ;;  %v536_v30 = vld [vmem:[#allocation10 + $0x40] sm:$0xff] }
  0x76   :  { %1609 = vmatpush1.msra.mxu0 %v592_v2  ;;  %1686 = vmatpush1.msra.mxu1 %v848_v3  ;;  %v537_v28 = vld [vmem:[#allocation10 + $0x48] sm:$0xff]  ;;  %v792_v31 = vld [vmem:[#allocation10 + $0x840] sm:$0xff] }
  0x77   :  { %1610 = vmatprep.subr.mxu0 %v585_v4  ;;  %1687 = vmatprep.subr.mxu1 %v841_v5  ;;  %v793_v29 = vld [vmem:[#allocation10 + $0x848] sm:$0xff]  ;;  %v528_v34 = vld [vmem:[#allocation10] sm:$0xff] }
  0x78   :  { %1611 = vmatpush1.msra.mxu0 %v584_v6  ;;  %1688 = vmatpush1.msra.mxu1 %v840_v7  ;;  %v529_v32 = vld [vmem:[#allocation10 + $0x8] sm:$0xff]  ;;  %v784_v35 = vld [vmem:[#allocation10 + $0x800] sm:$0xff] }
  0x79   :  { %1612 = vmatprep.subr.mxu0 %v577_v8  ;;  %1689 = vmatprep.subr.mxu1 %v833_v9  ;;  %v785_v33 = vld [vmem:[#allocation10 + $0x808] sm:$0xff]  ;;  %v776_v38 = vld [vmem:[#allocation10 + $0x7c0] sm:$0xff] }
  0x7a   :  { %1613 = vmatpush1.msra.mxu0 %v576_v10  ;;  %1690 = vmatpush1.msra.mxu1 %v832_v11  ;;  %v777_v36 = vld [vmem:[#allocation10 + $0x7c8] sm:$0xff]  ;;  %v1032_v39 = vld [vmem:[#allocation10 + $0xfc0] sm:$0xff] }
  0x7b   :  { %1614 = vmatprep.subr.mxu0 %v569_v12  ;;  %1691 = vmatprep.subr.mxu1 %v825_v13  ;;  %v1033_v37 = vld [vmem:[#allocation10 + $0xfc8] sm:$0xff]  ;;  %v768_v42 = vld [vmem:[#allocation10 + $0x780] sm:$0xff] }
  0x7c   :  { %1615 = vmatpush1.msra.mxu0 %v568_v14  ;;  %1692 = vmatpush1.msra.mxu1 %v824_v15  ;;  %v769_v40 = vld [vmem:[#allocation10 + $0x788] sm:$0xff]  ;;  %v1024_v43 = vld [vmem:[#allocation10 + $0xf80] sm:$0xff] }
  0x7d   :  { %1616 = vmatprep.subr.mxu0 %v561_v16  ;;  %1693 = vmatprep.subr.mxu1 %v817_v17  ;;  %v1025_v41 = vld [vmem:[#allocation10 + $0xf88] sm:$0xff]  ;;  %v760_v46 = vld [vmem:[#allocation10 + $0x740] sm:$0xff] }
  0x7e   :  { %1617 = vmatpush1.msra.mxu0 %v560_v18  ;;  %1694 = vmatpush1.msra.mxu1 %v816_v19  ;;  %v761_v44 = vld [vmem:[#allocation10 + $0x748] sm:$0xff]  ;;  %v1016_v47 = vld [vmem:[#allocation10 + $0xf40] sm:$0xff] }
  0x7f   :  { %1618 = vmatprep.subr.mxu0 %v553_v20  ;;  %1695 = vmatprep.subr.mxu1 %v809_v21  ;;  %v1017_v45 = vld [vmem:[#allocation10 + $0xf48] sm:$0xff]  ;;  %v752_v50 = vld [vmem:[#allocation10 + $0x700] sm:$0xff] }
  0x80   :  { %1619 = vmatpush1.msra.mxu0 %v552_v22  ;;  %1696 = vmatpush1.msra.mxu1 %v808_v23  ;;  %v753_v48 = vld [vmem:[#allocation10 + $0x708] sm:$0xff]  ;;  %v1008_v51 = vld [vmem:[#allocation10 + $0xf00] sm:$0xff] }
  0x81   :  { %1620 = vmatprep.subr.mxu0 %v545_v24  ;;  %1697 = vmatprep.subr.mxu1 %v801_v25  ;;  %v1009_v49 = vld [vmem:[#allocation10 + $0xf08] sm:$0xff]  ;;  %v744_v54 = vld [vmem:[#allocation10 + $0x6c0] sm:$0xff] }
  0x82   :  { %1621 = vmatpush1.msra.mxu0 %v544_v26  ;;  %1698 = vmatpush1.msra.mxu1 %v800_v27  ;;  %v745_v52 = vld [vmem:[#allocation10 + $0x6c8] sm:$0xff]  ;;  %v1000_v55 = vld [vmem:[#allocation10 + $0xec0] sm:$0xff] }
  0x83   :  { %1622 = vmatprep.subr.mxu0 %v537_v28  ;;  %1699 = vmatprep.subr.mxu1 %v793_v29  ;;  %v1001_v53 = vld [vmem:[#allocation10 + $0xec8] sm:$0xff]  ;;  %v736_v58 = vld [vmem:[#allocation10 + $0x680] sm:$0xff] }
  0x84   :  { %1623 = vmatpush1.msra.mxu0 %v536_v30  ;;  %1700 = vmatpush1.msra.mxu1 %v792_v31  ;;  %v737_v56 = vld [vmem:[#allocation10 + $0x688] sm:$0xff]  ;;  %v992_v59 = vld [vmem:[#allocation10 + $0xe80] sm:$0xff] }
  0x85   :  { %1624 = vmatprep.subr.mxu0 %v529_v32  ;;  %1701 = vmatprep.subr.mxu1 %v785_v33  ;;  %v993_v57 = vld [vmem:[#allocation10 + $0xe88] sm:$0xff]  ;;  %v728_v62 = vld [vmem:[#allocation10 + $0x640] sm:$0xff] }
  0x86   :  { %1625 = vmatpush1.msra.mxu0 %v528_v34  ;;  %1702 = vmatpush1.msra.mxu1 %v784_v35  ;;  %v729_v60 = vld [vmem:[#allocation10 + $0x648] sm:$0xff]  ;;  %v984_v63 = vld [vmem:[#allocation10 + $0xe40] sm:$0xff] }
  0x87   :  { %1626 = vmatprep.subr.mxu0 %v777_v36  ;;  %1703 = vmatprep.subr.mxu1 %v1033_v37  ;;  %v985_v61 = vld [vmem:[#allocation10 + $0xe48] sm:$0xff]  ;;  %v720_v2 = vld [vmem:[#allocation10 + $0x600] sm:$0xff] }
  0x88   :  { %1627 = vmatpush2.msra.mxu0 %v776_v38  ;;  %1704 = vmatpush2.msra.mxu1 %v1032_v39  ;;  %v721_v0 = vld [vmem:[#allocation10 + $0x608] sm:$0xff]  ;;  %v976_v3 = vld [vmem:[#allocation10 + $0xe00] sm:$0xff]  ;;  %v157_v38 = vlaneseq }
  0x89   :  { %1628 = vmatprep.subr.mxu0 %v769_v40  ;;  %1705 = vmatprep.subr.mxu1 %v1025_v41  ;;  %v977_v1 = vld [vmem:[#allocation10 + $0xe08] sm:$0xff]  ;;  %v712_v6 = vld [vmem:[#allocation10 + $0x5c0] sm:$0xff] }
  0x8a   :  { %1629 = vmatpush2.msra.mxu0 %v768_v42  ;;  %1706 = vmatpush2.msra.mxu1 %v1024_v43  ;;  %v713_v4 = vld [vmem:[#allocation10 + $0x5c8] sm:$0xff]  ;;  %v968_v7 = vld [vmem:[#allocation10 + $0xdc0] sm:$0xff]  ;;  %v3364_v39 = vshrl.u32 %v157_v38, 7  ;;  %v3372_v42 = vld [vmem:[#allocation9] sm:$0xff] }
  0x8b   :  { %1630 = vmatprep.subr.mxu0 %v761_v44  ;;  %1707 = vmatprep.subr.mxu1 %v1017_v45  ;;  %v969_v5 = vld [vmem:[#allocation10 + $0xdc8] sm:$0xff]  ;;  %v704_v10 = vld [vmem:[#allocation10 + $0x580] sm:$0xff] }
  0x8c   :  { %1631 = vmatpush2.msra.mxu0 %v760_v46  ;;  %1708 = vmatpush2.msra.mxu1 %v1016_v47  ;;  %v705_v8 = vld [vmem:[#allocation10 + $0x588] sm:$0xff]  ;;  %v960_v11 = vld [vmem:[#allocation10 + $0xd80] sm:$0xff]  ;;  %v3367_v40 = vsub.s32 2, %v3364_v39  ;;  %v3370_v41 = vsub.s32 0, %v3364_v39  ;;  %v3375_v43 = vsub.s32 1, %v3364_v39  ;;  %v3378_v44 = vsub.s32 3, %v3364_v39 }
  0x8d   :  { %1632 = vmatprep.subr.mxu0 %v753_v48  ;;  %1709 = vmatprep.subr.mxu1 %v1009_v49  ;;  %v961_v9 = vld [vmem:[#allocation10 + $0xd88] sm:$0xff]  ;;  %v696_v14 = vld [vmem:[#allocation10 + $0x540] sm:$0xff] }
  0x8e   :  { %1633 = vmatpush2.msra.mxu0 %v752_v50  ;;  %1710 = vmatpush2.msra.mxu1 %v1008_v51  ;;  %v697_v12 = vld [vmem:[#allocation10 + $0x548] sm:$0xff]  ;;  %v952_v15 = vld [vmem:[#allocation10 + $0xd40] sm:$0xff]  ;;  %v3382_v45 = vrot.slane %v3372_v42, %v3367_v40  ;;  %v3386_v46 = vrot.slane %v3372_v42, %v3370_v41  ;;  %v3390_v47 = vrot.slane %v3372_v42, %v3375_v43 }
  0x8f   :  { %1634 = vmatprep.subr.mxu0 %v745_v52  ;;  %1711 = vmatprep.subr.mxu1 %v1001_v53  ;;  %v953_v13 = vld [vmem:[#allocation10 + $0xd48] sm:$0xff]  ;;  %v688_v18 = vld [vmem:[#allocation10 + $0x500] sm:$0xff]  ;;  %v3394_v48 = vrot.slane %v3372_v42, %v3378_v44 }
  0x90   :  { %1635 = vmatpush2.msra.mxu0 %v744_v54  ;;  %1712 = vmatpush2.msra.mxu1 %v1000_v55  ;;  %v689_v16 = vld [vmem:[#allocation10 + $0x508] sm:$0xff]  ;;  %v944_v19 = vld [vmem:[#allocation10 + $0xd00] sm:$0xff] }
  0x91   :  { %1636 = vmatprep.subr.mxu0 %v737_v56  ;;  %1713 = vmatprep.subr.mxu1 %v993_v57  ;;  %v945_v17 = vld [vmem:[#allocation10 + $0xd08] sm:$0xff]  ;;  %v680_v22 = vld [vmem:[#allocation10 + $0x4c0] sm:$0xff] }
  0x92   :  { %1637 = vmatpush2.msra.mxu0 %v736_v58  ;;  %1714 = vmatpush2.msra.mxu1 %v992_v59  ;;  %v681_v20 = vld [vmem:[#allocation10 + $0x4c8] sm:$0xff]  ;;  %v936_v23 = vld [vmem:[#allocation10 + $0xcc0] sm:$0xff] }
  0x93   :  { %1638 = vmatprep.subr.mxu0 %v729_v60  ;;  %1715 = vmatprep.subr.mxu1 %v985_v61  ;;  %v937_v21 = vld [vmem:[#allocation10 + $0xcc8] sm:$0xff]  ;;  %v672_v26 = vld [vmem:[#allocation10 + $0x480] sm:$0xff] }
  0x94   :  { %1639 = vmatpush2.msra.mxu0 %v728_v62  ;;  %1716 = vmatpush2.msra.mxu1 %v984_v63  ;;  %v673_v24 = vld [vmem:[#allocation10 + $0x488] sm:$0xff]  ;;  %v928_v27 = vld [vmem:[#allocation10 + $0xc80] sm:$0xff] }
  0x95   :  { %1640 = vmatprep.subr.mxu0 %v721_v0  ;;  %1717 = vmatprep.subr.mxu1 %v977_v1  ;;  %v929_v25 = vld [vmem:[#allocation10 + $0xc88] sm:$0xff]  ;;  %v664_v30 = vld [vmem:[#allocation10 + $0x440] sm:$0xff] }
  0x96   :  { %1641 = vmatpush2.msra.mxu0 %v720_v2  ;;  %1718 = vmatpush2.msra.mxu1 %v976_v3  ;;  %v665_v28 = vld [vmem:[#allocation10 + $0x448] sm:$0xff]  ;;  %v920_v31 = vld [vmem:[#allocation10 + $0xc40] sm:$0xff] }
  0x97   :  { %1642 = vmatprep.subr.mxu0 %v713_v4  ;;  %1719 = vmatprep.subr.mxu1 %v969_v5  ;;  %v921_v29 = vld [vmem:[#allocation10 + $0xc48] sm:$0xff]  ;;  %v656_v34 = vld [vmem:[#allocation10 + $0x400] sm:$0xff] }
  0x98   :  { %1643 = vmatpush2.msra.mxu0 %v712_v6  ;;  %1720 = vmatpush2.msra.mxu1 %v968_v7  ;;  %v657_v32 = vld [vmem:[#allocation10 + $0x408] sm:$0xff]  ;;  %v912_v35 = vld [vmem:[#allocation10 + $0xc00] sm:$0xff] }
  0x99   :  { %1644 = vmatprep.subr.mxu0 %v705_v8  ;;  %1721 = vmatprep.subr.mxu1 %v961_v9  ;;  %v913_v33 = vld [vmem:[#allocation10 + $0xc08] sm:$0xff]  ;;  %v1160_v61 = vld [vmem:[#allocation10 + $0x13c0] sm:$0xff] }
  0x9a   :  { %1645 = vmatpush2.msra.mxu0 %v704_v10  ;;  %1722 = vmatpush2.msra.mxu1 %v960_v11  ;;  %v1161_v36 = vld [vmem:[#allocation10 + $0x13c8] sm:$0xff]  ;;  %v1416_v62 = vld [vmem:[#allocation10 + $0x1bc0] sm:$0xff] }
  0x9b   :  { %1646 = vmatprep.subr.mxu0 %v697_v12  ;;  %1723 = vmatprep.subr.mxu1 %v953_v13  ;;  %v1417_v37 = vld [vmem:[#allocation10 + $0x1bc8] sm:$0xff]  ;;  %v1152_v1 = vld [vmem:[#allocation10 + $0x1380] sm:$0xff] }
  0x9c   :  { %1647 = vmatpush2.msra.mxu0 %v696_v14  ;;  %1724 = vmatpush2.msra.mxu1 %v952_v15  ;;  %v1153_v63 = vld [vmem:[#allocation10 + $0x1388] sm:$0xff]  ;;  %v1408_v2 = vld [vmem:[#allocation10 + $0x1b80] sm:$0xff] }
  0x9d   :  { %1648 = vmatprep.subr.mxu0 %v689_v16  ;;  %1725 = vmatprep.subr.mxu1 %v945_v17  ;;  %v1409_v0 = vld [vmem:[#allocation10 + $0x1b88] sm:$0xff]  ;;  %v1144_v5 = vld [vmem:[#allocation10 + $0x1340] sm:$0xff] }
  0x9e   :  { %1649 = vmatpush2.msra.mxu0 %v688_v18  ;;  %1726 = vmatpush2.msra.mxu1 %v944_v19  ;;  %v1145_v3 = vld [vmem:[#allocation10 + $0x1348] sm:$0xff]  ;;  %v1400_v6 = vld [vmem:[#allocation10 + $0x1b40] sm:$0xff] }
  0x9f   :  { %1650 = vmatprep.subr.mxu0 %v681_v20  ;;  %1727 = vmatprep.subr.mxu1 %v937_v21  ;;  %v1401_v4 = vld [vmem:[#allocation10 + $0x1b48] sm:$0xff]  ;;  %v1136_v9 = vld [vmem:[#allocation10 + $0x1300] sm:$0xff] }
  0xa0   :  { %1651 = vmatpush2.msra.mxu0 %v680_v22  ;;  %1728 = vmatpush2.msra.mxu1 %v936_v23  ;;  %v1137_v7 = vld [vmem:[#allocation10 + $0x1308] sm:$0xff]  ;;  %v1392_v10 = vld [vmem:[#allocation10 + $0x1b00] sm:$0xff] }
  0xa1   :  { %1652 = vmatprep.subr.mxu0 %v673_v24  ;;  %1729 = vmatprep.subr.mxu1 %v929_v25  ;;  %v1393_v8 = vld [vmem:[#allocation10 + $0x1b08] sm:$0xff]  ;;  %v1128_v13 = vld [vmem:[#allocation10 + $0x12c0] sm:$0xff] }
  0xa2   :  { %1653 = vmatpush2.msra.mxu0 %v672_v26  ;;  %1730 = vmatpush2.msra.mxu1 %v928_v27  ;;  %v1129_v11 = vld [vmem:[#allocation10 + $0x12c8] sm:$0xff]  ;;  %v1384_v14 = vld [vmem:[#allocation10 + $0x1ac0] sm:$0xff] }
  0xa3   :  { %1654 = vmatprep.subr.mxu0 %v665_v28  ;;  %1731 = vmatprep.subr.mxu1 %v921_v29  ;;  %v1385_v12 = vld [vmem:[#allocation10 + $0x1ac8] sm:$0xff]  ;;  %v1120_v17 = vld [vmem:[#allocation10 + $0x1280] sm:$0xff] }
  0xa4   :  { %1655 = vmatpush2.msra.mxu0 %v664_v30  ;;  %1732 = vmatpush2.msra.mxu1 %v920_v31  ;;  %v1121_v15 = vld [vmem:[#allocation10 + $0x1288] sm:$0xff]  ;;  %v1376_v18 = vld [vmem:[#allocation10 + $0x1a80] sm:$0xff] }
  0xa5   :  { %1656 = vmatprep.subr.mxu0 %v657_v32  ;;  %1733 = vmatprep.subr.mxu1 %v913_v33  ;;  %v1377_v16 = vld [vmem:[#allocation10 + $0x1a88] sm:$0xff]  ;;  %v1112_v21 = vld [vmem:[#allocation10 + $0x1240] sm:$0xff] }
  0xa6   :  { %1657 = vmatpush2.msra.mxu0 %v656_v34  ;;  %1734 = vmatpush2.msra.mxu1 %v912_v35  ;;  %v1113_v19 = vld [vmem:[#allocation10 + $0x1248] sm:$0xff]  ;;  %v1368_v22 = vld [vmem:[#allocation10 + $0x1a40] sm:$0xff] }
  0xa7   :  { %1748 = vmatprep.subr.mxu0 %v1161_v36  ;;  %1825 = vmatprep.subr.mxu1 %v1417_v37  ;;  %v1369_v20 = vld [vmem:[#allocation10 + $0x1a48] sm:$0xff]  ;;  %v1104_v25 = vld [vmem:[#allocation10 + $0x1200] sm:$0xff] }
  0xa8   :  { %v1105_v23 = vld [vmem:[#allocation10 + $0x1208] sm:$0xff]  ;;  %v1360_v26 = vld [vmem:[#allocation10 + $0x1a00] sm:$0xff] }
  0xa9   :  { %v1361_v24 = vld [vmem:[#allocation10 + $0x1a08] sm:$0xff]  ;;  %v1096_v29 = vld [vmem:[#allocation10 + $0x11c0] sm:$0xff] }
  0xaa   :  { %v1097_v27 = vld [vmem:[#allocation10 + $0x11c8] sm:$0xff]  ;;  %v1352_v30 = vld [vmem:[#allocation10 + $0x19c0] sm:$0xff] }
  0xab   :  { %v1353_v28 = vld [vmem:[#allocation10 + $0x19c8] sm:$0xff]  ;;  %v1088_v33 = vld [vmem:[#allocation10 + $0x1180] sm:$0xff] }
  0xac   :  { %v1089_v31 = vld [vmem:[#allocation10 + $0x1188] sm:$0xff]  ;;  %v1344_v34 = vld [vmem:[#allocation10 + $0x1980] sm:$0xff] }
  0xad   :  { %v1345_v32 = vld [vmem:[#allocation10 + $0x1988] sm:$0xff]  ;;  %v1080_v37 = vld [vmem:[#allocation10 + $0x1140] sm:$0xff] }
  0xae   :  { %v1081_v35 = vld [vmem:[#allocation10 + $0x1148] sm:$0xff]  ;;  %v1336_v38 = vld [vmem:[#allocation10 + $0x1940] sm:$0xff] }
  0xaf   :  { %v1337_v36 = vld [vmem:[#allocation10 + $0x1948] sm:$0xff] }
 0x118   :  { %v270_v49 = vpop.f32.mrf.mxu0  ;;  %v347_v50 = vpop.f32.mrf.mxu1 }
 0x119   :  { %v348_v51 = vadd.f32 %v347_v50, %v3382_v45  ;;  %v271_v52 = vadd.f32 %v270_v49, %v3386_v46  ;;  %v1073_v49 = vld [vmem:[#allocation10 + $0x1108] sm:$0xff] }
 0x11a   :  { %v272_v53 = vpop.f32.mrf.mxu0  ;;  %v349_v54 = vpop.f32.mrf.mxu1  ;;  %v1329_v50 = vld [vmem:[#allocation10 + $0x1908] sm:$0xff] }
 0x11b   :  { %v273_v55 = vadd.f32 %v272_v53, %v3390_v47  ;;  %v350_v56 = vadd.f32 %v349_v54, %v3394_v48  ;;  %v3400_v57 = vmax.f32 %v348_v51, 0.0  ;;  %v3406_v60 = vmax.f32 %v271_v52, 0.0  ;;  %v1072_v51 = vld [vmem:[#allocation10 + $0x1100] sm:$0xff]  ;;  %v1065_v53 = vld [vmem:[#allocation10 + $0x10c8] sm:$0xff] }
 0x11c   :  { %v1328_v52 = vld [vmem:[#allocation10 + $0x1900] sm:$0xff]  ;;  %v1321_v54 = vld [vmem:[#allocation10 + $0x18c8] sm:$0xff] }
 0x11d   :  { %v3402_v58 = vmax.f32 %v273_v55, 0.0  ;;  %v3404_v59 = vmax.f32 %v350_v56, 0.0  ;;  %v1064_v55 = vld [vmem:[#allocation10 + $0x10c0] sm:$0xff] }
 0x11e   :  { %v1320_v56 = vld [vmem:[#allocation10 + $0x18c0] sm:$0xff] }
 0x11f   :  { %1658 = vmatprep.mubr.f32.mxu0 %v3402_v58  ;;  %1735 = vmatprep.mubr.f32.mxu1 %v3404_v59 }
 0x120   :  { %1659 = vmatmul.mubr.f32.vlgmr.msra.gmra.mxu0 %v3406_v60  ;;  %1736 = vmatmul.mubr.f32.vlgmr.msra.gmra.mxu1 %v3400_v57 }
 0x121   :  { %1749 = vmatpush1.msra.mxu0 %v1160_v61  ;;  %1826 = vmatpush1.msra.mxu1 %v1416_v62  ;;  %v1057_v61 = vld [vmem:[#allocation10 + $0x1088] sm:$0xff] }
 0x122   :  { %1750 = vmatprep.subr.mxu0 %v1153_v63  ;;  %1827 = vmatprep.subr.mxu1 %v1409_v0  ;;  %v1313_v62 = vld [vmem:[#allocation10 + $0x1888] sm:$0xff]  ;;  %v1056_v63 = vld [vmem:[#allocation10 + $0x1080] sm:$0xff] }
 0x123   :  { %1751 = vmatpush1.msra.mxu0 %v1152_v1  ;;  %1828 = vmatpush1.msra.mxu1 %v1408_v2  ;;  %v1312_v0 = vld [vmem:[#allocation10 + $0x1880] sm:$0xff]  ;;  %v1049_v1 = vld [vmem:[#allocation10 + $0x1048] sm:$0xff] }
 0x124   :  { %1752 = vmatprep.subr.mxu0 %v1145_v3  ;;  %1829 = vmatprep.subr.mxu1 %v1401_v4  ;;  %v1305_v2 = vld [vmem:[#allocation10 + $0x1848] sm:$0xff]  ;;  %v1048_v3 = vld [vmem:[#allocation10 + $0x1040] sm:$0xff] }
 0x125   :  { %1753 = vmatpush1.msra.mxu0 %v1144_v5  ;;  %1830 = vmatpush1.msra.mxu1 %v1400_v6  ;;  %v1304_v4 = vld [vmem:[#allocation10 + $0x1840] sm:$0xff]  ;;  %v1041_v5 = vld [vmem:[#allocation10 + $0x1008] sm:$0xff] }
 0x126   :  { %1754 = vmatprep.subr.mxu0 %v1137_v7  ;;  %1831 = vmatprep.subr.mxu1 %v1393_v8  ;;  %v1297_v6 = vld [vmem:[#allocation10 + $0x1808] sm:$0xff]  ;;  %v1040_v7 = vld [vmem:[#allocation10 + $0x1000] sm:$0xff] }
 0x127   :  { %1755 = vmatpush1.msra.mxu0 %v1136_v9  ;;  %1832 = vmatpush1.msra.mxu1 %v1392_v10  ;;  %v1296_v8 = vld [vmem:[#allocation10 + $0x1800] sm:$0xff]  ;;  %v1289_v9 = vld [vmem:[#allocation10 + $0x17c8] sm:$0xff] }
 0x128   :  { %1756 = vmatprep.subr.mxu0 %v1129_v11  ;;  %1833 = vmatprep.subr.mxu1 %v1385_v12  ;;  %v1545_v10 = vld [vmem:[#allocation10 + $0x1fc8] sm:$0xff]  ;;  %v1288_v11 = vld [vmem:[#allocation10 + $0x17c0] sm:$0xff] }
 0x129   :  { %1757 = vmatpush1.msra.mxu0 %v1128_v13  ;;  %1834 = vmatpush1.msra.mxu1 %v1384_v14  ;;  %v1544_v12 = vld [vmem:[#allocation10 + $0x1fc0] sm:$0xff]  ;;  %v1281_v13 = vld [vmem:[#allocation10 + $0x1788] sm:$0xff] }
 0x12a   :  { %1758 = vmatprep.subr.mxu0 %v1121_v15  ;;  %1835 = vmatprep.subr.mxu1 %v1377_v16  ;;  %v1537_v14 = vld [vmem:[#allocation10 + $0x1f88] sm:$0xff]  ;;  %v1280_v15 = vld [vmem:[#allocation10 + $0x1780] sm:$0xff] }
 0x12b   :  { %1759 = vmatpush1.msra.mxu0 %v1120_v17  ;;  %1836 = vmatpush1.msra.mxu1 %v1376_v18  ;;  %v1536_v16 = vld [vmem:[#allocation10 + $0x1f80] sm:$0xff]  ;;  %v1273_v17 = vld [vmem:[#allocation10 + $0x1748] sm:$0xff] }
 0x12c   :  { %1760 = vmatprep.subr.mxu0 %v1113_v19  ;;  %1837 = vmatprep.subr.mxu1 %v1369_v20  ;;  %v1529_v18 = vld [vmem:[#allocation10 + $0x1f48] sm:$0xff]  ;;  %v1272_v19 = vld [vmem:[#allocation10 + $0x1740] sm:$0xff] }
 0x12d   :  { %1761 = vmatpush1.msra.mxu0 %v1112_v21  ;;  %1838 = vmatpush1.msra.mxu1 %v1368_v22  ;;  %v1528_v20 = vld [vmem:[#allocation10 + $0x1f40] sm:$0xff]  ;;  %v1265_v21 = vld [vmem:[#allocation10 + $0x1708] sm:$0xff] }
 0x12e   :  { %1762 = vmatprep.subr.mxu0 %v1105_v23  ;;  %1839 = vmatprep.subr.mxu1 %v1361_v24  ;;  %v1521_v22 = vld [vmem:[#allocation10 + $0x1f08] sm:$0xff]  ;;  %v1264_v23 = vld [vmem:[#allocation10 + $0x1700] sm:$0xff] }
 0x12f   :  { %1763 = vmatpush1.msra.mxu0 %v1104_v25  ;;  %1840 = vmatpush1.msra.mxu1 %v1360_v26  ;;  %v1520_v24 = vld [vmem:[#allocation10 + $0x1f00] sm:$0xff]  ;;  %v1257_v25 = vld [vmem:[#allocation10 + $0x16c8] sm:$0xff] }
 0x130   :  { %1764 = vmatprep.subr.mxu0 %v1097_v27  ;;  %1841 = vmatprep.subr.mxu1 %v1353_v28  ;;  %v1513_v26 = vld [vmem:[#allocation10 + $0x1ec8] sm:$0xff]  ;;  %v1256_v27 = vld [vmem:[#allocation10 + $0x16c0] sm:$0xff] }
 0x131   :  { %1765 = vmatpush1.msra.mxu0 %v1096_v29  ;;  %1842 = vmatpush1.msra.mxu1 %v1352_v30  ;;  %v1512_v28 = vld [vmem:[#allocation10 + $0x1ec0] sm:$0xff]  ;;  %v1249_v29 = vld [vmem:[#allocation10 + $0x1688] sm:$0xff] }
 0x132   :  { %1766 = vmatprep.subr.mxu0 %v1089_v31  ;;  %1843 = vmatprep.subr.mxu1 %v1345_v32  ;;  %v1505_v30 = vld [vmem:[#allocation10 + $0x1e88] sm:$0xff]  ;;  %v1248_v31 = vld [vmem:[#allocation10 + $0x1680] sm:$0xff] }
 0x133   :  { %1767 = vmatpush1.msra.mxu0 %v1088_v33  ;;  %1844 = vmatpush1.msra.mxu1 %v1344_v34  ;;  %v1504_v32 = vld [vmem:[#allocation10 + $0x1e80] sm:$0xff]  ;;  %v276_v33 = vpop.f32.mrf.mxu0  ;;  %v1241_v34 = vld [vmem:[#allocation10 + $0x1648] sm:$0xff] }
 0x134   :  { %1768 = vmatprep.subr.mxu0 %v1081_v35  ;;  %1845 = vmatprep.subr.mxu1 %v1337_v36  ;;  %v1497_v35 = vld [vmem:[#allocation10 + $0x1e48] sm:$0xff]  ;;  %v1240_v36 = vld [vmem:[#allocation10 + $0x1640] sm:$0xff] }
 0x135   :  { %1769 = vmatpush1.msra.mxu0 %v1080_v37  ;;  %1846 = vmatpush1.msra.mxu1 %v1336_v38  ;;  %v1496_v37 = vld [vmem:[#allocation10 + $0x1e40] sm:$0xff]  ;;  %v353_v38 = vpop.f32.mrf.mxu1 }
 0x136   :  { %1770 = vmatprep.subr.mxu0 %v1073_v49  ;;  %1847 = vmatprep.subr.mxu1 %v1329_v50  ;;  %v1233_v49 = vld [vmem:[#allocation10 + $0x1608] sm:$0xff] }
 0x137   :  { %1771 = vmatpush1.msra.mxu0 %v1072_v51  ;;  %1848 = vmatpush1.msra.mxu1 %v1328_v52  ;;  %v1489_v50 = vld [vmem:[#allocation10 + $0x1e08] sm:$0xff]  ;;  %v1232_v51 = vld [vmem:[#allocation10 + $0x1600] sm:$0xff] }
 0x138   :  { %1772 = vmatprep.subr.mxu0 %v1065_v53  ;;  %1849 = vmatprep.subr.mxu1 %v1321_v54  ;;  %v1488_v52 = vld [vmem:[#allocation10 + $0x1e00] sm:$0xff]  ;;  %v278_v53 = vpop.f32.mrf.mxu0  ;;  %v1225_v54 = vld [vmem:[#allocation10 + $0x15c8] sm:$0xff] }
 0x139   :  { %1773 = vmatpush1.msra.mxu0 %v1064_v55  ;;  %1850 = vmatpush1.msra.mxu1 %v1320_v56  ;;  %v1481_v55 = vld [vmem:[#allocation10 + $0x1dc8] sm:$0xff]  ;;  %v1224_v56 = vld [vmem:[#allocation10 + $0x15c0] sm:$0xff] }
 0x13a   :  { %1774 = vmatprep.subr.mxu0 %v1057_v61  ;;  %1851 = vmatprep.subr.mxu1 %v1313_v62  ;;  %v1480_v61 = vld [vmem:[#allocation10 + $0x1dc0] sm:$0xff]  ;;  %v355_v62 = vpop.f32.mrf.mxu1 }
 0x13b   :  { %1775 = vmatpush1.msra.mxu0 %v1056_v63  ;;  %1852 = vmatpush1.msra.mxu1 %v1312_v0  ;;  %v279_v63 = vadd.f32 %v278_v53, %v3390_v47  ;;  %v1217_v0 = vld [vmem:[#allocation10 + $0x1588] sm:$0xff]  ;;  %v356_v47 = vadd.f32 %v355_v62, %v3394_v48  ;;  %v1200_v48 = vld [vmem:[#allocation10 + $0x1500] sm:$0xff] }
 0x13c   :  { %1776 = vmatprep.subr.mxu0 %v1049_v1  ;;  %1853 = vmatprep.subr.mxu1 %v1305_v2  ;;  %v1473_v1 = vld [vmem:[#allocation10 + $0x1d88] sm:$0xff]  ;;  %v277_v2 = vadd.f32 %v276_v33, %v3386_v46  ;;  %v1464_v46 = vld [vmem:[#allocation10 + $0x1d40] sm:$0xff] }
 0x13d   :  { %1777 = vmatpush1.msra.mxu0 %v1048_v3  ;;  %1854 = vmatpush1.msra.mxu1 %v1304_v4  ;;  %v1216_v3 = vld [vmem:[#allocation10 + $0x1580] sm:$0xff]  ;;  %v1425_v62 = vld [vmem:[#allocation10 + $0x1c08] sm:$0xff] }
 0x13e   :  { %1778 = vmatprep.subr.mxu0 %v1041_v5  ;;  %1855 = vmatprep.subr.mxu1 %v1297_v6  ;;  %v1472_v4 = vld [vmem:[#allocation10 + $0x1d80] sm:$0xff]  ;;  %v3414_v5 = vpop.f32.mrf.mxu0  ;;  %v501_v6 = vpop.f32.mrf.mxu1 }
 0x13f   :  { %1779 = vmatpush1.msra.mxu0 %v1040_v7  ;;  %1856 = vmatpush1.msra.mxu1 %v1296_v8  ;;  %v3417_v7 = vsub.s32 5, %v3364_v39  ;;  %v1209_v8 = vld [vmem:[#allocation10 + $0x1548] sm:$0xff] }
 0x140   :  { %1780 = vmatprep.subr.mxu0 %v1289_v9  ;;  %1857 = vmatprep.subr.mxu1 %v1545_v10  ;;  %v1465_v9 = vld [vmem:[#allocation10 + $0x1d48] sm:$0xff]  ;;  %v1208_v10 = vld [vmem:[#allocation10 + $0x1540] sm:$0xff] }
 0x141   :  { %1781 = vmatpush2.msra.mxu0 %v1288_v11  ;;  %1858 = vmatpush2.msra.mxu1 %v1544_v12  ;;  %v3421_v11 = vsub.s32 7, %v3364_v39  ;;  %v3423_v12 = vmax.f32 %v279_v63, 0.0  ;;  %v1168_v63 = vld [vmem:[#allocation10 + $0x1400] sm:$0xff] }
 0x142   :  { %1782 = vmatprep.subr.mxu0 %v1281_v13  ;;  %1859 = vmatprep.subr.mxu1 %v1537_v14  ;;  %v1201_v13 = vld [vmem:[#allocation10 + $0x1508] sm:$0xff] }
 0x143   :  { %1783 = vmatpush2.msra.mxu0 %v1280_v15  ;;  %1860 = vmatpush2.msra.mxu1 %v1536_v16  ;;  %3617 = vst [vmem:[#allocation21_spill] sm:$0xff] %v3421_v11  ;;  %v1457_v14 = vld [vmem:[#allocation10 + $0x1d08] sm:$0xff]  ;;  %v3426_v15 = vsub.s32 6, %v3364_v39  ;;  %v3428_v16 = vmax.f32 %v277_v2, 0.0 }
 0x144   :  { %1784 = vmatprep.subr.mxu0 %v1273_v17  ;;  %1861 = vmatprep.subr.mxu1 %v1529_v18  ;;  %v354_v17 = vadd.f32 %v353_v38, %v3382_v45  ;;  %v180_v18 = vrot.slane %v3372_v42, %v3417_v7  ;;  %v1449_v45 = vld [vmem:[#allocation10 + $0x1cc8] sm:$0xff] }
 0x145   :  { %1785 = vmatpush2.msra.mxu0 %v1272_v19  ;;  %1862 = vmatpush2.msra.mxu1 %v1528_v20  ;;  %3618 = vst [vmem:[#allocation22_spill] sm:$0xff] %v3426_v15  ;;  %v426_v19 = vpop.f32.mrf.mxu0  ;;  %v503_v20 = vpop.f32.mrf.mxu1 }
 0x146   :  { %1786 = vmatprep.subr.mxu0 %v1265_v21  ;;  %1863 = vmatprep.subr.mxu1 %v1521_v22  ;;  %v3434_v21 = vsub.s32 4, %v3364_v39  ;;  %v1456_v22 = vld [vmem:[#allocation10 + $0x1d00] sm:$0xff]  ;;  %v427_v39 = vadd.f32 %v426_v19, %v180_v18  ;;  %v642_v19 = vld [vmem:[#allocation10 + $0x390] sm:$0xff] }
 0x147   :  { %1787 = vmatpush2.msra.mxu0 %v1264_v23  ;;  %1864 = vmatpush2.msra.mxu1 %v1520_v24  ;;  %v3436_v23 = vmax.f32 %v356_v47, 0.0  ;;  %v1193_v24 = vld [vmem:[#allocation10 + $0x14c8] sm:$0xff]  ;;  %v650_v47 = vld [vmem:[#allocation10 + $0x3d0] sm:$0xff] }
 0x148   :  { %1788 = vmatprep.subr.mxu0 %v1257_v25  ;;  %1865 = vmatprep.subr.mxu1 %v1513_v26  ;;  %v188_v25 = vrot.slane %v3372_v42, %v3421_v11  ;;  %v184_v26 = vrot.slane %v3372_v42, %v3426_v15  ;;  %v176_v33 = vrot.slane %v3372_v42, %v3434_v21  ;;  %v1176_v42 = vld [vmem:[#allocation10 + $0x1440] sm:$0xff] }
 0x149   :  { %1789 = vmatpush2.msra.mxu0 %v1256_v27  ;;  %1866 = vmatpush2.msra.mxu1 %v1512_v28  ;;  %v1192_v27 = vld [vmem:[#allocation10 + $0x14c0] sm:$0xff]  ;;  %v3443_v28 = vmax.f32 %v354_v17, 0.0  ;;  %v899_v17 = vld [vmem:[#allocation10 + $0xb98] sm:$0xff] }
 0x14a   :  { %1790 = vmatprep.subr.mxu0 %v1249_v29  ;;  %1867 = vmatprep.subr.mxu1 %v1505_v30  ;;  %v1448_v29 = vld [vmem:[#allocation10 + $0x1cc0] sm:$0xff]  ;;  %v1185_v30 = vld [vmem:[#allocation10 + $0x1488] sm:$0xff]  ;;  %v502_v38 = vadd.f32 %v501_v6, %v184_v26 }
 0x14b   :  { %1791 = vmatpush2.msra.mxu0 %v1248_v31  ;;  %1868 = vmatpush2.msra.mxu1 %v1504_v32  ;;  %v430_v31 = vpop.f32.mrf.mxu0  ;;  %v507_v32 = vpop.f32.mrf.mxu1 }
 0x14c   :  { %1792 = vmatprep.subr.mxu0 %v1241_v34  ;;  %1869 = vmatprep.subr.mxu1 %v1497_v35  ;;  %v1441_v34 = vld [vmem:[#allocation10 + $0x1c88] sm:$0xff]  ;;  %v504_v35 = vadd.f32 %v503_v20, %v188_v25  ;;  %v508_v6 = vadd.f32 %v507_v32, %v184_v26  ;;  %v898_v20 = vld [vmem:[#allocation10 + $0xb90] sm:$0xff]  ;;  %v627_v26 = vld [vmem:[#allocation10 + $0x318] sm:$0xff] }
 0x14d   :  { %1793 = vmatpush2.msra.mxu0 %v1240_v36  ;;  %1870 = vmatpush2.msra.mxu1 %v1496_v37  ;;  %v1184_v36 = vld [vmem:[#allocation10 + $0x1480] sm:$0xff]  ;;  %v432_v53 = vpop.f32.mrf.mxu0  ;;  %v618_v32 = vld [vmem:[#allocation10 + $0x2d0] sm:$0xff] }
 0x14e   :  { %1794 = vmatprep.subr.mxu0 %v1233_v49  ;;  %1871 = vmatprep.subr.mxu1 %v1489_v50  ;;  %v1440_v37 = vld [vmem:[#allocation10 + $0x1c80] sm:$0xff]  ;;  %v1177_v49 = vld [vmem:[#allocation10 + $0x1448] sm:$0xff] }
 0x14f   :  { %1795 = vmatpush2.msra.mxu0 %v1232_v51  ;;  %1872 = vmatpush2.msra.mxu1 %v1488_v52  ;;  %v1433_v50 = vld [vmem:[#allocation10 + $0x1c48] sm:$0xff]  ;;  %v3449_v51 = vmax.f32 %v427_v39, 0.0  ;;  %v1432_v52 = vld [vmem:[#allocation10 + $0x1c40] sm:$0xff]  ;;  %v626_v39 = vld [vmem:[#allocation10 + $0x310] sm:$0xff] }
 0x150   :  { %1796 = vmatprep.subr.mxu0 %v1225_v54  ;;  %1873 = vmatprep.subr.mxu1 %v1481_v55  ;;  %v509_v54 = vpop.f32.mrf.mxu1  ;;  %v425_v55 = vadd.f32 %v3414_v5, %v176_v33  ;;  %v431_v5 = vadd.f32 %v430_v31, %v176_v33  ;;  %v875_v31 = vld [vmem:[#allocation10 + $0xad8] sm:$0xff]  ;;  %v874_v33 = vld [vmem:[#allocation10 + $0xad0] sm:$0xff] }
 0x151   :  { %1797 = vmatpush2.msra.mxu0 %v1224_v56  ;;  %1874 = vmatpush2.msra.mxu1 %v1480_v61  ;;  %v1169_v56 = vld [vmem:[#allocation10 + $0x1408] sm:$0xff]  ;;  %v3453_v61 = vmax.f32 %v504_v35, 0.0  ;;  %v510_v2 = vadd.f32 %v509_v54, %v188_v25  ;;  %v890_v25 = vld [vmem:[#allocation10 + $0xb50] sm:$0xff]  ;;  %v867_v35 = vld [vmem:[#allocation10 + $0xa98] sm:$0xff] }
 0x152   :  { %1798 = vmatprep.subr.mxu0 %v1217_v0  ;;  %1875 = vmatprep.subr.mxu1 %v1473_v1  ;;  %v3455_v0 = vmax.f32 %v502_v38, 0.0  ;;  %v433_v1 = vadd.f32 %v432_v53, %v180_v18  ;;  %v3469_v18 = vmax.f32 %v508_v6, 0.0  ;;  %v603_v38 = vld [vmem:[#allocation10 + $0x258] sm:$0xff]  ;;  %v594_v54 = vld [vmem:[#allocation10 + $0x210] sm:$0xff] }
 0x153   :  { %1799 = vmatpush2.msra.mxu0 %v1216_v3  ;;  %1876 = vmatpush2.msra.mxu1 %v1472_v4  ;;  %v1424_v3 = vld [vmem:[#allocation10 + $0x1c00] sm:$0xff]  ;;  %v3458_v4 = vmax.f32 %v425_v55, 0.0  ;;  %v851_v53 = vld [vmem:[#allocation10 + $0xa18] sm:$0xff]  ;;  %v850_v55 = vld [vmem:[#allocation10 + $0xa10] sm:$0xff] }
 0x154   :  { %1800 = vmatprep.subr.mxu0 %v1209_v8  ;;  %1877 = vmatprep.subr.mxu1 %v1465_v9  ;;  %v651_v8 = vld [vmem:[#allocation10 + $0x3d8] sm:$0xff]  ;;  %v834_v6 = vld [vmem:[#allocation10 + $0x990] sm:$0xff] }
 0x155   :  { %1801 = vmatpush2.msra.mxu0 %v1208_v10  ;;  %1878 = vmatpush2.msra.mxu1 %v1464_v46  ;;  %v907_v9 = vld [vmem:[#allocation10 + $0xbd8] sm:$0xff]  ;;  %v906_v10 = vld [vmem:[#allocation10 + $0xbd0] sm:$0xff]  ;;  %v3461_v46 = vmax.f32 %v433_v1, 0.0 }
 0x156   :  { %1802 = vmatprep.subr.mxu0 %v1201_v13  ;;  %1879 = vmatprep.subr.mxu1 %v1457_v14  ;;  %v3463_v13 = vmax.f32 %v510_v2, 0.0  ;;  %v643_v14 = vld [vmem:[#allocation10 + $0x398] sm:$0xff]  ;;  %v842_v1 = vld [vmem:[#allocation10 + $0x9d0] sm:$0xff] }
 0x157   :  { %1664 = vmatprep.mubr.f32.mxu0 %v3423_v12  ;;  %1803 = vmatpush2.msra.mxu0 %v1200_v48  ;;  %v3467_v48 = vmax.f32 %v431_v5, 0.0  ;;  %v579_v2 = vld [vmem:[#allocation10 + $0x198] sm:$0xff]  ;;  %v578_v5 = vld [vmem:[#allocation10 + $0x190] sm:$0xff] }
 0x158   :  { %1880 = vmatpush2.msra.mxu1 %v1456_v22  ;;  %1665 = vmatmul.mubr.f32.gmra.mxu0 %v3428_v16  ;;  %v635_v22 = vld [vmem:[#allocation10 + $0x358] sm:$0xff] }
 0x159   :  { %1804 = vmatprep.subr.mxu0 %v1193_v24  ;;  %1881 = vmatprep.subr.mxu1 %v1449_v45  ;;  %v891_v24 = vld [vmem:[#allocation10 + $0xb58] sm:$0xff]  ;;  %v634_v45 = vld [vmem:[#allocation10 + $0x350] sm:$0xff] }
 0x15a   :  { %1741 = vmatprep.mubr.f32.mxu1 %v3436_v23  ;;  %1805 = vmatpush2.msra.mxu0 %v1192_v27  ;;  %v883_v27 = vld [vmem:[#allocation10 + $0xb18] sm:$0xff] }
 0x15b   :  { %1882 = vmatpush2.msra.mxu1 %v1448_v29  ;;  %1806 = vmatprep.subr.mxu0 %v1185_v30  ;;  %v882_v29 = vld [vmem:[#allocation10 + $0xb10] sm:$0xff]  ;;  %v619_v30 = vld [vmem:[#allocation10 + $0x2d8] sm:$0xff] }
 0x15c   :  { %1742 = vmatmul.mubr.f32.gmra.mxu1 %v3443_v28  ;;  %1883 = vmatprep.subr.mxu1 %v1441_v34  ;;  %v611_v34 = vld [vmem:[#allocation10 + $0x298] sm:$0xff] }
 0x15d   :  { %1807 = vmatpush2.msra.mxu0 %v1184_v36  ;;  %1884 = vmatpush2.msra.mxu1 %v1440_v37  ;;  %v610_v36 = vld [vmem:[#allocation10 + $0x290] sm:$0xff] }
 0x15e   :  { %1808 = vmatprep.subr.mxu0 %v1177_v49  ;;  %1885 = vmatprep.subr.mxu1 %v1433_v50  ;;  %v866_v37 = vld [vmem:[#allocation10 + $0xa90] sm:$0xff]  ;;  %v859_v49 = vld [vmem:[#allocation10 + $0xa58] sm:$0xff] }
 0x15f   :  { %1809 = vmatpush2.msra.mxu0 %v1176_v42  ;;  %1886 = vmatpush2.msra.mxu1 %v1432_v52  ;;  %v602_v50 = vld [vmem:[#allocation10 + $0x250] sm:$0xff]  ;;  %v595_v52 = vld [vmem:[#allocation10 + $0x218] sm:$0xff] }
 0x160   :  { %1810 = vmatprep.subr.mxu0 %v1169_v56  ;;  %1812 = vmatprep.mubr.f32.mxu0 %v3449_v51  ;;  %v858_v42 = vld [vmem:[#allocation10 + $0xa50] sm:$0xff]  ;;  %v587_v56 = vld [vmem:[#allocation10 + $0x1d8] sm:$0xff] }
 0x161   :  { %1887 = vmatprep.subr.mxu1 %v1425_v62  ;;  %1811 = vmatpush2.msra.mxu0 %v1168_v63  ;;  %v843_v62 = vld [vmem:[#allocation10 + $0x9d8] sm:$0xff]  ;;  %v586_v63 = vld [vmem:[#allocation10 + $0x1d0] sm:$0xff] }
 0x162   :  { %1888 = vmatpush2.msra.mxu1 %v1424_v3  ;;  %1889 = vmatprep.mubr.f32.mxu1 %v3453_v61  ;;  %v835_v3 = vld [vmem:[#allocation10 + $0x998] sm:$0xff] }
 0x163   :  { %1813 = vmatmul.mubr.f32.vlgmr.msra.gmra.mxu0 %v3458_v4  ;;  %1890 = vmatmul.mubr.f32.vlgmr.msra.gmra.mxu1 %v3455_v0 }
 0x164   :  { %1902 = vmatprep.subr.mxu0 %v651_v8  ;;  %1979 = vmatprep.subr.mxu1 %v907_v9  ;;  %v571_v8 = vld [vmem:[#allocation10 + $0x158] sm:$0xff] }
 0x165   :  { %1903 = vmatpush1.msra.mxu0 %v650_v47  ;;  %1980 = vmatpush1.msra.mxu1 %v906_v10  ;;  %v827_v9 = vld [vmem:[#allocation10 + $0x958] sm:$0xff]  ;;  %v570_v47 = vld [vmem:[#allocation10 + $0x150] sm:$0xff] }
 0x166   :  { %1904 = vmatprep.subr.mxu0 %v643_v14  ;;  %1981 = vmatprep.subr.mxu1 %v899_v17  ;;  %v826_v10 = vld [vmem:[#allocation10 + $0x950] sm:$0xff]  ;;  %v563_v14 = vld [vmem:[#allocation10 + $0x118] sm:$0xff] }
 0x167   :  { %1818 = vmatprep.mubr.f32.mxu0 %v3461_v46  ;;  %1895 = vmatprep.mubr.f32.mxu1 %v3463_v13  ;;  %v819_v17 = vld [vmem:[#allocation10 + $0x918] sm:$0xff] }
 0x168   :  { %1905 = vmatpush1.msra.mxu0 %v642_v19  ;;  %1982 = vmatpush1.msra.mxu1 %v898_v20  ;;  %v562_v19 = vld [vmem:[#allocation10 + $0x110] sm:$0xff] }
 0x169   :  { %1819 = vmatmul.mubr.f32.gmra.mxu0 %v3467_v48  ;;  %1896 = vmatmul.mubr.f32.gmra.mxu1 %v3469_v18  ;;  %v818_v20 = vld [vmem:[#allocation10 + $0x910] sm:$0xff] }
 0x16a   :  { %1906 = vmatprep.subr.mxu0 %v635_v22  ;;  %1983 = vmatprep.subr.mxu1 %v891_v24  ;;  %v555_v22 = vld [vmem:[#allocation10 + $0xd8] sm:$0xff] }
 0x16b   :  { %1907 = vmatpush1.msra.mxu0 %v634_v45  ;;  %1966 = vmatprep.mubr.f32.mxu0 %v3402_v58  ;;  %v811_v24 = vld [vmem:[#allocation10 + $0x8d8] sm:$0xff]  ;;  %v554_v45 = vld [vmem:[#allocation10 + $0xd0] sm:$0xff] }
 0x16c   :  { %1984 = vmatpush1.msra.mxu1 %v890_v25  ;;  %2043 = vmatprep.mubr.f32.mxu1 %v3404_v59  ;;  %v810_v25 = vld [vmem:[#allocation10 + $0x8d0] sm:$0xff] }
 0x16d   :  { %1908 = vmatprep.subr.mxu0 %v627_v26  ;;  %1985 = vmatprep.subr.mxu1 %v883_v27  ;;  %v547_v26 = vld [vmem:[#allocation10 + $0x98] sm:$0xff] }
 0x16e   :  { %1909 = vmatpush1.msra.mxu0 %v626_v39  ;;  %1986 = vmatpush1.msra.mxu1 %v882_v29  ;;  %v803_v27 = vld [vmem:[#allocation10 + $0x898] sm:$0xff]  ;;  %v546_v39 = vld [vmem:[#allocation10 + $0x90] sm:$0xff] }
 0x16f   :  { %1910 = vmatprep.subr.mxu0 %v619_v30  ;;  %1987 = vmatprep.subr.mxu1 %v875_v31  ;;  %v802_v29 = vld [vmem:[#allocation10 + $0x890] sm:$0xff]  ;;  %v539_v30 = vld [vmem:[#allocation10 + $0x58] sm:$0xff] }
 0x170   :  { %1911 = vmatpush1.msra.mxu0 %v618_v32  ;;  %1988 = vmatpush1.msra.mxu1 %v874_v33  ;;  %v795_v31 = vld [vmem:[#allocation10 + $0x858] sm:$0xff]  ;;  %v538_v32 = vld [vmem:[#allocation10 + $0x50] sm:$0xff] }
 0x171   :  { %1912 = vmatprep.subr.mxu0 %v611_v34  ;;  %1989 = vmatprep.subr.mxu1 %v867_v35  ;;  %v794_v33 = vld [vmem:[#allocation10 + $0x850] sm:$0xff]  ;;  %v531_v34 = vld [vmem:[#allocation10 + $0x18] sm:$0xff] }
 0x172   :  { %1913 = vmatpush1.msra.mxu0 %v610_v36  ;;  %1990 = vmatpush1.msra.mxu1 %v866_v37  ;;  %v787_v35 = vld [vmem:[#allocation10 + $0x818] sm:$0xff]  ;;  %v530_v36 = vld [vmem:[#allocation10 + $0x10] sm:$0xff] }
 0x173   :  { %1914 = vmatprep.subr.mxu0 %v603_v38  ;;  %1991 = vmatprep.subr.mxu1 %v859_v49  ;;  %v786_v37 = vld [vmem:[#allocation10 + $0x810] sm:$0xff]  ;;  %v779_v38 = vld [vmem:[#allocation10 + $0x7d8] sm:$0xff] }
 0x174   :  { %1915 = vmatpush1.msra.mxu0 %v602_v50  ;;  %1992 = vmatpush1.msra.mxu1 %v858_v42  ;;  %v1035_v49 = vld [vmem:[#allocation10 + $0xfd8] sm:$0xff]  ;;  %v778_v50 = vld [vmem:[#allocation10 + $0x7d0] sm:$0xff] }
 0x175   :  { %1916 = vmatprep.subr.mxu0 %v595_v52  ;;  %1993 = vmatprep.subr.mxu1 %v851_v53  ;;  %v1034_v42 = vld [vmem:[#allocation10 + $0xfd0] sm:$0xff]  ;;  %v771_v52 = vld [vmem:[#allocation10 + $0x798] sm:$0xff] }
 0x176   :  { %1917 = vmatpush1.msra.mxu0 %v594_v54  ;;  %1994 = vmatpush1.msra.mxu1 %v850_v55  ;;  %v1027_v53 = vld [vmem:[#allocation10 + $0xf98] sm:$0xff]  ;;  %v770_v54 = vld [vmem:[#allocation10 + $0x790] sm:$0xff] }
 0x177   :  { %1918 = vmatprep.subr.mxu0 %v587_v56  ;;  %1995 = vmatprep.subr.mxu1 %v843_v62  ;;  %v1026_v55 = vld [vmem:[#allocation10 + $0xf90] sm:$0xff]  ;;  %v763_v56 = vld [vmem:[#allocation10 + $0x758] sm:$0xff] }
 0x178   :  { %1919 = vmatpush1.msra.mxu0 %v586_v63  ;;  %1996 = vmatpush1.msra.mxu1 %v842_v1  ;;  %v1019_v62 = vld [vmem:[#allocation10 + $0xf58] sm:$0xff]  ;;  %v762_v63 = vld [vmem:[#allocation10 + $0x750] sm:$0xff] }
 0x179   :  { %1920 = vmatprep.subr.mxu0 %v579_v2  ;;  %1997 = vmatprep.subr.mxu1 %v835_v3  ;;  %v1018_v1 = vld [vmem:[#allocation10 + $0xf50] sm:$0xff]  ;;  %v755_v2 = vld [vmem:[#allocation10 + $0x718] sm:$0xff] }
 0x17a   :  { %1921 = vmatpush1.msra.mxu0 %v578_v5  ;;  %1998 = vmatpush1.msra.mxu1 %v834_v6  ;;  %v1011_v3 = vld [vmem:[#allocation10 + $0xf18] sm:$0xff]  ;;  %v754_v5 = vld [vmem:[#allocation10 + $0x710] sm:$0xff] }
 0x17b   :  { %1922 = vmatprep.subr.mxu0 %v571_v8  ;;  %1999 = vmatprep.subr.mxu1 %v827_v9  ;;  %v1010_v6 = vld [vmem:[#allocation10 + $0xf10] sm:$0xff]  ;;  %v747_v8 = vld [vmem:[#allocation10 + $0x6d8] sm:$0xff] }
 0x17c   :  { %1923 = vmatpush1.msra.mxu0 %v570_v47  ;;  %2000 = vmatpush1.msra.mxu1 %v826_v10  ;;  %v1003_v9 = vld [vmem:[#allocation10 + $0xed8] sm:$0xff]  ;;  %v746_v47 = vld [vmem:[#allocation10 + $0x6d0] sm:$0xff] }
 0x17d   :  { %1924 = vmatprep.subr.mxu0 %v563_v14  ;;  %2001 = vmatprep.subr.mxu1 %v819_v17  ;;  %v1002_v10 = vld [vmem:[#allocation10 + $0xed0] sm:$0xff]  ;;  %v739_v14 = vld [vmem:[#allocation10 + $0x698] sm:$0xff] }
 0x17e   :  { %1925 = vmatpush1.msra.mxu0 %v562_v19  ;;  %2002 = vmatpush1.msra.mxu1 %v818_v20  ;;  %v995_v17 = vld [vmem:[#allocation10 + $0xe98] sm:$0xff]  ;;  %v738_v19 = vld [vmem:[#allocation10 + $0x690] sm:$0xff] }
 0x17f   :  { %1926 = vmatprep.subr.mxu0 %v555_v22  ;;  %2003 = vmatprep.subr.mxu1 %v811_v24  ;;  %v994_v20 = vld [vmem:[#allocation10 + $0xe90] sm:$0xff]  ;;  %v731_v22 = vld [vmem:[#allocation10 + $0x658] sm:$0xff] }
 0x180   :  { %1927 = vmatpush1.msra.mxu0 %v554_v45  ;;  %2004 = vmatpush1.msra.mxu1 %v810_v25  ;;  %v987_v24 = vld [vmem:[#allocation10 + $0xe58] sm:$0xff]  ;;  %v730_v45 = vld [vmem:[#allocation10 + $0x650] sm:$0xff] }
 0x181   :  { %1928 = vmatprep.subr.mxu0 %v547_v26  ;;  %2005 = vmatprep.subr.mxu1 %v803_v27  ;;  %v986_v25 = vld [vmem:[#allocation10 + $0xe50] sm:$0xff]  ;;  %v723_v26 = vld [vmem:[#allocation10 + $0x618] sm:$0xff] }
 0x182   :  { %1929 = vmatpush1.msra.mxu0 %v546_v39  ;;  %2006 = vmatpush1.msra.mxu1 %v802_v29  ;;  %v979_v27 = vld [vmem:[#allocation10 + $0xe18] sm:$0xff]  ;;  %v722_v39 = vld [vmem:[#allocation10 + $0x610] sm:$0xff] }
 0x183   :  { %1930 = vmatprep.subr.mxu0 %v539_v30  ;;  %2007 = vmatprep.subr.mxu1 %v795_v31  ;;  %v978_v29 = vld [vmem:[#allocation10 + $0xe10] sm:$0xff]  ;;  %v715_v30 = vld [vmem:[#allocation10 + $0x5d8] sm:$0xff] }
 0x184   :  { %1931 = vmatpush1.msra.mxu0 %v538_v32  ;;  %2008 = vmatpush1.msra.mxu1 %v794_v33  ;;  %v971_v31 = vld [vmem:[#allocation10 + $0xdd8] sm:$0xff]  ;;  %v714_v32 = vld [vmem:[#allocation10 + $0x5d0] sm:$0xff] }
 0x185   :  { %1932 = vmatprep.subr.mxu0 %v531_v34  ;;  %2009 = vmatprep.subr.mxu1 %v787_v35  ;;  %v970_v33 = vld [vmem:[#allocation10 + $0xdd0] sm:$0xff]  ;;  %v707_v34 = vld [vmem:[#allocation10 + $0x598] sm:$0xff] }
 0x186   :  { %1933 = vmatpush1.msra.mxu0 %v530_v36  ;;  %2010 = vmatpush1.msra.mxu1 %v786_v37  ;;  %v963_v35 = vld [vmem:[#allocation10 + $0xd98] sm:$0xff]  ;;  %v706_v36 = vld [vmem:[#allocation10 + $0x590] sm:$0xff] }
 0x187   :  { %1934 = vmatprep.subr.mxu0 %v779_v38  ;;  %2011 = vmatprep.subr.mxu1 %v1035_v49  ;;  %v962_v37 = vld [vmem:[#allocation10 + $0xd90] sm:$0xff]  ;;  %v699_v38 = vld [vmem:[#allocation10 + $0x558] sm:$0xff] }
 0x188   :  { %1935 = vmatpush2.msra.mxu0 %v778_v50  ;;  %2012 = vmatpush2.msra.mxu1 %v1034_v42  ;;  %v955_v49 = vld [vmem:[#allocation10 + $0xd58] sm:$0xff]  ;;  %v698_v50 = vld [vmem:[#allocation10 + $0x550] sm:$0xff] }
 0x189   :  { %1936 = vmatprep.subr.mxu0 %v771_v52  ;;  %2013 = vmatprep.subr.mxu1 %v1027_v53  ;;  %v954_v42 = vld [vmem:[#allocation10 + $0xd50] sm:$0xff]  ;;  %v691_v52 = vld [vmem:[#allocation10 + $0x518] sm:$0xff] }
 0x18a   :  { %1937 = vmatpush2.msra.mxu0 %v770_v54  ;;  %2014 = vmatpush2.msra.mxu1 %v1026_v55  ;;  %v947_v53 = vld [vmem:[#allocation10 + $0xd18] sm:$0xff]  ;;  %v690_v54 = vld [vmem:[#allocation10 + $0x510] sm:$0xff] }
 0x18b   :  { %1938 = vmatprep.subr.mxu0 %v763_v56  ;;  %2015 = vmatprep.subr.mxu1 %v1019_v62  ;;  %v946_v55 = vld [vmem:[#allocation10 + $0xd10] sm:$0xff]  ;;  %v683_v56 = vld [vmem:[#allocation10 + $0x4d8] sm:$0xff] }
 0x18c   :  { %1939 = vmatpush2.msra.mxu0 %v762_v63  ;;  %2016 = vmatpush2.msra.mxu1 %v1018_v1  ;;  %v939_v62 = vld [vmem:[#allocation10 + $0xcd8] sm:$0xff]  ;;  %v682_v63 = vld [vmem:[#allocation10 + $0x4d0] sm:$0xff] }
 0x18d   :  { %1940 = vmatprep.subr.mxu0 %v755_v2  ;;  %2017 = vmatprep.subr.mxu1 %v1011_v3  ;;  %v938_v1 = vld [vmem:[#allocation10 + $0xcd0] sm:$0xff]  ;;  %v675_v2 = vld [vmem:[#allocation10 + $0x498] sm:$0xff] }
 0x18e   :  { %1941 = vmatpush2.msra.mxu0 %v754_v5  ;;  %2018 = vmatpush2.msra.mxu1 %v1010_v6  ;;  %v931_v3 = vld [vmem:[#allocation10 + $0xc98] sm:$0xff]  ;;  %v674_v5 = vld [vmem:[#allocation10 + $0x490] sm:$0xff] }
 0x18f   :  { %1942 = vmatprep.subr.mxu0 %v747_v8  ;;  %2019 = vmatprep.subr.mxu1 %v1003_v9  ;;  %v930_v6 = vld [vmem:[#allocation10 + $0xc90] sm:$0xff]  ;;  %v667_v8 = vld [vmem:[#allocation10 + $0x458] sm:$0xff] }
 0x190   :  { %1943 = vmatpush2.msra.mxu0 %v746_v47  ;;  %2020 = vmatpush2.msra.mxu1 %v1002_v10  ;;  %v923_v9 = vld [vmem:[#allocation10 + $0xc58] sm:$0xff]  ;;  %v666_v47 = vld [vmem:[#allocation10 + $0x450] sm:$0xff] }
 0x191   :  { %1944 = vmatprep.subr.mxu0 %v739_v14  ;;  %2021 = vmatprep.subr.mxu1 %v995_v17  ;;  %v922_v10 = vld [vmem:[#allocation10 + $0xc50] sm:$0xff]  ;;  %v659_v14 = vld [vmem:[#allocation10 + $0x418] sm:$0xff] }
 0x192   :  { %1945 = vmatpush2.msra.mxu0 %v738_v19  ;;  %2022 = vmatpush2.msra.mxu1 %v994_v20  ;;  %v915_v17 = vld [vmem:[#allocation10 + $0xc18] sm:$0xff]  ;;  %v658_v19 = vld [vmem:[#allocation10 + $0x410] sm:$0xff] }
 0x193   :  { %1946 = vmatprep.subr.mxu0 %v731_v22  ;;  %2023 = vmatprep.subr.mxu1 %v987_v24  ;;  %v914_v20 = vld [vmem:[#allocation10 + $0xc10] sm:$0xff]  ;;  %v1163_v22 = vld [vmem:[#allocation10 + $0x13d8] sm:$0xff] }
 0x194   :  { %1947 = vmatpush2.msra.mxu0 %v730_v45  ;;  %2024 = vmatpush2.msra.mxu1 %v986_v25  ;;  %v1419_v24 = vld [vmem:[#allocation10 + $0x1bd8] sm:$0xff]  ;;  %v1162_v45 = vld [vmem:[#allocation10 + $0x13d0] sm:$0xff] }
 0x195   :  { %1948 = vmatprep.subr.mxu0 %v723_v26  ;;  %2025 = vmatprep.subr.mxu1 %v979_v27  ;;  %v1418_v25 = vld [vmem:[#allocation10 + $0x1bd0] sm:$0xff]  ;;  %v1155_v26 = vld [vmem:[#allocation10 + $0x1398] sm:$0xff] }
 0x196   :  { %1949 = vmatpush2.msra.mxu0 %v722_v39  ;;  %2026 = vmatpush2.msra.mxu1 %v978_v29  ;;  %v1411_v27 = vld [vmem:[#allocation10 + $0x1b98] sm:$0xff]  ;;  %v1154_v39 = vld [vmem:[#allocation10 + $0x1390] sm:$0xff] }
 0x197   :  { %1950 = vmatprep.subr.mxu0 %v715_v30  ;;  %2027 = vmatprep.subr.mxu1 %v971_v31  ;;  %v1410_v29 = vld [vmem:[#allocation10 + $0x1b90] sm:$0xff]  ;;  %v1147_v30 = vld [vmem:[#allocation10 + $0x1358] sm:$0xff] }
 0x198   :  { %1951 = vmatpush2.msra.mxu0 %v714_v32  ;;  %2028 = vmatpush2.msra.mxu1 %v970_v33  ;;  %v1403_v31 = vld [vmem:[#allocation10 + $0x1b58] sm:$0xff]  ;;  %v1146_v32 = vld [vmem:[#allocation10 + $0x1350] sm:$0xff] }
 0x199   :  { %1952 = vmatprep.subr.mxu0 %v707_v34  ;;  %2029 = vmatprep.subr.mxu1 %v963_v35  ;;  %v1402_v33 = vld [vmem:[#allocation10 + $0x1b50] sm:$0xff]  ;;  %v1139_v34 = vld [vmem:[#allocation10 + $0x1318] sm:$0xff] }
 0x19a   :  { %1953 = vmatpush2.msra.mxu0 %v706_v36  ;;  %2030 = vmatpush2.msra.mxu1 %v962_v37  ;;  %v1395_v35 = vld [vmem:[#allocation10 + $0x1b18] sm:$0xff]  ;;  %v1138_v36 = vld [vmem:[#allocation10 + $0x1310] sm:$0xff] }
 0x19b   :  { %1954 = vmatprep.subr.mxu0 %v699_v38  ;;  %2031 = vmatprep.subr.mxu1 %v955_v49  ;;  %v1394_v37 = vld [vmem:[#allocation10 + $0x1b10] sm:$0xff]  ;;  %v1131_v38 = vld [vmem:[#allocation10 + $0x12d8] sm:$0xff] }
 0x19c   :  { %1955 = vmatpush2.msra.mxu0 %v698_v50  ;;  %2032 = vmatpush2.msra.mxu1 %v954_v42  ;;  %v1387_v49 = vld [vmem:[#allocation10 + $0x1ad8] sm:$0xff]  ;;  %v1130_v50 = vld [vmem:[#allocation10 + $0x12d0] sm:$0xff] }
 0x19d   :  { %1956 = vmatprep.subr.mxu0 %v691_v52  ;;  %2033 = vmatprep.subr.mxu1 %v947_v53  ;;  %v1386_v42 = vld [vmem:[#allocation10 + $0x1ad0] sm:$0xff]  ;;  %v1123_v52 = vld [vmem:[#allocation10 + $0x1298] sm:$0xff] }
 0x19e   :  { %1957 = vmatpush2.msra.mxu0 %v690_v54  ;;  %2034 = vmatpush2.msra.mxu1 %v946_v55  ;;  %v1379_v53 = vld [vmem:[#allocation10 + $0x1a98] sm:$0xff]  ;;  %v1122_v54 = vld [vmem:[#allocation10 + $0x1290] sm:$0xff] }
 0x19f   :  { %1958 = vmatprep.subr.mxu0 %v683_v56  ;;  %2035 = vmatprep.subr.mxu1 %v939_v62  ;;  %v1378_v55 = vld [vmem:[#allocation10 + $0x1a90] sm:$0xff]  ;;  %v1115_v56 = vld [vmem:[#allocation10 + $0x1258] sm:$0xff] }
 0x1a0   :  { %1959 = vmatpush2.msra.mxu0 %v682_v63  ;;  %2036 = vmatpush2.msra.mxu1 %v938_v1  ;;  %v1371_v62 = vld [vmem:[#allocation10 + $0x1a58] sm:$0xff]  ;;  %v1114_v63 = vld [vmem:[#allocation10 + $0x1250] sm:$0xff] }
 0x1a1   :  { %1960 = vmatprep.subr.mxu0 %v675_v2  ;;  %2037 = vmatprep.subr.mxu1 %v931_v3  ;;  %v1370_v1 = vld [vmem:[#allocation10 + $0x1a50] sm:$0xff]  ;;  %v1107_v2 = vld [vmem:[#allocation10 + $0x1218] sm:$0xff] }
 0x1a2   :  { %1961 = vmatpush2.msra.mxu0 %v674_v5  ;;  %2038 = vmatpush2.msra.mxu1 %v930_v6  ;;  %v1363_v3 = vld [vmem:[#allocation10 + $0x1a18] sm:$0xff]  ;;  %v1106_v5 = vld [vmem:[#allocation10 + $0x1210] sm:$0xff] }
 0x1a3   :  { %1962 = vmatprep.subr.mxu0 %v667_v8  ;;  %2039 = vmatprep.subr.mxu1 %v923_v9  ;;  %v1362_v6 = vld [vmem:[#allocation10 + $0x1a10] sm:$0xff]  ;;  %v1099_v8 = vld [vmem:[#allocation10 + $0x11d8] sm:$0xff] }
 0x1a4   :  { %1963 = vmatpush2.msra.mxu0 %v666_v47  ;;  %2040 = vmatpush2.msra.mxu1 %v922_v10  ;;  %v1355_v9 = vld [vmem:[#allocation10 + $0x19d8] sm:$0xff]  ;;  %v1098_v47 = vld [vmem:[#allocation10 + $0x11d0] sm:$0xff] }
 0x1a5   :  { %1964 = vmatprep.subr.mxu0 %v659_v14  ;;  %2041 = vmatprep.subr.mxu1 %v915_v17  ;;  %v1354_v10 = vld [vmem:[#allocation10 + $0x19d0] sm:$0xff]  ;;  %v1091_v14 = vld [vmem:[#allocation10 + $0x1198] sm:$0xff] }
 0x1a6   :  { %1965 = vmatpush2.msra.mxu0 %v658_v19  ;;  %2042 = vmatpush2.msra.mxu1 %v914_v20  ;;  %v1347_v17 = vld [vmem:[#allocation10 + $0x1998] sm:$0xff]  ;;  %v1090_v19 = vld [vmem:[#allocation10 + $0x1190] sm:$0xff] }
 0x1a7   :  { %1967 = vmatmul.mubr.f32.vlgmr.msra.gmra.mxu0 %v3406_v60  ;;  %2044 = vmatmul.mubr.f32.vlgmr.msra.gmra.mxu1 %v3400_v57  ;;  %v1346_v20 = vld [vmem:[#allocation10 + $0x1990] sm:$0xff] }
 0x1a8   :  { %2056 = vmatprep.subr.mxu0 %v1163_v22  ;;  %2133 = vmatprep.subr.mxu1 %v1419_v24  ;;  %v1083_v22 = vld [vmem:[#allocation10 + $0x1158] sm:$0xff] }
 0x1a9   :  { %1972 = vmatprep.mubr.f32.mxu0 %v3423_v12  ;;  %2049 = vmatprep.mubr.f32.mxu1 %v3436_v23  ;;  %v1339_v24 = vld [vmem:[#allocation10 + $0x1958] sm:$0xff] }
 0x1aa   :  { %2057 = vmatpush1.msra.mxu0 %v1162_v45  ;;  %2134 = vmatpush1.msra.mxu1 %v1418_v25  ;;  %v1082_v45 = vld [vmem:[#allocation10 + $0x1150] sm:$0xff] }
 0x1ab   :  { %2058 = vmatprep.subr.mxu0 %v1155_v26  ;;  %2135 = vmatprep.subr.mxu1 %v1411_v27  ;;  %v1338_v25 = vld [vmem:[#allocation10 + $0x1950] sm:$0xff]  ;;  %v1075_v26 = vld [vmem:[#allocation10 + $0x1118] sm:$0xff] }
 0x1ac   :  { %2059 = vmatpush1.msra.mxu0 %v1154_v39  ;;  %2136 = vmatpush1.msra.mxu1 %v1410_v29  ;;  %v1331_v27 = vld [vmem:[#allocation10 + $0x1918] sm:$0xff]  ;;  %v1074_v39 = vld [vmem:[#allocation10 + $0x1110] sm:$0xff] }
 0x1ad   :  { %1973 = vmatmul.mubr.f32.gmra.mxu0 %v3428_v16  ;;  %2050 = vmatmul.mubr.f32.gmra.mxu1 %v3443_v28  ;;  %v1330_v29 = vld [vmem:[#allocation10 + $0x1910] sm:$0xff] }
 0x1ae   :  { %2060 = vmatprep.subr.mxu0 %v1147_v30  ;;  %2137 = vmatprep.subr.mxu1 %v1403_v31  ;;  %v1067_v30 = vld [vmem:[#allocation10 + $0x10d8] sm:$0xff] }
 0x1af   :  { %2061 = vmatpush1.msra.mxu0 %v1146_v32  ;;  %2120 = vmatprep.mubr.f32.mxu0 %v3449_v51  ;;  %v1323_v31 = vld [vmem:[#allocation10 + $0x18d8] sm:$0xff]  ;;  %v1066_v32 = vld [vmem:[#allocation10 + $0x10d0] sm:$0xff] }
 0x1b0   :  { %2138 = vmatpush1.msra.mxu1 %v1402_v33  ;;  %2197 = vmatprep.mubr.f32.mxu1 %v3453_v61  ;;  %v1322_v33 = vld [vmem:[#allocation10 + $0x18d0] sm:$0xff] }
 0x1b1   :  { %2062 = vmatprep.subr.mxu0 %v1139_v34  ;;  %2139 = vmatprep.subr.mxu1 %v1395_v35  ;;  %v1059_v34 = vld [vmem:[#allocation10 + $0x1098] sm:$0xff] }
 0x1b2   :  { %2063 = vmatpush1.msra.mxu0 %v1138_v36  ;;  %2140 = vmatpush1.msra.mxu1 %v1394_v37  ;;  %v1315_v35 = vld [vmem:[#allocation10 + $0x1898] sm:$0xff]  ;;  %v1058_v36 = vld [vmem:[#allocation10 + $0x1090] sm:$0xff] }
 0x1b3   :  { %2064 = vmatprep.subr.mxu0 %v1131_v38  ;;  %2141 = vmatprep.subr.mxu1 %v1387_v49  ;;  %v1314_v37 = vld [vmem:[#allocation10 + $0x1890] sm:$0xff]  ;;  %v1051_v38 = vld [vmem:[#allocation10 + $0x1058] sm:$0xff] }
 0x1b4   :  { %2065 = vmatpush1.msra.mxu0 %v1130_v50  ;;  %2142 = vmatpush1.msra.mxu1 %v1386_v42  ;;  %v1307_v49 = vld [vmem:[#allocation10 + $0x1858] sm:$0xff]  ;;  %v1050_v50 = vld [vmem:[#allocation10 + $0x1050] sm:$0xff] }
 0x1b5   :  { %2066 = vmatprep.subr.mxu0 %v1123_v52  ;;  %2143 = vmatprep.subr.mxu1 %v1379_v53  ;;  %v1306_v42 = vld [vmem:[#allocation10 + $0x1850] sm:$0xff]  ;;  %v1043_v52 = vld [vmem:[#allocation10 + $0x1018] sm:$0xff] }
 0x1b6   :  { %2067 = vmatpush1.msra.mxu0 %v1122_v54  ;;  %2144 = vmatpush1.msra.mxu1 %v1378_v55  ;;  %v1299_v53 = vld [vmem:[#allocation10 + $0x1818] sm:$0xff]  ;;  %v1042_v54 = vld [vmem:[#allocation10 + $0x1010] sm:$0xff] }
 0x1b7   :  { %2068 = vmatprep.subr.mxu0 %v1115_v56  ;;  %2145 = vmatprep.subr.mxu1 %v1371_v62  ;;  %v1298_v55 = vld [vmem:[#allocation10 + $0x1810] sm:$0xff]  ;;  %v1291_v56 = vld [vmem:[#allocation10 + $0x17d8] sm:$0xff] }
 0x1b8   :  { %2069 = vmatpush1.msra.mxu0 %v1114_v63  ;;  %2146 = vmatpush1.msra.mxu1 %v1370_v1  ;;  %v1547_v62 = vld [vmem:[#allocation10 + $0x1fd8] sm:$0xff]  ;;  %v1290_v63 = vld [vmem:[#allocation10 + $0x17d0] sm:$0xff] }
 0x1b9   :  { %2070 = vmatprep.subr.mxu0 %v1107_v2  ;;  %2147 = vmatprep.subr.mxu1 %v1363_v3  ;;  %v1546_v1 = vld [vmem:[#allocation10 + $0x1fd0] sm:$0xff]  ;;  %v1283_v2 = vld [vmem:[#allocation10 + $0x1798] sm:$0xff] }
 0x1ba   :  { %2071 = vmatpush1.msra.mxu0 %v1106_v5  ;;  %2148 = vmatpush1.msra.mxu1 %v1362_v6  ;;  %v1539_v3 = vld [vmem:[#allocation10 + $0x1f98] sm:$0xff]  ;;  %v1282_v5 = vld [vmem:[#allocation10 + $0x1790] sm:$0xff] }
 0x1bb   :  { %2072 = vmatprep.subr.mxu0 %v1099_v8  ;;  %2149 = vmatprep.subr.mxu1 %v1355_v9  ;;  %v1538_v6 = vld [vmem:[#allocation10 + $0x1f90] sm:$0xff]  ;;  %v1275_v8 = vld [vmem:[#allocation10 + $0x1758] sm:$0xff] }
 0x1bc   :  { %2073 = vmatpush1.msra.mxu0 %v1098_v47  ;;  %2150 = vmatpush1.msra.mxu1 %v1354_v10  ;;  %v1531_v9 = vld [vmem:[#allocation10 + $0x1f58] sm:$0xff]  ;;  %v1274_v47 = vld [vmem:[#allocation10 + $0x1750] sm:$0xff] }
 0x1bd   :  { %2074 = vmatprep.subr.mxu0 %v1091_v14  ;;  %2151 = vmatprep.subr.mxu1 %v1347_v17  ;;  %v1530_v10 = vld [vmem:[#allocation10 + $0x1f50] sm:$0xff]  ;;  %v1267_v14 = vld [vmem:[#allocation10 + $0x1718] sm:$0xff] }
 0x1be   :  { %2075 = vmatpush1.msra.mxu0 %v1090_v19  ;;  %2152 = vmatpush1.msra.mxu1 %v1346_v20  ;;  %v1523_v17 = vld [vmem:[#allocation10 + $0x1f18] sm:$0xff]  ;;  %v1266_v19 = vld [vmem:[#allocation10 + $0x1710] sm:$0xff] }
 0x1bf   :  { %2076 = vmatprep.subr.mxu0 %v1083_v22  ;;  %2153 = vmatprep.subr.mxu1 %v1339_v24  ;;  %v1522_v20 = vld [vmem:[#allocation10 + $0x1f10] sm:$0xff]  ;;  %v1259_v22 = vld [vmem:[#allocation10 + $0x16d8] sm:$0xff] }
 0x1c0   :  { %2077 = vmatpush1.msra.mxu0 %v1082_v45  ;;  %2154 = vmatpush1.msra.mxu1 %v1338_v25  ;;  %v1515_v24 = vld [vmem:[#allocation10 + $0x1ed8] sm:$0xff]  ;;  %v1258_v45 = vld [vmem:[#allocation10 + $0x16d0] sm:$0xff] }
 0x1c1   :  { %2078 = vmatprep.subr.mxu0 %v1075_v26  ;;  %2155 = vmatprep.subr.mxu1 %v1331_v27  ;;  %v1514_v25 = vld [vmem:[#allocation10 + $0x1ed0] sm:$0xff]  ;;  %v1251_v26 = vld [vmem:[#allocation10 + $0x1698] sm:$0xff] }
 0x1c2   :  { %2079 = vmatpush1.msra.mxu0 %v1074_v39  ;;  %2156 = vmatpush1.msra.mxu1 %v1330_v29  ;;  %v1507_v27 = vld [vmem:[#allocation10 + $0x1e98] sm:$0xff]  ;;  %v1250_v39 = vld [vmem:[#allocation10 + $0x1690] sm:$0xff] }
 0x1c3   :  { %2080 = vmatprep.subr.mxu0 %v1067_v30  ;;  %2157 = vmatprep.subr.mxu1 %v1323_v31  ;;  %v1506_v29 = vld [vmem:[#allocation10 + $0x1e90] sm:$0xff]  ;;  %v1243_v30 = vld [vmem:[#allocation10 + $0x1658] sm:$0xff] }
 0x1c4   :  { %2081 = vmatpush1.msra.mxu0 %v1066_v32  ;;  %2158 = vmatpush1.msra.mxu1 %v1322_v33  ;;  %v1499_v31 = vld [vmem:[#allocation10 + $0x1e58] sm:$0xff]  ;;  %v1242_v32 = vld [vmem:[#allocation10 + $0x1650] sm:$0xff] }
 0x1c5   :  { %2082 = vmatprep.subr.mxu0 %v1059_v34  ;;  %2159 = vmatprep.subr.mxu1 %v1315_v35  ;;  %v1498_v33 = vld [vmem:[#allocation10 + $0x1e50] sm:$0xff]  ;;  %v1235_v34 = vld [vmem:[#allocation10 + $0x1618] sm:$0xff] }
 0x1c6   :  { %2083 = vmatpush1.msra.mxu0 %v1058_v36  ;;  %2160 = vmatpush1.msra.mxu1 %v1314_v37  ;;  %v1491_v35 = vld [vmem:[#allocation10 + $0x1e18] sm:$0xff]  ;;  %v1234_v36 = vld [vmem:[#allocation10 + $0x1610] sm:$0xff] }
 0x1c7   :  { %2084 = vmatprep.subr.mxu0 %v1051_v38  ;;  %2161 = vmatprep.subr.mxu1 %v1307_v49  ;;  %v1490_v37 = vld [vmem:[#allocation10 + $0x1e10] sm:$0xff]  ;;  %v1227_v38 = vld [vmem:[#allocation10 + $0x15d8] sm:$0xff] }
 0x1c8   :  { %2085 = vmatpush1.msra.mxu0 %v1050_v50  ;;  %2162 = vmatpush1.msra.mxu1 %v1306_v42  ;;  %v1483_v49 = vld [vmem:[#allocation10 + $0x1dd8] sm:$0xff]  ;;  %v1226_v50 = vld [vmem:[#allocation10 + $0x15d0] sm:$0xff] }
 0x1c9   :  { %2086 = vmatprep.subr.mxu0 %v1043_v52  ;;  %2163 = vmatprep.subr.mxu1 %v1299_v53  ;;  %v1482_v42 = vld [vmem:[#allocation10 + $0x1dd0] sm:$0xff]  ;;  %v1219_v52 = vld [vmem:[#allocation10 + $0x1598] sm:$0xff] }
 0x1ca   :  { %2087 = vmatpush1.msra.mxu0 %v1042_v54  ;;  %2164 = vmatpush1.msra.mxu1 %v1298_v55  ;;  %v1475_v53 = vld [vmem:[#allocation10 + $0x1d98] sm:$0xff]  ;;  %v1218_v54 = vld [vmem:[#allocation10 + $0x1590] sm:$0xff] }
 0x1cb   :  { %2088 = vmatprep.subr.mxu0 %v1291_v56  ;;  %2165 = vmatprep.subr.mxu1 %v1547_v62  ;;  %v1474_v55 = vld [vmem:[#allocation10 + $0x1d90] sm:$0xff]  ;;  %v1211_v56 = vld [vmem:[#allocation10 + $0x1558] sm:$0xff] }
 0x1cc   :  { %2089 = vmatpush2.msra.mxu0 %v1290_v63  ;;  %2166 = vmatpush2.msra.mxu1 %v1546_v1  ;;  %v1467_v62 = vld [vmem:[#allocation10 + $0x1d58] sm:$0xff]  ;;  %v1210_v63 = vld [vmem:[#allocation10 + $0x1550] sm:$0xff] }
 0x1cd   :  { %2090 = vmatprep.subr.mxu0 %v1283_v2  ;;  %2167 = vmatprep.subr.mxu1 %v1539_v3  ;;  %v1466_v1 = vld [vmem:[#allocation10 + $0x1d50] sm:$0xff]  ;;  %v1203_v2 = vld [vmem:[#allocation10 + $0x1518] sm:$0xff] }
 0x1ce   :  { %2091 = vmatpush2.msra.mxu0 %v1282_v5  ;;  %2168 = vmatpush2.msra.mxu1 %v1538_v6  ;;  %v1459_v3 = vld [vmem:[#allocation10 + $0x1d18] sm:$0xff]  ;;  %v1202_v5 = vld [vmem:[#allocation10 + $0x1510] sm:$0xff] }
 0x1cf   :  { %2092 = vmatprep.subr.mxu0 %v1275_v8  ;;  %2169 = vmatprep.subr.mxu1 %v1531_v9  ;;  %v1458_v6 = vld [vmem:[#allocation10 + $0x1d10] sm:$0xff]  ;;  %v1195_v8 = vld [vmem:[#allocation10 + $0x14d8] sm:$0xff] }
 0x1d0   :  { %2093 = vmatpush2.msra.mxu0 %v1274_v47  ;;  %2170 = vmatpush2.msra.mxu1 %v1530_v10  ;;  %v1451_v9 = vld [vmem:[#allocation10 + $0x1cd8] sm:$0xff]  ;;  %v1194_v47 = vld [vmem:[#allocation10 + $0x14d0] sm:$0xff] }
 0x1d1   :  { %2094 = vmatprep.subr.mxu0 %v1267_v14  ;;  %2171 = vmatprep.subr.mxu1 %v1523_v17  ;;  %v1450_v10 = vld [vmem:[#allocation10 + $0x1cd0] sm:$0xff]  ;;  %v1187_v14 = vld [vmem:[#allocation10 + $0x1498] sm:$0xff] }
 0x1d2   :  { %2095 = vmatpush2.msra.mxu0 %v1266_v19  ;;  %2172 = vmatpush2.msra.mxu1 %v1522_v20  ;;  %v1443_v17 = vld [vmem:[#allocation10 + $0x1c98] sm:$0xff]  ;;  %v1186_v19 = vld [vmem:[#allocation10 + $0x1490] sm:$0xff] }
 0x1d3   :  { %2096 = vmatprep.subr.mxu0 %v1259_v22  ;;  %2173 = vmatprep.subr.mxu1 %v1515_v24  ;;  %v1442_v20 = vld [vmem:[#allocation10 + $0x1c90] sm:$0xff]  ;;  %v1179_v22 = vld [vmem:[#allocation10 + $0x1458] sm:$0xff] }
 0x1d4   :  { %2097 = vmatpush2.msra.mxu0 %v1258_v45  ;;  %2174 = vmatpush2.msra.mxu1 %v1514_v25  ;;  %v1435_v24 = vld [vmem:[#allocation10 + $0x1c58] sm:$0xff]  ;;  %v1178_v45 = vld [vmem:[#allocation10 + $0x1450] sm:$0xff] }
 0x1d5   :  { %2098 = vmatprep.subr.mxu0 %v1251_v26  ;;  %2175 = vmatprep.subr.mxu1 %v1507_v27  ;;  %v1434_v25 = vld [vmem:[#allocation10 + $0x1c50] sm:$0xff]  ;;  %v1171_v26 = vld [vmem:[#allocation10 + $0x1418] sm:$0xff] }
 0x1d6   :  { %2099 = vmatpush2.msra.mxu0 %v1250_v39  ;;  %2176 = vmatpush2.msra.mxu1 %v1506_v29  ;;  %v1427_v27 = vld [vmem:[#allocation10 + $0x1c18] sm:$0xff]  ;;  %v1170_v39 = vld [vmem:[#allocation10 + $0x1410] sm:$0xff] }
 0x1d7   :  { %2100 = vmatprep.subr.mxu0 %v1243_v30  ;;  %2177 = vmatprep.subr.mxu1 %v1499_v31  ;;  %v1426_v29 = vld [vmem:[#allocation10 + $0x1c10] sm:$0xff]  ;;  %v653_v30 = vld [vmem:[#allocation10 + $0x3e8] sm:$0xff] }
 0x1d8   :  { %2101 = vmatpush2.msra.mxu0 %v1242_v32  ;;  %2178 = vmatpush2.msra.mxu1 %v1498_v33  ;;  %v909_v31 = vld [vmem:[#allocation10 + $0xbe8] sm:$0xff]  ;;  %v652_v32 = vld [vmem:[#allocation10 + $0x3e0] sm:$0xff] }
 0x1d9   :  { %2102 = vmatprep.subr.mxu0 %v1235_v34  ;;  %2179 = vmatprep.subr.mxu1 %v1491_v35  ;;  %v908_v33 = vld [vmem:[#allocation10 + $0xbe0] sm:$0xff]  ;;  %v645_v34 = vld [vmem:[#allocation10 + $0x3a8] sm:$0xff] }
 0x1da   :  { %2103 = vmatpush2.msra.mxu0 %v1234_v36  ;;  %2180 = vmatpush2.msra.mxu1 %v1490_v37  ;;  %v901_v35 = vld [vmem:[#allocation10 + $0xba8] sm:$0xff]  ;;  %v644_v36 = vld [vmem:[#allocation10 + $0x3a0] sm:$0xff] }
 0x1db   :  { %2104 = vmatprep.subr.mxu0 %v1227_v38  ;;  %2181 = vmatprep.subr.mxu1 %v1483_v49  ;;  %v900_v37 = vld [vmem:[#allocation10 + $0xba0] sm:$0xff]  ;;  %v637_v38 = vld [vmem:[#allocation10 + $0x368] sm:$0xff] }
 0x1dc   :  { %2105 = vmatpush2.msra.mxu0 %v1226_v50  ;;  %2182 = vmatpush2.msra.mxu1 %v1482_v42  ;;  %v893_v49 = vld [vmem:[#allocation10 + $0xb68] sm:$0xff]  ;;  %v636_v50 = vld [vmem:[#allocation10 + $0x360] sm:$0xff] }
 0x1dd   :  { %2106 = vmatprep.subr.mxu0 %v1219_v52  ;;  %2183 = vmatprep.subr.mxu1 %v1475_v53  ;;  %v892_v42 = vld [vmem:[#allocation10 + $0xb60] sm:$0xff]  ;;  %v629_v52 = vld [vmem:[#allocation10 + $0x328] sm:$0xff] }
 0x1de   :  { %2107 = vmatpush2.msra.mxu0 %v1218_v54  ;;  %2184 = vmatpush2.msra.mxu1 %v1474_v55  ;;  %v885_v53 = vld [vmem:[#allocation10 + $0xb28] sm:$0xff]  ;;  %v628_v54 = vld [vmem:[#allocation10 + $0x320] sm:$0xff] }
 0x1df   :  { %2108 = vmatprep.subr.mxu0 %v1211_v56  ;;  %2185 = vmatprep.subr.mxu1 %v1467_v62  ;;  %v884_v55 = vld [vmem:[#allocation10 + $0xb20] sm:$0xff]  ;;  %v621_v56 = vld [vmem:[#allocation10 + $0x2e8] sm:$0xff] }
 0x1e0   :  { %2109 = vmatpush2.msra.mxu0 %v1210_v63  ;;  %2186 = vmatpush2.msra.mxu1 %v1466_v1  ;;  %v877_v62 = vld [vmem:[#allocation10 + $0xae8] sm:$0xff]  ;;  %v620_v63 = vld [vmem:[#allocation10 + $0x2e0] sm:$0xff] }
 0x1e1   :  { %2110 = vmatprep.subr.mxu0 %v1203_v2  ;;  %2187 = vmatprep.subr.mxu1 %v1459_v3  ;;  %v876_v1 = vld [vmem:[#allocation10 + $0xae0] sm:$0xff]  ;;  %v613_v2 = vld [vmem:[#allocation10 + $0x2a8] sm:$0xff] }
 0x1e2   :  { %2111 = vmatpush2.msra.mxu0 %v1202_v5  ;;  %2188 = vmatpush2.msra.mxu1 %v1458_v6  ;;  %v869_v3 = vld [vmem:[#allocation10 + $0xaa8] sm:$0xff]  ;;  %v612_v5 = vld [vmem:[#allocation10 + $0x2a0] sm:$0xff] }
 0x1e3   :  { %2112 = vmatprep.subr.mxu0 %v1195_v8  ;;  %2189 = vmatprep.subr.mxu1 %v1451_v9  ;;  %v868_v6 = vld [vmem:[#allocation10 + $0xaa0] sm:$0xff]  ;;  %v605_v8 = vld [vmem:[#allocation10 + $0x268] sm:$0xff] }
 0x1e4   :  { %2113 = vmatpush2.msra.mxu0 %v1194_v47  ;;  %2190 = vmatpush2.msra.mxu1 %v1450_v10  ;;  %v861_v9 = vld [vmem:[#allocation10 + $0xa68] sm:$0xff]  ;;  %v604_v47 = vld [vmem:[#allocation10 + $0x260] sm:$0xff] }
 0x1e5   :  { %2114 = vmatprep.subr.mxu0 %v1187_v14  ;;  %2191 = vmatprep.subr.mxu1 %v1443_v17  ;;  %v860_v10 = vld [vmem:[#allocation10 + $0xa60] sm:$0xff]  ;;  %v597_v14 = vld [vmem:[#allocation10 + $0x228] sm:$0xff] }
 0x1e6   :  { %2115 = vmatpush2.msra.mxu0 %v1186_v19  ;;  %2192 = vmatpush2.msra.mxu1 %v1442_v20  ;;  %v853_v17 = vld [vmem:[#allocation10 + $0xa28] sm:$0xff]  ;;  %v596_v19 = vld [vmem:[#allocation10 + $0x220] sm:$0xff] }
 0x1e7   :  { %2116 = vmatprep.subr.mxu0 %v1179_v22  ;;  %2193 = vmatprep.subr.mxu1 %v1435_v24  ;;  %v852_v20 = vld [vmem:[#allocation10 + $0xa20] sm:$0xff]  ;;  %v589_v22 = vld [vmem:[#allocation10 + $0x1e8] sm:$0xff] }
 0x1e8   :  { %2117 = vmatpush2.msra.mxu0 %v1178_v45  ;;  %2194 = vmatpush2.msra.mxu1 %v1434_v25  ;;  %v845_v24 = vld [vmem:[#allocation10 + $0x9e8] sm:$0xff]  ;;  %v588_v45 = vld [vmem:[#allocation10 + $0x1e0] sm:$0xff] }
 0x1e9   :  { %2118 = vmatprep.subr.mxu0 %v1171_v26  ;;  %2195 = vmatprep.subr.mxu1 %v1427_v27  ;;  %v844_v25 = vld [vmem:[#allocation10 + $0x9e0] sm:$0xff]  ;;  %v581_v26 = vld [vmem:[#allocation10 + $0x1a8] sm:$0xff] }
 0x1ea   :  { %2119 = vmatpush2.msra.mxu0 %v1170_v39  ;;  %2196 = vmatpush2.msra.mxu1 %v1426_v29  ;;  %v837_v27 = vld [vmem:[#allocation10 + $0x9a8] sm:$0xff]  ;;  %v580_v39 = vld [vmem:[#allocation10 + $0x1a0] sm:$0xff] }
 0x1eb   :  { %2121 = vmatmul.mubr.f32.vlgmr.msra.gmra.mxu0 %v3458_v4  ;;  %2198 = vmatmul.mubr.f32.vlgmr.msra.gmra.mxu1 %v3455_v0  ;;  %v836_v29 = vld [vmem:[#allocation10 + $0x9a0] sm:$0xff] }
 0x1ec   :  { %2210 = vmatprep.subr.mxu0 %v653_v30  ;;  %2287 = vmatprep.subr.mxu1 %v909_v31  ;;  %v573_v30 = vld [vmem:[#allocation10 + $0x168] sm:$0xff] }
 0x1ed   :  { %2126 = vmatprep.mubr.f32.mxu0 %v3461_v46  ;;  %2203 = vmatprep.mubr.f32.mxu1 %v3463_v13  ;;  %v829_v31 = vld [vmem:[#allocation10 + $0x968] sm:$0xff] }
 0x1ee   :  { %2211 = vmatpush1.msra.mxu0 %v652_v32  ;;  %2288 = vmatpush1.msra.mxu1 %v908_v33  ;;  %v572_v32 = vld [vmem:[#allocation10 + $0x160] sm:$0xff] }
 0x1ef   :  { %2212 = vmatprep.subr.mxu0 %v645_v34  ;;  %2289 = vmatprep.subr.mxu1 %v901_v35  ;;  %v828_v33 = vld [vmem:[#allocation10 + $0x960] sm:$0xff]  ;;  %v565_v34 = vld [vmem:[#allocation10 + $0x128] sm:$0xff] }
 0x1f0   :  { %2213 = vmatpush1.msra.mxu0 %v644_v36  ;;  %2290 = vmatpush1.msra.mxu1 %v900_v37  ;;  %v821_v35 = vld [vmem:[#allocation10 + $0x928] sm:$0xff]  ;;  %v564_v36 = vld [vmem:[#allocation10 + $0x120] sm:$0xff] }
 0x1f1   :  { %2127 = vmatmul.mubr.f32.gmra.mxu0 %v3467_v48  ;;  %2204 = vmatmul.mubr.f32.gmra.mxu1 %v3469_v18  ;;  %v820_v37 = vld [vmem:[#allocation10 + $0x920] sm:$0xff] }
 0x1f2   :  { %2214 = vmatprep.subr.mxu0 %v637_v38  ;;  %2291 = vmatprep.subr.mxu1 %v893_v49  ;;  %v557_v38 = vld [vmem:[#allocation10 + $0xe8] sm:$0xff] }
 0x1f3   :  { %2215 = vmatpush1.msra.mxu0 %v636_v50  ;;  %2274 = vmatprep.mubr.f32.mxu0 %v3402_v58  ;;  %v813_v49 = vld [vmem:[#allocation10 + $0x8e8] sm:$0xff]  ;;  %v556_v50 = vld [vmem:[#allocation10 + $0xe0] sm:$0xff] }
 0x1f4   :  { %2292 = vmatpush1.msra.mxu1 %v892_v42  ;;  %2351 = vmatprep.mubr.f32.mxu1 %v3404_v59  ;;  %v812_v42 = vld [vmem:[#allocation10 + $0x8e0] sm:$0xff] }
 0x1f5   :  { %2216 = vmatprep.subr.mxu0 %v629_v52  ;;  %2293 = vmatprep.subr.mxu1 %v885_v53  ;;  %v549_v52 = vld [vmem:[#allocation10 + $0xa8] sm:$0xff] }
 0x1f6   :  { %2217 = vmatpush1.msra.mxu0 %v628_v54  ;;  %2294 = vmatpush1.msra.mxu1 %v884_v55  ;;  %v805_v53 = vld [vmem:[#allocation10 + $0x8a8] sm:$0xff]  ;;  %v548_v54 = vld [vmem:[#allocation10 + $0xa0] sm:$0xff] }
 0x1f7   :  { %2218 = vmatprep.subr.mxu0 %v621_v56  ;;  %2295 = vmatprep.subr.mxu1 %v877_v62  ;;  %v804_v55 = vld [vmem:[#allocation10 + $0x8a0] sm:$0xff]  ;;  %v541_v56 = vld [vmem:[#allocation10 + $0x68] sm:$0xff] }
 0x1f8   :  { %2219 = vmatpush1.msra.mxu0 %v620_v63  ;;  %2296 = vmatpush1.msra.mxu1 %v876_v1  ;;  %v797_v62 = vld [vmem:[#allocation10 + $0x868] sm:$0xff]  ;;  %v540_v63 = vld [vmem:[#allocation10 + $0x60] sm:$0xff] }
 0x1f9   :  { %2220 = vmatprep.subr.mxu0 %v613_v2  ;;  %2297 = vmatprep.subr.mxu1 %v869_v3  ;;  %v796_v1 = vld [vmem:[#allocation10 + $0x860] sm:$0xff]  ;;  %v533_v2 = vld [vmem:[#allocation10 + $0x28] sm:$0xff] }
 0x1fa   :  { %2221 = vmatpush1.msra.mxu0 %v612_v5  ;;  %2298 = vmatpush1.msra.mxu1 %v868_v6  ;;  %v789_v3 = vld [vmem:[#allocation10 + $0x828] sm:$0xff]  ;;  %v532_v5 = vld [vmem:[#allocation10 + $0x20] sm:$0xff] }
 0x1fb   :  { %2222 = vmatprep.subr.mxu0 %v605_v8  ;;  %2299 = vmatprep.subr.mxu1 %v861_v9  ;;  %v788_v6 = vld [vmem:[#allocation10 + $0x820] sm:$0xff]  ;;  %v781_v8 = vld [vmem:[#allocation10 + $0x7e8] sm:$0xff] }
 0x1fc   :  { %2223 = vmatpush1.msra.mxu0 %v604_v47  ;;  %2300 = vmatpush1.msra.mxu1 %v860_v10  ;;  %v1037_v9 = vld [vmem:[#allocation10 + $0xfe8] sm:$0xff]  ;;  %v780_v47 = vld [vmem:[#allocation10 + $0x7e0] sm:$0xff] }
 0x1fd   :  { %2224 = vmatprep.subr.mxu0 %v597_v14  ;;  %2301 = vmatprep.subr.mxu1 %v853_v17  ;;  %v1036_v10 = vld [vmem:[#allocation10 + $0xfe0] sm:$0xff]  ;;  %v773_v14 = vld [vmem:[#allocation10 + $0x7a8] sm:$0xff] }
 0x1fe   :  { %2225 = vmatpush1.msra.mxu0 %v596_v19  ;;  %2302 = vmatpush1.msra.mxu1 %v852_v20  ;;  %v1029_v17 = vld [vmem:[#allocation10 + $0xfa8] sm:$0xff]  ;;  %v772_v19 = vld [vmem:[#allocation10 + $0x7a0] sm:$0xff] }
 0x1ff   :  { %2226 = vmatprep.subr.mxu0 %v589_v22  ;;  %2303 = vmatprep.subr.mxu1 %v845_v24  ;;  %v1028_v20 = vld [vmem:[#allocation10 + $0xfa0] sm:$0xff]  ;;  %v765_v22 = vld [vmem:[#allocation10 + $0x768] sm:$0xff] }
 0x200   :  { %2227 = vmatpush1.msra.mxu0 %v588_v45  ;;  %2304 = vmatpush1.msra.mxu1 %v844_v25  ;;  %v1021_v24 = vld [vmem:[#allocation10 + $0xf68] sm:$0xff]  ;;  %v764_v45 = vld [vmem:[#allocation10 + $0x760] sm:$0xff] }
 0x201   :  { %2228 = vmatprep.subr.mxu0 %v581_v26  ;;  %2305 = vmatprep.subr.mxu1 %v837_v27  ;;  %v1020_v25 = vld [vmem:[#allocation10 + $0xf60] sm:$0xff]  ;;  %v757_v26 = vld [vmem:[#allocation10 + $0x728] sm:$0xff] }
 0x202   :  { %2229 = vmatpush1.msra.mxu0 %v580_v39  ;;  %2306 = vmatpush1.msra.mxu1 %v836_v29  ;;  %v1013_v27 = vld [vmem:[#allocation10 + $0xf28] sm:$0xff]  ;;  %v756_v39 = vld [vmem:[#allocation10 + $0x720] sm:$0xff] }
 0x203   :  { %2230 = vmatprep.subr.mxu0 %v573_v30  ;;  %2307 = vmatprep.subr.mxu1 %v829_v31  ;;  %v1012_v29 = vld [vmem:[#allocation10 + $0xf20] sm:$0xff]  ;;  %v749_v30 = vld [vmem:[#allocation10 + $0x6e8] sm:$0xff] }
 0x204   :  { %2231 = vmatpush1.msra.mxu0 %v572_v32  ;;  %2308 = vmatpush1.msra.mxu1 %v828_v33  ;;  %v1005_v31 = vld [vmem:[#allocation10 + $0xee8] sm:$0xff]  ;;  %v748_v32 = vld [vmem:[#allocation10 + $0x6e0] sm:$0xff] }
 0x205   :  { %2232 = vmatprep.subr.mxu0 %v565_v34  ;;  %2309 = vmatprep.subr.mxu1 %v821_v35  ;;  %v1004_v33 = vld [vmem:[#allocation10 + $0xee0] sm:$0xff]  ;;  %v741_v34 = vld [vmem:[#allocation10 + $0x6a8] sm:$0xff] }
 0x206   :  { %2233 = vmatpush1.msra.mxu0 %v564_v36  ;;  %2310 = vmatpush1.msra.mxu1 %v820_v37  ;;  %v997_v35 = vld [vmem:[#allocation10 + $0xea8] sm:$0xff]  ;;  %v740_v36 = vld [vmem:[#allocation10 + $0x6a0] sm:$0xff] }
 0x207   :  { %2234 = vmatprep.subr.mxu0 %v557_v38  ;;  %2311 = vmatprep.subr.mxu1 %v813_v49  ;;  %v996_v37 = vld [vmem:[#allocation10 + $0xea0] sm:$0xff]  ;;  %v733_v38 = vld [vmem:[#allocation10 + $0x668] sm:$0xff] }
 0x208   :  { %2235 = vmatpush1.msra.mxu0 %v556_v50  ;;  %2312 = vmatpush1.msra.mxu1 %v812_v42  ;;  %v989_v49 = vld [vmem:[#allocation10 + $0xe68] sm:$0xff]  ;;  %v732_v50 = vld [vmem:[#allocation10 + $0x660] sm:$0xff] }
 0x209   :  { %2236 = vmatprep.subr.mxu0 %v549_v52  ;;  %2313 = vmatprep.subr.mxu1 %v805_v53  ;;  %v988_v42 = vld [vmem:[#allocation10 + $0xe60] sm:$0xff]  ;;  %v725_v52 = vld [vmem:[#allocation10 + $0x628] sm:$0xff] }
 0x20a   :  { %2237 = vmatpush1.msra.mxu0 %v548_v54  ;;  %2314 = vmatpush1.msra.mxu1 %v804_v55  ;;  %v981_v53 = vld [vmem:[#allocation10 + $0xe28] sm:$0xff]  ;;  %v724_v54 = vld [vmem:[#allocation10 + $0x620] sm:$0xff] }
 0x20b   :  { %2238 = vmatprep.subr.mxu0 %v541_v56  ;;  %2315 = vmatprep.subr.mxu1 %v797_v62  ;;  %v980_v55 = vld [vmem:[#allocation10 + $0xe20] sm:$0xff]  ;;  %v717_v56 = vld [vmem:[#allocation10 + $0x5e8] sm:$0xff] }
 0x20c   :  { %2239 = vmatpush1.msra.mxu0 %v540_v63  ;;  %2316 = vmatpush1.msra.mxu1 %v796_v1  ;;  %v973_v62 = vld [vmem:[#allocation10 + $0xde8] sm:$0xff]  ;;  %v716_v63 = vld [vmem:[#allocation10 + $0x5e0] sm:$0xff] }
 0x20d   :  { %2240 = vmatprep.subr.mxu0 %v533_v2  ;;  %2317 = vmatprep.subr.mxu1 %v789_v3  ;;  %v972_v1 = vld [vmem:[#allocation10 + $0xde0] sm:$0xff]  ;;  %v709_v2 = vld [vmem:[#allocation10 + $0x5a8] sm:$0xff] }
 0x20e   :  { %2241 = vmatpush1.msra.mxu0 %v532_v5  ;;  %2318 = vmatpush1.msra.mxu1 %v788_v6  ;;  %v965_v3 = vld [vmem:[#allocation10 + $0xda8] sm:$0xff]  ;;  %v708_v5 = vld [vmem:[#allocation10 + $0x5a0] sm:$0xff] }
 0x20f   :  { %2242 = vmatprep.subr.mxu0 %v781_v8  ;;  %2319 = vmatprep.subr.mxu1 %v1037_v9  ;;  %v964_v6 = vld [vmem:[#allocation10 + $0xda0] sm:$0xff]  ;;  %v701_v8 = vld [vmem:[#allocation10 + $0x568] sm:$0xff] }
 0x210   :  { %2243 = vmatpush2.msra.mxu0 %v780_v47  ;;  %2320 = vmatpush2.msra.mxu1 %v1036_v10  ;;  %v957_v9 = vld [vmem:[#allocation10 + $0xd68] sm:$0xff]  ;;  %v700_v47 = vld [vmem:[#allocation10 + $0x560] sm:$0xff] }
 0x211   :  { %2244 = vmatprep.subr.mxu0 %v773_v14  ;;  %2321 = vmatprep.subr.mxu1 %v1029_v17  ;;  %v956_v10 = vld [vmem:[#allocation10 + $0xd60] sm:$0xff]  ;;  %v693_v14 = vld [vmem:[#allocation10 + $0x528] sm:$0xff] }
 0x212   :  { %2245 = vmatpush2.msra.mxu0 %v772_v19  ;;  %2322 = vmatpush2.msra.mxu1 %v1028_v20  ;;  %v949_v17 = vld [vmem:[#allocation10 + $0xd28] sm:$0xff]  ;;  %v692_v19 = vld [vmem:[#allocation10 + $0x520] sm:$0xff] }
 0x213   :  { %2246 = vmatprep.subr.mxu0 %v765_v22  ;;  %2323 = vmatprep.subr.mxu1 %v1021_v24  ;;  %v948_v20 = vld [vmem:[#allocation10 + $0xd20] sm:$0xff]  ;;  %v685_v22 = vld [vmem:[#allocation10 + $0x4e8] sm:$0xff] }
 0x214   :  { %2247 = vmatpush2.msra.mxu0 %v764_v45  ;;  %2324 = vmatpush2.msra.mxu1 %v1020_v25  ;;  %v941_v24 = vld [vmem:[#allocation10 + $0xce8] sm:$0xff]  ;;  %v684_v45 = vld [vmem:[#allocation10 + $0x4e0] sm:$0xff] }
 0x215   :  { %2248 = vmatprep.subr.mxu0 %v757_v26  ;;  %2325 = vmatprep.subr.mxu1 %v1013_v27  ;;  %v940_v25 = vld [vmem:[#allocation10 + $0xce0] sm:$0xff]  ;;  %v677_v26 = vld [vmem:[#allocation10 + $0x4a8] sm:$0xff] }
 0x216   :  { %2249 = vmatpush2.msra.mxu0 %v756_v39  ;;  %2326 = vmatpush2.msra.mxu1 %v1012_v29  ;;  %v933_v27 = vld [vmem:[#allocation10 + $0xca8] sm:$0xff]  ;;  %v676_v39 = vld [vmem:[#allocation10 + $0x4a0] sm:$0xff] }
 0x217   :  { %2250 = vmatprep.subr.mxu0 %v749_v30  ;;  %2327 = vmatprep.subr.mxu1 %v1005_v31  ;;  %v932_v29 = vld [vmem:[#allocation10 + $0xca0] sm:$0xff]  ;;  %v669_v30 = vld [vmem:[#allocation10 + $0x468] sm:$0xff] }
 0x218   :  { %2251 = vmatpush2.msra.mxu0 %v748_v32  ;;  %2328 = vmatpush2.msra.mxu1 %v1004_v33  ;;  %v925_v31 = vld [vmem:[#allocation10 + $0xc68] sm:$0xff]  ;;  %v668_v32 = vld [vmem:[#allocation10 + $0x460] sm:$0xff] }
 0x219   :  { %2252 = vmatprep.subr.mxu0 %v741_v34  ;;  %2329 = vmatprep.subr.mxu1 %v997_v35  ;;  %v924_v33 = vld [vmem:[#allocation10 + $0xc60] sm:$0xff]  ;;  %v661_v34 = vld [vmem:[#allocation10 + $0x428] sm:$0xff] }
 0x21a   :  { %2253 = vmatpush2.msra.mxu0 %v740_v36  ;;  %2330 = vmatpush2.msra.mxu1 %v996_v37  ;;  %v917_v35 = vld [vmem:[#allocation10 + $0xc28] sm:$0xff]  ;;  %v660_v36 = vld [vmem:[#allocation10 + $0x420] sm:$0xff] }
 0x21b   :  { %2254 = vmatprep.subr.mxu0 %v733_v38  ;;  %2331 = vmatprep.subr.mxu1 %v989_v49  ;;  %v916_v37 = vld [vmem:[#allocation10 + $0xc20] sm:$0xff]  ;;  %v1165_v38 = vld [vmem:[#allocation10 + $0x13e8] sm:$0xff] }
 0x21c   :  { %2255 = vmatpush2.msra.mxu0 %v732_v50  ;;  %2332 = vmatpush2.msra.mxu1 %v988_v42  ;;  %v1421_v49 = vld [vmem:[#allocation10 + $0x1be8] sm:$0xff]  ;;  %v1164_v50 = vld [vmem:[#allocation10 + $0x13e0] sm:$0xff] }
 0x21d   :  { %2256 = vmatprep.subr.mxu0 %v725_v52  ;;  %2333 = vmatprep.subr.mxu1 %v981_v53  ;;  %v1420_v42 = vld [vmem:[#allocation10 + $0x1be0] sm:$0xff]  ;;  %v1157_v52 = vld [vmem:[#allocation10 + $0x13a8] sm:$0xff] }
 0x21e   :  { %2257 = vmatpush2.msra.mxu0 %v724_v54  ;;  %2334 = vmatpush2.msra.mxu1 %v980_v55  ;;  %v1413_v53 = vld [vmem:[#allocation10 + $0x1ba8] sm:$0xff]  ;;  %v1156_v54 = vld [vmem:[#allocation10 + $0x13a0] sm:$0xff] }
 0x21f   :  { %2258 = vmatprep.subr.mxu0 %v717_v56  ;;  %2335 = vmatprep.subr.mxu1 %v973_v62  ;;  %v1412_v55 = vld [vmem:[#allocation10 + $0x1ba0] sm:$0xff]  ;;  %v1149_v56 = vld [vmem:[#allocation10 + $0x1368] sm:$0xff] }
 0x220   :  { %2259 = vmatpush2.msra.mxu0 %v716_v63  ;;  %2336 = vmatpush2.msra.mxu1 %v972_v1  ;;  %v1405_v62 = vld [vmem:[#allocation10 + $0x1b68] sm:$0xff]  ;;  %v1148_v63 = vld [vmem:[#allocation10 + $0x1360] sm:$0xff] }
 0x221   :  { %2260 = vmatprep.subr.mxu0 %v709_v2  ;;  %2337 = vmatprep.subr.mxu1 %v965_v3  ;;  %v1404_v1 = vld [vmem:[#allocation10 + $0x1b60] sm:$0xff]  ;;  %v1141_v2 = vld [vmem:[#allocation10 + $0x1328] sm:$0xff] }
 0x222   :  { %2261 = vmatpush2.msra.mxu0 %v708_v5  ;;  %2338 = vmatpush2.msra.mxu1 %v964_v6  ;;  %v1397_v3 = vld [vmem:[#allocation10 + $0x1b28] sm:$0xff]  ;;  %v1140_v5 = vld [vmem:[#allocation10 + $0x1320] sm:$0xff] }
 0x223   :  { %2262 = vmatprep.subr.mxu0 %v701_v8  ;;  %2339 = vmatprep.subr.mxu1 %v957_v9  ;;  %v1396_v6 = vld [vmem:[#allocation10 + $0x1b20] sm:$0xff]  ;;  %v1133_v8 = vld [vmem:[#allocation10 + $0x12e8] sm:$0xff] }
 0x224   :  { %2263 = vmatpush2.msra.mxu0 %v700_v47  ;;  %2340 = vmatpush2.msra.mxu1 %v956_v10  ;;  %v1389_v9 = vld [vmem:[#allocation10 + $0x1ae8] sm:$0xff]  ;;  %v1132_v47 = vld [vmem:[#allocation10 + $0x12e0] sm:$0xff] }
 0x225   :  { %2264 = vmatprep.subr.mxu0 %v693_v14  ;;  %2341 = vmatprep.subr.mxu1 %v949_v17  ;;  %v1388_v10 = vld [vmem:[#allocation10 + $0x1ae0] sm:$0xff]  ;;  %v1125_v14 = vld [vmem:[#allocation10 + $0x12a8] sm:$0xff] }
 0x226   :  { %2265 = vmatpush2.msra.mxu0 %v692_v19  ;;  %2342 = vmatpush2.msra.mxu1 %v948_v20  ;;  %v1381_v17 = vld [vmem:[#allocation10 + $0x1aa8] sm:$0xff]  ;;  %v1124_v19 = vld [vmem:[#allocation10 + $0x12a0] sm:$0xff] }
 0x227   :  { %2266 = vmatprep.subr.mxu0 %v685_v22  ;;  %2343 = vmatprep.subr.mxu1 %v941_v24  ;;  %v1380_v20 = vld [vmem:[#allocation10 + $0x1aa0] sm:$0xff]  ;;  %v1117_v22 = vld [vmem:[#allocation10 + $0x1268] sm:$0xff] }
 0x228   :  { %2267 = vmatpush2.msra.mxu0 %v684_v45  ;;  %2344 = vmatpush2.msra.mxu1 %v940_v25  ;;  %v1373_v24 = vld [vmem:[#allocation10 + $0x1a68] sm:$0xff]  ;;  %v1116_v45 = vld [vmem:[#allocation10 + $0x1260] sm:$0xff] }
 0x229   :  { %2268 = vmatprep.subr.mxu0 %v677_v26  ;;  %2345 = vmatprep.subr.mxu1 %v933_v27  ;;  %v1372_v25 = vld [vmem:[#allocation10 + $0x1a60] sm:$0xff]  ;;  %v1109_v26 = vld [vmem:[#allocation10 + $0x1228] sm:$0xff] }
 0x22a   :  { %2269 = vmatpush2.msra.mxu0 %v676_v39  ;;  %2346 = vmatpush2.msra.mxu1 %v932_v29  ;;  %v1365_v27 = vld [vmem:[#allocation10 + $0x1a28] sm:$0xff]  ;;  %v1108_v39 = vld [vmem:[#allocation10 + $0x1220] sm:$0xff] }
 0x22b   :  { %2270 = vmatprep.subr.mxu0 %v669_v30  ;;  %2347 = vmatprep.subr.mxu1 %v925_v31  ;;  %v1364_v29 = vld [vmem:[#allocation10 + $0x1a20] sm:$0xff]  ;;  %v1101_v30 = vld [vmem:[#allocation10 + $0x11e8] sm:$0xff] }
 0x22c   :  { %2271 = vmatpush2.msra.mxu0 %v668_v32  ;;  %2348 = vmatpush2.msra.mxu1 %v924_v33  ;;  %v1357_v31 = vld [vmem:[#allocation10 + $0x19e8] sm:$0xff]  ;;  %v1100_v32 = vld [vmem:[#allocation10 + $0x11e0] sm:$0xff] }
 0x22d   :  { %2272 = vmatprep.subr.mxu0 %v661_v34  ;;  %2349 = vmatprep.subr.mxu1 %v917_v35  ;;  %v1356_v33 = vld [vmem:[#allocation10 + $0x19e0] sm:$0xff]  ;;  %v1093_v34 = vld [vmem:[#allocation10 + $0x11a8] sm:$0xff] }
 0x22e   :  { %2273 = vmatpush2.msra.mxu0 %v660_v36  ;;  %2350 = vmatpush2.msra.mxu1 %v916_v37  ;;  %v1349_v35 = vld [vmem:[#allocation10 + $0x19a8] sm:$0xff]  ;;  %v1092_v36 = vld [vmem:[#allocation10 + $0x11a0] sm:$0xff] }
 0x22f   :  { %2275 = vmatmul.mubr.f32.vlgmr.msra.gmra.mxu0 %v3406_v60  ;;  %2352 = vmatmul.mubr.f32.vlgmr.msra.gmra.mxu1 %v3400_v57  ;;  %v1348_v37 = vld [vmem:[#allocation10 + $0x19a0] sm:$0xff] }
 0x230   :  { %2364 = vmatprep.subr.mxu0 %v1165_v38  ;;  %2441 = vmatprep.subr.mxu1 %v1421_v49  ;;  %v1085_v38 = vld [vmem:[#allocation10 + $0x1168] sm:$0xff] }
 0x231   :  { %2280 = vmatprep.mubr.f32.mxu0 %v3423_v12  ;;  %2357 = vmatprep.mubr.f32.mxu1 %v3436_v23  ;;  %v1341_v49 = vld [vmem:[#allocation10 + $0x1968] sm:$0xff] }
 0x232   :  { %2365 = vmatpush1.msra.mxu0 %v1164_v50  ;;  %2442 = vmatpush1.msra.mxu1 %v1420_v42  ;;  %v1084_v50 = vld [vmem:[#allocation10 + $0x1160] sm:$0xff] }
 0x233   :  { %2366 = vmatprep.subr.mxu0 %v1157_v52  ;;  %2443 = vmatprep.subr.mxu1 %v1413_v53  ;;  %v1340_v42 = vld [vmem:[#allocation10 + $0x1960] sm:$0xff]  ;;  %v1077_v52 = vld [vmem:[#allocation10 + $0x1128] sm:$0xff] }
 0x234   :  { %2367 = vmatpush1.msra.mxu0 %v1156_v54  ;;  %2444 = vmatpush1.msra.mxu1 %v1412_v55  ;;  %v1333_v53 = vld [vmem:[#allocation10 + $0x1928] sm:$0xff]  ;;  %v1076_v54 = vld [vmem:[#allocation10 + $0x1120] sm:$0xff] }
 0x235   :  { %2281 = vmatmul.mubr.f32.gmra.mxu0 %v3428_v16  ;;  %2358 = vmatmul.mubr.f32.gmra.mxu1 %v3443_v28  ;;  %v1332_v55 = vld [vmem:[#allocation10 + $0x1920] sm:$0xff] }
 0x236   :  { %2368 = vmatprep.subr.mxu0 %v1149_v56  ;;  %2445 = vmatprep.subr.mxu1 %v1405_v62  ;;  %v1069_v56 = vld [vmem:[#allocation10 + $0x10e8] sm:$0xff] }
 0x237   :  { %2369 = vmatpush1.msra.mxu0 %v1148_v63  ;;  %2428 = vmatprep.mubr.f32.mxu0 %v3449_v51  ;;  %v1325_v62 = vld [vmem:[#allocation10 + $0x18e8] sm:$0xff]  ;;  %v1068_v63 = vld [vmem:[#allocation10 + $0x10e0] sm:$0xff] }
 0x238   :  { %2446 = vmatpush1.msra.mxu1 %v1404_v1  ;;  %2505 = vmatprep.mubr.f32.mxu1 %v3453_v61  ;;  %v1324_v1 = vld [vmem:[#allocation10 + $0x18e0] sm:$0xff] }
 0x239   :  { %2370 = vmatprep.subr.mxu0 %v1141_v2  ;;  %2447 = vmatprep.subr.mxu1 %v1397_v3  ;;  %v1061_v2 = vld [vmem:[#allocation10 + $0x10a8] sm:$0xff] }
 0x23a   :  { %2371 = vmatpush1.msra.mxu0 %v1140_v5  ;;  %2448 = vmatpush1.msra.mxu1 %v1396_v6  ;;  %v1317_v3 = vld [vmem:[#allocation10 + $0x18a8] sm:$0xff]  ;;  %v1060_v5 = vld [vmem:[#allocation10 + $0x10a0] sm:$0xff] }
 0x23b   :  { %2372 = vmatprep.subr.mxu0 %v1133_v8  ;;  %2449 = vmatprep.subr.mxu1 %v1389_v9  ;;  %v1316_v6 = vld [vmem:[#allocation10 + $0x18a0] sm:$0xff]  ;;  %v1053_v8 = vld [vmem:[#allocation10 + $0x1068] sm:$0xff] }
 0x23c   :  { %2373 = vmatpush1.msra.mxu0 %v1132_v47  ;;  %2450 = vmatpush1.msra.mxu1 %v1388_v10  ;;  %v1309_v9 = vld [vmem:[#allocation10 + $0x1868] sm:$0xff]  ;;  %v1052_v47 = vld [vmem:[#allocation10 + $0x1060] sm:$0xff] }
 0x23d   :  { %2374 = vmatprep.subr.mxu0 %v1125_v14  ;;  %2451 = vmatprep.subr.mxu1 %v1381_v17  ;;  %v1308_v10 = vld [vmem:[#allocation10 + $0x1860] sm:$0xff]  ;;  %v1045_v14 = vld [vmem:[#allocation10 + $0x1028] sm:$0xff] }
 0x23e   :  { %2375 = vmatpush1.msra.mxu0 %v1124_v19  ;;  %2452 = vmatpush1.msra.mxu1 %v1380_v20  ;;  %v1301_v17 = vld [vmem:[#allocation10 + $0x1828] sm:$0xff]  ;;  %v1044_v19 = vld [vmem:[#allocation10 + $0x1020] sm:$0xff] }
 0x23f   :  { %2376 = vmatprep.subr.mxu0 %v1117_v22  ;;  %2453 = vmatprep.subr.mxu1 %v1373_v24  ;;  %v1300_v20 = vld [vmem:[#allocation10 + $0x1820] sm:$0xff]  ;;  %v1293_v22 = vld [vmem:[#allocation10 + $0x17e8] sm:$0xff] }
 0x240   :  { %2377 = vmatpush1.msra.mxu0 %v1116_v45  ;;  %2454 = vmatpush1.msra.mxu1 %v1372_v25  ;;  %v1549_v24 = vld [vmem:[#allocation10 + $0x1fe8] sm:$0xff]  ;;  %v1292_v45 = vld [vmem:[#allocation10 + $0x17e0] sm:$0xff] }
 0x241   :  { %2378 = vmatprep.subr.mxu0 %v1109_v26  ;;  %2455 = vmatprep.subr.mxu1 %v1365_v27  ;;  %v1548_v25 = vld [vmem:[#allocation10 + $0x1fe0] sm:$0xff]  ;;  %v1285_v26 = vld [vmem:[#allocation10 + $0x17a8] sm:$0xff] }
 0x242   :  { %2379 = vmatpush1.msra.mxu0 %v1108_v39  ;;  %2456 = vmatpush1.msra.mxu1 %v1364_v29  ;;  %v1541_v27 = vld [vmem:[#allocation10 + $0x1fa8] sm:$0xff]  ;;  %v1284_v39 = vld [vmem:[#allocation10 + $0x17a0] sm:$0xff] }
 0x243   :  { %2380 = vmatprep.subr.mxu0 %v1101_v30  ;;  %2457 = vmatprep.subr.mxu1 %v1357_v31  ;;  %v1540_v29 = vld [vmem:[#allocation10 + $0x1fa0] sm:$0xff]  ;;  %v1277_v30 = vld [vmem:[#allocation10 + $0x1768] sm:$0xff] }
 0x244   :  { %2381 = vmatpush1.msra.mxu0 %v1100_v32  ;;  %2458 = vmatpush1.msra.mxu1 %v1356_v33  ;;  %v1533_v31 = vld [vmem:[#allocation10 + $0x1f68] sm:$0xff]  ;;  %v1276_v32 = vld [vmem:[#allocation10 + $0x1760] sm:$0xff] }
 0x245   :  { %2382 = vmatprep.subr.mxu0 %v1093_v34  ;;  %2459 = vmatprep.subr.mxu1 %v1349_v35  ;;  %v1532_v33 = vld [vmem:[#allocation10 + $0x1f60] sm:$0xff]  ;;  %v1269_v34 = vld [vmem:[#allocation10 + $0x1728] sm:$0xff] }
 0x246   :  { %2383 = vmatpush1.msra.mxu0 %v1092_v36  ;;  %2460 = vmatpush1.msra.mxu1 %v1348_v37  ;;  %v1525_v35 = vld [vmem:[#allocation10 + $0x1f28] sm:$0xff]  ;;  %v1268_v36 = vld [vmem:[#allocation10 + $0x1720] sm:$0xff] }
 0x247   :  { %2384 = vmatprep.subr.mxu0 %v1085_v38  ;;  %2461 = vmatprep.subr.mxu1 %v1341_v49  ;;  %v1524_v37 = vld [vmem:[#allocation10 + $0x1f20] sm:$0xff]  ;;  %v1261_v38 = vld [vmem:[#allocation10 + $0x16e8] sm:$0xff] }
 0x248   :  { %2385 = vmatpush1.msra.mxu0 %v1084_v50  ;;  %2462 = vmatpush1.msra.mxu1 %v1340_v42  ;;  %v1517_v49 = vld [vmem:[#allocation10 + $0x1ee8] sm:$0xff]  ;;  %v1260_v50 = vld [vmem:[#allocation10 + $0x16e0] sm:$0xff] }
 0x249   :  { %2386 = vmatprep.subr.mxu0 %v1077_v52  ;;  %2463 = vmatprep.subr.mxu1 %v1333_v53  ;;  %v1516_v42 = vld [vmem:[#allocation10 + $0x1ee0] sm:$0xff]  ;;  %v1253_v52 = vld [vmem:[#allocation10 + $0x16a8] sm:$0xff] }
 0x24a   :  { %2387 = vmatpush1.msra.mxu0 %v1076_v54  ;;  %2464 = vmatpush1.msra.mxu1 %v1332_v55  ;;  %v1509_v53 = vld [vmem:[#allocation10 + $0x1ea8] sm:$0xff]  ;;  %v1252_v54 = vld [vmem:[#allocation10 + $0x16a0] sm:$0xff] }
 0x24b   :  { %2388 = vmatprep.subr.mxu0 %v1069_v56  ;;  %2465 = vmatprep.subr.mxu1 %v1325_v62  ;;  %v1508_v55 = vld [vmem:[#allocation10 + $0x1ea0] sm:$0xff]  ;;  %v1245_v56 = vld [vmem:[#allocation10 + $0x1668] sm:$0xff] }
 0x24c   :  { %2389 = vmatpush1.msra.mxu0 %v1068_v63  ;;  %2466 = vmatpush1.msra.mxu1 %v1324_v1  ;;  %v1501_v62 = vld [vmem:[#allocation10 + $0x1e68] sm:$0xff]  ;;  %v1244_v63 = vld [vmem:[#allocation10 + $0x1660] sm:$0xff] }
 0x24d   :  { %2390 = vmatprep.subr.mxu0 %v1061_v2  ;;  %2467 = vmatprep.subr.mxu1 %v1317_v3  ;;  %v1500_v1 = vld [vmem:[#allocation10 + $0x1e60] sm:$0xff]  ;;  %v1237_v2 = vld [vmem:[#allocation10 + $0x1628] sm:$0xff] }
 0x24e   :  { %2391 = vmatpush1.msra.mxu0 %v1060_v5  ;;  %2468 = vmatpush1.msra.mxu1 %v1316_v6  ;;  %v1493_v3 = vld [vmem:[#allocation10 + $0x1e28] sm:$0xff]  ;;  %v1236_v5 = vld [vmem:[#allocation10 + $0x1620] sm:$0xff] }
 0x24f   :  { %2392 = vmatprep.subr.mxu0 %v1053_v8  ;;  %2469 = vmatprep.subr.mxu1 %v1309_v9  ;;  %v1492_v6 = vld [vmem:[#allocation10 + $0x1e20] sm:$0xff]  ;;  %v1229_v8 = vld [vmem:[#allocation10 + $0x15e8] sm:$0xff] }
 0x250   :  { %2393 = vmatpush1.msra.mxu0 %v1052_v47  ;;  %2470 = vmatpush1.msra.mxu1 %v1308_v10  ;;  %v1485_v9 = vld [vmem:[#allocation10 + $0x1de8] sm:$0xff]  ;;  %v1228_v47 = vld [vmem:[#allocation10 + $0x15e0] sm:$0xff] }
 0x251   :  { %2394 = vmatprep.subr.mxu0 %v1045_v14  ;;  %2471 = vmatprep.subr.mxu1 %v1301_v17  ;;  %v1484_v10 = vld [vmem:[#allocation10 + $0x1de0] sm:$0xff]  ;;  %v1221_v14 = vld [vmem:[#allocation10 + $0x15a8] sm:$0xff] }
 0x252   :  { %2395 = vmatpush1.msra.mxu0 %v1044_v19  ;;  %2472 = vmatpush1.msra.mxu1 %v1300_v20  ;;  %v1477_v17 = vld [vmem:[#allocation10 + $0x1da8] sm:$0xff]  ;;  %v1220_v19 = vld [vmem:[#allocation10 + $0x15a0] sm:$0xff] }
 0x253   :  { %2396 = vmatprep.subr.mxu0 %v1293_v22  ;;  %2473 = vmatprep.subr.mxu1 %v1549_v24  ;;  %v1476_v20 = vld [vmem:[#allocation10 + $0x1da0] sm:$0xff]  ;;  %v1213_v22 = vld [vmem:[#allocation10 + $0x1568] sm:$0xff] }
 0x254   :  { %2397 = vmatpush2.msra.mxu0 %v1292_v45  ;;  %2474 = vmatpush2.msra.mxu1 %v1548_v25  ;;  %v1469_v24 = vld [vmem:[#allocation10 + $0x1d68] sm:$0xff]  ;;  %v1212_v45 = vld [vmem:[#allocation10 + $0x1560] sm:$0xff] }
 0x255   :  { %2398 = vmatprep.subr.mxu0 %v1285_v26  ;;  %2475 = vmatprep.subr.mxu1 %v1541_v27  ;;  %v1468_v25 = vld [vmem:[#allocation10 + $0x1d60] sm:$0xff]  ;;  %v1205_v26 = vld [vmem:[#allocation10 + $0x1528] sm:$0xff] }
 0x256   :  { %2399 = vmatpush2.msra.mxu0 %v1284_v39  ;;  %2476 = vmatpush2.msra.mxu1 %v1540_v29  ;;  %v1461_v27 = vld [vmem:[#allocation10 + $0x1d28] sm:$0xff]  ;;  %v1204_v39 = vld [vmem:[#allocation10 + $0x1520] sm:$0xff] }
 0x257   :  { %2400 = vmatprep.subr.mxu0 %v1277_v30  ;;  %2477 = vmatprep.subr.mxu1 %v1533_v31  ;;  %v1460_v29 = vld [vmem:[#allocation10 + $0x1d20] sm:$0xff]  ;;  %v1197_v30 = vld [vmem:[#allocation10 + $0x14e8] sm:$0xff] }
 0x258   :  { %2401 = vmatpush2.msra.mxu0 %v1276_v32  ;;  %2478 = vmatpush2.msra.mxu1 %v1532_v33  ;;  %v1453_v31 = vld [vmem:[#allocation10 + $0x1ce8] sm:$0xff]  ;;  %v1196_v32 = vld [vmem:[#allocation10 + $0x14e0] sm:$0xff] }
 0x259   :  { %2402 = vmatprep.subr.mxu0 %v1269_v34  ;;  %2479 = vmatprep.subr.mxu1 %v1525_v35  ;;  %v1452_v33 = vld [vmem:[#allocation10 + $0x1ce0] sm:$0xff]  ;;  %v1189_v34 = vld [vmem:[#allocation10 + $0x14a8] sm:$0xff] }
 0x25a   :  { %2403 = vmatpush2.msra.mxu0 %v1268_v36  ;;  %2480 = vmatpush2.msra.mxu1 %v1524_v37  ;;  %v1445_v35 = vld [vmem:[#allocation10 + $0x1ca8] sm:$0xff]  ;;  %v1188_v36 = vld [vmem:[#allocation10 + $0x14a0] sm:$0xff] }
 0x25b   :  { %2404 = vmatprep.subr.mxu0 %v1261_v38  ;;  %2481 = vmatprep.subr.mxu1 %v1517_v49  ;;  %v1444_v37 = vld [vmem:[#allocation10 + $0x1ca0] sm:$0xff]  ;;  %v1181_v38 = vld [vmem:[#allocation10 + $0x1468] sm:$0xff] }
 0x25c   :  { %2405 = vmatpush2.msra.mxu0 %v1260_v50  ;;  %2482 = vmatpush2.msra.mxu1 %v1516_v42  ;;  %v1437_v49 = vld [vmem:[#allocation10 + $0x1c68] sm:$0xff]  ;;  %v1180_v50 = vld [vmem:[#allocation10 + $0x1460] sm:$0xff] }
 0x25d   :  { %2406 = vmatprep.subr.mxu0 %v1253_v52  ;;  %2483 = vmatprep.subr.mxu1 %v1509_v53  ;;  %v1436_v42 = vld [vmem:[#allocation10 + $0x1c60] sm:$0xff]  ;;  %v1173_v52 = vld [vmem:[#allocation10 + $0x1428] sm:$0xff] }
 0x25e   :  { %2407 = vmatpush2.msra.mxu0 %v1252_v54  ;;  %2484 = vmatpush2.msra.mxu1 %v1508_v55  ;;  %v1429_v53 = vld [vmem:[#allocation10 + $0x1c28] sm:$0xff]  ;;  %v1172_v54 = vld [vmem:[#allocation10 + $0x1420] sm:$0xff] }
 0x25f   :  { %2408 = vmatprep.subr.mxu0 %v1245_v56  ;;  %2485 = vmatprep.subr.mxu1 %v1501_v62  ;;  %v1428_v55 = vld [vmem:[#allocation10 + $0x1c20] sm:$0xff]  ;;  %v655_v56 = vld [vmem:[#allocation10 + $0x3f8] sm:$0xff] }
 0x260   :  { %2409 = vmatpush2.msra.mxu0 %v1244_v63  ;;  %2486 = vmatpush2.msra.mxu1 %v1500_v1  ;;  %v911_v62 = vld [vmem:[#allocation10 + $0xbf8] sm:$0xff]  ;;  %v654_v63 = vld [vmem:[#allocation10 + $0x3f0] sm:$0xff] }
 0x261   :  { %2410 = vmatprep.subr.mxu0 %v1237_v2  ;;  %2487 = vmatprep.subr.mxu1 %v1493_v3  ;;  %v910_v1 = vld [vmem:[#allocation10 + $0xbf0] sm:$0xff]  ;;  %v647_v2 = vld [vmem:[#allocation10 + $0x3b8] sm:$0xff] }
 0x262   :  { %2411 = vmatpush2.msra.mxu0 %v1236_v5  ;;  %2488 = vmatpush2.msra.mxu1 %v1492_v6  ;;  %v903_v3 = vld [vmem:[#allocation10 + $0xbb8] sm:$0xff]  ;;  %v646_v5 = vld [vmem:[#allocation10 + $0x3b0] sm:$0xff] }
 0x263   :  { %2412 = vmatprep.subr.mxu0 %v1229_v8  ;;  %2489 = vmatprep.subr.mxu1 %v1485_v9  ;;  %v902_v6 = vld [vmem:[#allocation10 + $0xbb0] sm:$0xff]  ;;  %v639_v8 = vld [vmem:[#allocation10 + $0x378] sm:$0xff] }
 0x264   :  { %2413 = vmatpush2.msra.mxu0 %v1228_v47  ;;  %2490 = vmatpush2.msra.mxu1 %v1484_v10  ;;  %v895_v9 = vld [vmem:[#allocation10 + $0xb78] sm:$0xff]  ;;  %v638_v47 = vld [vmem:[#allocation10 + $0x370] sm:$0xff] }
 0x265   :  { %2414 = vmatprep.subr.mxu0 %v1221_v14  ;;  %2491 = vmatprep.subr.mxu1 %v1477_v17  ;;  %v894_v10 = vld [vmem:[#allocation10 + $0xb70] sm:$0xff]  ;;  %v631_v14 = vld [vmem:[#allocation10 + $0x338] sm:$0xff] }
 0x266   :  { %2415 = vmatpush2.msra.mxu0 %v1220_v19  ;;  %2492 = vmatpush2.msra.mxu1 %v1476_v20  ;;  %v887_v17 = vld [vmem:[#allocation10 + $0xb38] sm:$0xff]  ;;  %v630_v19 = vld [vmem:[#allocation10 + $0x330] sm:$0xff] }
 0x267   :  { %2416 = vmatprep.subr.mxu0 %v1213_v22  ;;  %2493 = vmatprep.subr.mxu1 %v1469_v24  ;;  %v886_v20 = vld [vmem:[#allocation10 + $0xb30] sm:$0xff]  ;;  %v623_v22 = vld [vmem:[#allocation10 + $0x2f8] sm:$0xff] }
 0x268   :  { %2417 = vmatpush2.msra.mxu0 %v1212_v45  ;;  %2494 = vmatpush2.msra.mxu1 %v1468_v25  ;;  %v879_v24 = vld [vmem:[#allocation10 + $0xaf8] sm:$0xff]  ;;  %v622_v45 = vld [vmem:[#allocation10 + $0x2f0] sm:$0xff] }
 0x269   :  { %2418 = vmatprep.subr.mxu0 %v1205_v26  ;;  %2495 = vmatprep.subr.mxu1 %v1461_v27  ;;  %v878_v25 = vld [vmem:[#allocation10 + $0xaf0] sm:$0xff]  ;;  %v615_v26 = vld [vmem:[#allocation10 + $0x2b8] sm:$0xff] }
 0x26a   :  { %2419 = vmatpush2.msra.mxu0 %v1204_v39  ;;  %2496 = vmatpush2.msra.mxu1 %v1460_v29  ;;  %v871_v27 = vld [vmem:[#allocation10 + $0xab8] sm:$0xff]  ;;  %v614_v39 = vld [vmem:[#allocation10 + $0x2b0] sm:$0xff] }
 0x26b   :  { %2420 = vmatprep.subr.mxu0 %v1197_v30  ;;  %2497 = vmatprep.subr.mxu1 %v1453_v31  ;;  %v870_v29 = vld [vmem:[#allocation10 + $0xab0] sm:$0xff]  ;;  %v863_v30 = vld [vmem:[#allocation10 + $0xa78] sm:$0xff] }
 0x26c   :  { %2421 = vmatpush2.msra.mxu0 %v1196_v32  ;;  %2498 = vmatpush2.msra.mxu1 %v1452_v33  ;;  %v862_v31 = vld [vmem:[#allocation10 + $0xa70] sm:$0xff]  ;;  %v599_v32 = vld [vmem:[#allocation10 + $0x238] sm:$0xff] }
 0x26d   :  { %2422 = vmatprep.subr.mxu0 %v1189_v34  ;;  %2499 = vmatprep.subr.mxu1 %v1445_v35  ;;  %v855_v33 = vld [vmem:[#allocation10 + $0xa38] sm:$0xff]  ;;  %v598_v34 = vld [vmem:[#allocation10 + $0x230] sm:$0xff] }
 0x26e   :  { %2423 = vmatpush2.msra.mxu0 %v1188_v36  ;;  %2500 = vmatpush2.msra.mxu1 %v1444_v37  ;;  %v854_v35 = vld [vmem:[#allocation10 + $0xa30] sm:$0xff]  ;;  %v591_v36 = vld [vmem:[#allocation10 + $0x1f8] sm:$0xff] }
 0x26f   :  { %2424 = vmatprep.subr.mxu0 %v1181_v38  ;;  %2501 = vmatprep.subr.mxu1 %v1437_v49  ;;  %v847_v37 = vld [vmem:[#allocation10 + $0x9f8] sm:$0xff]  ;;  %v590_v38 = vld [vmem:[#allocation10 + $0x1f0] sm:$0xff] }
 0x270   :  { %2425 = vmatpush2.msra.mxu0 %v1180_v50  ;;  %2502 = vmatpush2.msra.mxu1 %v1436_v42  ;;  %v846_v49 = vld [vmem:[#allocation10 + $0x9f0] sm:$0xff]  ;;  %v583_v50 = vld [vmem:[#allocation10 + $0x1b8] sm:$0xff] }
 0x271   :  { %2426 = vmatprep.subr.mxu0 %v1173_v52  ;;  %2503 = vmatprep.subr.mxu1 %v1429_v53  ;;  %v839_v42 = vld [vmem:[#allocation10 + $0x9b8] sm:$0xff]  ;;  %v582_v52 = vld [vmem:[#allocation10 + $0x1b0] sm:$0xff] }
 0x272   :  { %2427 = vmatpush2.msra.mxu0 %v1172_v54  ;;  %2504 = vmatpush2.msra.mxu1 %v1428_v55  ;;  %v838_v53 = vld [vmem:[#allocation10 + $0x9b0] sm:$0xff]  ;;  %v575_v54 = vld [vmem:[#allocation10 + $0x178] sm:$0xff] }
 0x273   :  { %2429 = vmatmul.mubr.f32.vlgmr.msra.gmra.mxu0 %v3458_v4  ;;  %2506 = vmatmul.mubr.f32.vlgmr.msra.gmra.mxu1 %v3455_v0  ;;  %v831_v55 = vld [vmem:[#allocation10 + $0x978] sm:$0xff] }
 0x274   :  { %2518 = vmatprep.subr.mxu0 %v655_v56  ;;  %2595 = vmatprep.subr.mxu1 %v911_v62  ;;  %v574_v56 = vld [vmem:[#allocation10 + $0x170] sm:$0xff] }
 0x275   :  { %2434 = vmatprep.mubr.f32.mxu0 %v3461_v46  ;;  %2511 = vmatprep.mubr.f32.mxu1 %v3463_v13  ;;  %v830_v62 = vld [vmem:[#allocation10 + $0x970] sm:$0xff] }
 0x276   :  { %2519 = vmatpush1.msra.mxu0 %v654_v63  ;;  %2596 = vmatpush1.msra.mxu1 %v910_v1  ;;  %v567_v63 = vld [vmem:[#allocation10 + $0x138] sm:$0xff] }
 0x277   :  { %2520 = vmatprep.subr.mxu0 %v647_v2  ;;  %2597 = vmatprep.subr.mxu1 %v903_v3  ;;  %v823_v1 = vld [vmem:[#allocation10 + $0x938] sm:$0xff]  ;;  %v566_v2 = vld [vmem:[#allocation10 + $0x130] sm:$0xff] }
 0x278   :  { %2521 = vmatpush1.msra.mxu0 %v646_v5  ;;  %2598 = vmatpush1.msra.mxu1 %v902_v6  ;;  %v822_v3 = vld [vmem:[#allocation10 + $0x930] sm:$0xff]  ;;  %v559_v5 = vld [vmem:[#allocation10 + $0xf8] sm:$0xff] }
 0x279   :  { %2435 = vmatmul.mubr.f32.gmra.mxu0 %v3467_v48  ;;  %2512 = vmatmul.mubr.f32.gmra.mxu1 %v3469_v18  ;;  %v815_v6 = vld [vmem:[#allocation10 + $0x8f8] sm:$0xff] }
 0x27a   :  { %2522 = vmatprep.subr.mxu0 %v639_v8  ;;  %2599 = vmatprep.subr.mxu1 %v895_v9  ;;  %v558_v8 = vld [vmem:[#allocation10 + $0xf0] sm:$0xff] }
 0x27b   :  { %2523 = vmatpush1.msra.mxu0 %v638_v47  ;;  %2582 = vmatprep.mubr.f32.mxu0 %v3402_v58  ;;  %v607_v58 = vld [vmem:[#allocation10 + $0x278] sm:$0xff]  ;;  %v814_v9 = vld [vmem:[#allocation10 + $0x8f0] sm:$0xff] }
 0x27c   :  { %2600 = vmatpush1.msra.mxu1 %v894_v10  ;;  %2659 = vmatprep.mubr.f32.mxu1 %v3404_v59  ;;  %v606_v59 = vld [vmem:[#allocation10 + $0x270] sm:$0xff]  ;;  %v551_v47 = vld [vmem:[#allocation10 + $0xb8] sm:$0xff] }
 0x27d   :  { %2524 = vmatprep.subr.mxu0 %v631_v14  ;;  %2601 = vmatprep.subr.mxu1 %v887_v17  ;;  %v807_v10 = vld [vmem:[#allocation10 + $0x8b8] sm:$0xff]  ;;  %v550_v14 = vld [vmem:[#allocation10 + $0xb0] sm:$0xff] }
 0x27e   :  { %2525 = vmatpush1.msra.mxu0 %v630_v19  ;;  %2602 = vmatpush1.msra.mxu1 %v886_v20  ;;  %v806_v17 = vld [vmem:[#allocation10 + $0x8b0] sm:$0xff]  ;;  %v543_v19 = vld [vmem:[#allocation10 + $0x78] sm:$0xff] }
 0x27f   :  { %2526 = vmatprep.subr.mxu0 %v623_v22  ;;  %2603 = vmatprep.subr.mxu1 %v879_v24  ;;  %v799_v20 = vld [vmem:[#allocation10 + $0x878] sm:$0xff]  ;;  %v542_v22 = vld [vmem:[#allocation10 + $0x70] sm:$0xff] }
 0x280   :  { %2527 = vmatpush1.msra.mxu0 %v622_v45  ;;  %2604 = vmatpush1.msra.mxu1 %v878_v25  ;;  %v798_v24 = vld [vmem:[#allocation10 + $0x870] sm:$0xff]  ;;  %v535_v45 = vld [vmem:[#allocation10 + $0x38] sm:$0xff] }
 0x281   :  { %2528 = vmatprep.subr.mxu0 %v615_v26  ;;  %2605 = vmatprep.subr.mxu1 %v871_v27  ;;  %v791_v25 = vld [vmem:[#allocation10 + $0x838] sm:$0xff]  ;;  %v534_v26 = vld [vmem:[#allocation10 + $0x30] sm:$0xff] }
 0x282   :  { %2529 = vmatpush1.msra.mxu0 %v614_v39  ;;  %2606 = vmatpush1.msra.mxu1 %v870_v29  ;;  %v790_v27 = vld [vmem:[#allocation10 + $0x830] sm:$0xff]  ;;  %v783_v39 = vld [vmem:[#allocation10 + $0x7f8] sm:$0xff] }
 0x283   :  { %2530 = vmatprep.subr.mxu0 %v607_v58  ;;  %2607 = vmatprep.subr.mxu1 %v863_v30  ;;  %v1039_v29 = vld [vmem:[#allocation10 + $0xff8] sm:$0xff]  ;;  %v782_v58 = vld [vmem:[#allocation10 + $0x7f0] sm:$0xff] }
 0x284   :  { %2531 = vmatpush1.msra.mxu0 %v606_v59  ;;  %2608 = vmatpush1.msra.mxu1 %v862_v31  ;;  %v1038_v30 = vld [vmem:[#allocation10 + $0xff0] sm:$0xff]  ;;  %v775_v59 = vld [vmem:[#allocation10 + $0x7b8] sm:$0xff] }
 0x285   :  { %2532 = vmatprep.subr.mxu0 %v599_v32  ;;  %2609 = vmatprep.subr.mxu1 %v855_v33  ;;  %v1031_v31 = vld [vmem:[#allocation10 + $0xfb8] sm:$0xff]  ;;  %v774_v32 = vld [vmem:[#allocation10 + $0x7b0] sm:$0xff] }
 0x286   :  { %2533 = vmatpush1.msra.mxu0 %v598_v34  ;;  %2610 = vmatpush1.msra.mxu1 %v854_v35  ;;  %v1030_v33 = vld [vmem:[#allocation10 + $0xfb0] sm:$0xff]  ;;  %v767_v34 = vld [vmem:[#allocation10 + $0x778] sm:$0xff] }
 0x287   :  { %2534 = vmatprep.subr.mxu0 %v591_v36  ;;  %2611 = vmatprep.subr.mxu1 %v847_v37  ;;  %v1023_v35 = vld [vmem:[#allocation10 + $0xf78] sm:$0xff]  ;;  %v766_v36 = vld [vmem:[#allocation10 + $0x770] sm:$0xff] }
 0x288   :  { %2535 = vmatpush1.msra.mxu0 %v590_v38  ;;  %2612 = vmatpush1.msra.mxu1 %v846_v49  ;;  %v1022_v37 = vld [vmem:[#allocation10 + $0xf70] sm:$0xff]  ;;  %v759_v38 = vld [vmem:[#allocation10 + $0x738] sm:$0xff] }
 0x289   :  { %2536 = vmatprep.subr.mxu0 %v583_v50  ;;  %2613 = vmatprep.subr.mxu1 %v839_v42  ;;  %v1015_v49 = vld [vmem:[#allocation10 + $0xf38] sm:$0xff]  ;;  %v758_v50 = vld [vmem:[#allocation10 + $0x730] sm:$0xff] }
 0x28a   :  { %2537 = vmatpush1.msra.mxu0 %v582_v52  ;;  %2614 = vmatpush1.msra.mxu1 %v838_v53  ;;  %v1014_v42 = vld [vmem:[#allocation10 + $0xf30] sm:$0xff]  ;;  %v751_v52 = vld [vmem:[#allocation10 + $0x6f8] sm:$0xff] }
 0x28b   :  { %2538 = vmatprep.subr.mxu0 %v575_v54  ;;  %2615 = vmatprep.subr.mxu1 %v831_v55  ;;  %v1007_v53 = vld [vmem:[#allocation10 + $0xef8] sm:$0xff]  ;;  %v750_v54 = vld [vmem:[#allocation10 + $0x6f0] sm:$0xff] }
 0x28c   :  { %2539 = vmatpush1.msra.mxu0 %v574_v56  ;;  %2616 = vmatpush1.msra.mxu1 %v830_v62  ;;  %v1006_v55 = vld [vmem:[#allocation10 + $0xef0] sm:$0xff]  ;;  %v743_v56 = vld [vmem:[#allocation10 + $0x6b8] sm:$0xff] }
 0x28d   :  { %2540 = vmatprep.subr.mxu0 %v567_v63  ;;  %2617 = vmatprep.subr.mxu1 %v823_v1  ;;  %v999_v62 = vld [vmem:[#allocation10 + $0xeb8] sm:$0xff]  ;;  %v742_v63 = vld [vmem:[#allocation10 + $0x6b0] sm:$0xff] }
 0x28e   :  { %2541 = vmatpush1.msra.mxu0 %v566_v2  ;;  %2618 = vmatpush1.msra.mxu1 %v822_v3  ;;  %v998_v1 = vld [vmem:[#allocation10 + $0xeb0] sm:$0xff]  ;;  %v735_v2 = vld [vmem:[#allocation10 + $0x678] sm:$0xff] }
 0x28f   :  { %2542 = vmatprep.subr.mxu0 %v559_v5  ;;  %2619 = vmatprep.subr.mxu1 %v815_v6  ;;  %v991_v3 = vld [vmem:[#allocation10 + $0xe78] sm:$0xff]  ;;  %v734_v5 = vld [vmem:[#allocation10 + $0x670] sm:$0xff] }
 0x290   :  { %2543 = vmatpush1.msra.mxu0 %v558_v8  ;;  %2620 = vmatpush1.msra.mxu1 %v814_v9  ;;  %v990_v6 = vld [vmem:[#allocation10 + $0xe70] sm:$0xff]  ;;  %v727_v8 = vld [vmem:[#allocation10 + $0x638] sm:$0xff] }
 0x291   :  { %2544 = vmatprep.subr.mxu0 %v551_v47  ;;  %2621 = vmatprep.subr.mxu1 %v807_v10  ;;  %v983_v9 = vld [vmem:[#allocation10 + $0xe38] sm:$0xff]  ;;  %v726_v47 = vld [vmem:[#allocation10 + $0x630] sm:$0xff] }
 0x292   :  { %2545 = vmatpush1.msra.mxu0 %v550_v14  ;;  %2622 = vmatpush1.msra.mxu1 %v806_v17  ;;  %v982_v10 = vld [vmem:[#allocation10 + $0xe30] sm:$0xff]  ;;  %v719_v14 = vld [vmem:[#allocation10 + $0x5f8] sm:$0xff] }
 0x293   :  { %2546 = vmatprep.subr.mxu0 %v543_v19  ;;  %2623 = vmatprep.subr.mxu1 %v799_v20  ;;  %v975_v17 = vld [vmem:[#allocation10 + $0xdf8] sm:$0xff]  ;;  %v718_v19 = vld [vmem:[#allocation10 + $0x5f0] sm:$0xff] }
 0x294   :  { %2547 = vmatpush1.msra.mxu0 %v542_v22  ;;  %2624 = vmatpush1.msra.mxu1 %v798_v24  ;;  %v974_v20 = vld [vmem:[#allocation10 + $0xdf0] sm:$0xff]  ;;  %v711_v22 = vld [vmem:[#allocation10 + $0x5b8] sm:$0xff] }
 0x295   :  { %2548 = vmatprep.subr.mxu0 %v535_v45  ;;  %2625 = vmatprep.subr.mxu1 %v791_v25  ;;  %v967_v24 = vld [vmem:[#allocation10 + $0xdb8] sm:$0xff]  ;;  %v710_v45 = vld [vmem:[#allocation10 + $0x5b0] sm:$0xff] }
 0x296   :  { %2549 = vmatpush1.msra.mxu0 %v534_v26  ;;  %2626 = vmatpush1.msra.mxu1 %v790_v27  ;;  %v966_v25 = vld [vmem:[#allocation10 + $0xdb0] sm:$0xff]  ;;  %v703_v26 = vld [vmem:[#allocation10 + $0x578] sm:$0xff] }
 0x297   :  { %2550 = vmatprep.subr.mxu0 %v783_v39  ;;  %2627 = vmatprep.subr.mxu1 %v1039_v29  ;;  %v959_v27 = vld [vmem:[#allocation10 + $0xd78] sm:$0xff]  ;;  %v702_v39 = vld [vmem:[#allocation10 + $0x570] sm:$0xff] }
 0x298   :  { %2551 = vmatpush2.msra.mxu0 %v782_v58  ;;  %2628 = vmatpush2.msra.mxu1 %v1038_v30  ;;  %v958_v29 = vld [vmem:[#allocation10 + $0xd70] sm:$0xff]  ;;  %v695_v58 = vld [vmem:[#allocation10 + $0x538] sm:$0xff] }
 0x299   :  { %2552 = vmatprep.subr.mxu0 %v775_v59  ;;  %2629 = vmatprep.subr.mxu1 %v1031_v31  ;;  %v951_v30 = vld [vmem:[#allocation10 + $0xd38] sm:$0xff]  ;;  %v694_v59 = vld [vmem:[#allocation10 + $0x530] sm:$0xff] }
 0x29a   :  { %2553 = vmatpush2.msra.mxu0 %v774_v32  ;;  %2630 = vmatpush2.msra.mxu1 %v1030_v33  ;;  %v950_v31 = vld [vmem:[#allocation10 + $0xd30] sm:$0xff]  ;;  %v687_v32 = vld [vmem:[#allocation10 + $0x4f8] sm:$0xff] }
 0x29b   :  { %2554 = vmatprep.subr.mxu0 %v767_v34  ;;  %2631 = vmatprep.subr.mxu1 %v1023_v35  ;;  %v943_v33 = vld [vmem:[#allocation10 + $0xcf8] sm:$0xff]  ;;  %v686_v34 = vld [vmem:[#allocation10 + $0x4f0] sm:$0xff] }
 0x29c   :  { %2555 = vmatpush2.msra.mxu0 %v766_v36  ;;  %2632 = vmatpush2.msra.mxu1 %v1022_v37  ;;  %v942_v35 = vld [vmem:[#allocation10 + $0xcf0] sm:$0xff]  ;;  %v679_v36 = vld [vmem:[#allocation10 + $0x4b8] sm:$0xff] }
 0x29d   :  { %2556 = vmatprep.subr.mxu0 %v759_v38  ;;  %2633 = vmatprep.subr.mxu1 %v1015_v49  ;;  %v935_v37 = vld [vmem:[#allocation10 + $0xcb8] sm:$0xff]  ;;  %v678_v38 = vld [vmem:[#allocation10 + $0x4b0] sm:$0xff] }
 0x29e   :  { %2557 = vmatpush2.msra.mxu0 %v758_v50  ;;  %2634 = vmatpush2.msra.mxu1 %v1014_v42  ;;  %v934_v49 = vld [vmem:[#allocation10 + $0xcb0] sm:$0xff]  ;;  %v671_v50 = vld [vmem:[#allocation10 + $0x478] sm:$0xff] }
 0x29f   :  { %2558 = vmatprep.subr.mxu0 %v751_v52  ;;  %2635 = vmatprep.subr.mxu1 %v1007_v53  ;;  %v927_v42 = vld [vmem:[#allocation10 + $0xc78] sm:$0xff]  ;;  %v670_v52 = vld [vmem:[#allocation10 + $0x470] sm:$0xff] }
 0x2a0   :  { %2559 = vmatpush2.msra.mxu0 %v750_v54  ;;  %2636 = vmatpush2.msra.mxu1 %v1006_v55  ;;  %v926_v53 = vld [vmem:[#allocation10 + $0xc70] sm:$0xff]  ;;  %v663_v54 = vld [vmem:[#allocation10 + $0x438] sm:$0xff] }
 0x2a1   :  { %2560 = vmatprep.subr.mxu0 %v743_v56  ;;  %2637 = vmatprep.subr.mxu1 %v999_v62  ;;  %v919_v55 = vld [vmem:[#allocation10 + $0xc38] sm:$0xff]  ;;  %v662_v56 = vld [vmem:[#allocation10 + $0x430] sm:$0xff] }
 0x2a2   :  { %2561 = vmatpush2.msra.mxu0 %v742_v63  ;;  %2638 = vmatpush2.msra.mxu1 %v998_v1  ;;  %v918_v62 = vld [vmem:[#allocation10 + $0xc30] sm:$0xff]  ;;  %v1167_v63 = vld [vmem:[#allocation10 + $0x13f8] sm:$0xff] }
 0x2a3   :  { %2562 = vmatprep.subr.mxu0 %v735_v2  ;;  %2639 = vmatprep.subr.mxu1 %v991_v3  ;;  %v1423_v1 = vld [vmem:[#allocation10 + $0x1bf8] sm:$0xff]  ;;  %v1166_v2 = vld [vmem:[#allocation10 + $0x13f0] sm:$0xff] }
 0x2a4   :  { %2563 = vmatpush2.msra.mxu0 %v734_v5  ;;  %2640 = vmatpush2.msra.mxu1 %v990_v6  ;;  %v1422_v3 = vld [vmem:[#allocation10 + $0x1bf0] sm:$0xff]  ;;  %v1159_v5 = vld [vmem:[#allocation10 + $0x13b8] sm:$0xff] }
 0x2a5   :  { %2564 = vmatprep.subr.mxu0 %v727_v8  ;;  %2641 = vmatprep.subr.mxu1 %v983_v9  ;;  %v1415_v6 = vld [vmem:[#allocation10 + $0x1bb8] sm:$0xff]  ;;  %v1158_v8 = vld [vmem:[#allocation10 + $0x13b0] sm:$0xff] }
 0x2a6   :  { %2565 = vmatpush2.msra.mxu0 %v726_v47  ;;  %2642 = vmatpush2.msra.mxu1 %v982_v10  ;;  %v1414_v9 = vld [vmem:[#allocation10 + $0x1bb0] sm:$0xff]  ;;  %v1151_v47 = vld [vmem:[#allocation10 + $0x1378] sm:$0xff] }
 0x2a7   :  { %2566 = vmatprep.subr.mxu0 %v719_v14  ;;  %2643 = vmatprep.subr.mxu1 %v975_v17  ;;  %v1406_v10 = vld [vmem:[#allocation10 + $0x1b70] sm:$0xff] }
 0x2a8   :  { %2567 = vmatpush2.msra.mxu0 %v718_v19  ;;  %2644 = vmatpush2.msra.mxu1 %v974_v20  ;;  %v1142_v14 = vld [vmem:[#allocation10 + $0x1330] sm:$0xff]  ;;  %v1135_v19 = vld [vmem:[#allocation10 + $0x12f8] sm:$0xff] }
 0x2a9   :  { %2568 = vmatprep.subr.mxu0 %v711_v22  ;;  %2645 = vmatprep.subr.mxu1 %v967_v24  ;;  %v1398_v17 = vld [vmem:[#allocation10 + $0x1b30] sm:$0xff]  ;;  %v1391_v20 = vld [vmem:[#allocation10 + $0x1af8] sm:$0xff] }
 0x2aa   :  { %2569 = vmatpush2.msra.mxu0 %v710_v45  ;;  %2646 = vmatpush2.msra.mxu1 %v966_v25  ;;  %v1390_v22 = vld [vmem:[#allocation10 + $0x1af0] sm:$0xff]  ;;  %v1383_v24 = vld [vmem:[#allocation10 + $0x1ab8] sm:$0xff] }
 0x2ab   :  { %2570 = vmatprep.subr.mxu0 %v703_v26  ;;  %2647 = vmatprep.subr.mxu1 %v959_v27  ;;  %v1126_v45 = vld [vmem:[#allocation10 + $0x12b0] sm:$0xff]  ;;  %v1375_v26 = vld [vmem:[#allocation10 + $0x1a78] sm:$0xff] }
 0x2ac   :  { %2571 = vmatpush2.msra.mxu0 %v702_v39  ;;  %2648 = vmatpush2.msra.mxu1 %v958_v29  ;;  %v1382_v25 = vld [vmem:[#allocation10 + $0x1ab0] sm:$0xff]  ;;  %v1111_v39 = vld [vmem:[#allocation10 + $0x1238] sm:$0xff] }
 0x2ad   :  { %2572 = vmatprep.subr.mxu0 %v695_v58  ;;  %2649 = vmatprep.subr.mxu1 %v951_v30  ;;  %v1374_v27 = vld [vmem:[#allocation10 + $0x1a70] sm:$0xff]  ;;  %v1367_v29 = vld [vmem:[#allocation10 + $0x1a38] sm:$0xff] }
 0x2ae   :  { %2573 = vmatpush2.msra.mxu0 %v694_v59  ;;  %2650 = vmatpush2.msra.mxu1 %v950_v31  ;;  %v1110_v58 = vld [vmem:[#allocation10 + $0x1230] sm:$0xff]  ;;  %v1103_v59 = vld [vmem:[#allocation10 + $0x11f8] sm:$0xff] }
 0x2af   :  { %2574 = vmatprep.subr.mxu0 %v687_v32  ;;  %2651 = vmatprep.subr.mxu1 %v943_v33  ;;  %v1366_v30 = vld [vmem:[#allocation10 + $0x1a30] sm:$0xff]  ;;  %v1359_v31 = vld [vmem:[#allocation10 + $0x19f8] sm:$0xff] }
 0x2b0   :  { %2575 = vmatpush2.msra.mxu0 %v686_v34  ;;  %2652 = vmatpush2.msra.mxu1 %v942_v35  ;;  %v1102_v32 = vld [vmem:[#allocation10 + $0x11f0] sm:$0xff]  ;;  %v1095_v34 = vld [vmem:[#allocation10 + $0x11b8] sm:$0xff] }
 0x2b1   :  { %2576 = vmatprep.subr.mxu0 %v679_v36  ;;  %2653 = vmatprep.subr.mxu1 %v935_v37  ;;  %v1358_v33 = vld [vmem:[#allocation10 + $0x19f0] sm:$0xff]  ;;  %v1351_v35 = vld [vmem:[#allocation10 + $0x19b8] sm:$0xff] }
 0x2b2   :  { %2577 = vmatpush2.msra.mxu0 %v678_v38  ;;  %2654 = vmatpush2.msra.mxu1 %v934_v49  ;;  %v1094_v36 = vld [vmem:[#allocation10 + $0x11b0] sm:$0xff]  ;;  %v1087_v38 = vld [vmem:[#allocation10 + $0x1178] sm:$0xff] }
 0x2b3   :  { %2578 = vmatprep.subr.mxu0 %v671_v50  ;;  %2655 = vmatprep.subr.mxu1 %v927_v42  ;;  %v1350_v37 = vld [vmem:[#allocation10 + $0x19b0] sm:$0xff]  ;;  %v1343_v49 = vld [vmem:[#allocation10 + $0x1978] sm:$0xff] }
 0x2b4   :  { %2579 = vmatpush2.msra.mxu0 %v670_v52  ;;  %2656 = vmatpush2.msra.mxu1 %v926_v53  ;;  %v1086_v50 = vld [vmem:[#allocation10 + $0x1170] sm:$0xff]  ;;  %v1079_v52 = vld [vmem:[#allocation10 + $0x1138] sm:$0xff] }
 0x2b5   :  { %2580 = vmatprep.subr.mxu0 %v663_v54  ;;  %2657 = vmatprep.subr.mxu1 %v919_v55  ;;  %v1342_v42 = vld [vmem:[#allocation10 + $0x1970] sm:$0xff]  ;;  %v1335_v53 = vld [vmem:[#allocation10 + $0x1938] sm:$0xff] }
 0x2b6   :  { %2581 = vmatpush2.msra.mxu0 %v662_v56  ;;  %2658 = vmatpush2.msra.mxu1 %v918_v62  ;;  %v1078_v54 = vld [vmem:[#allocation10 + $0x1130] sm:$0xff]  ;;  %v1071_v56 = vld [vmem:[#allocation10 + $0x10f8] sm:$0xff] }
 0x2b7   :  { %2583 = vmatmul.mubr.f32.vlgmr.msra.gmra.mxu0 %v3406_v60  ;;  %2660 = vmatmul.mubr.f32.vlgmr.msra.gmra.mxu1 %v3400_v57  ;;  %v1407_v60 = vld [vmem:[#allocation10 + $0x1b78] sm:$0xff]  ;;  %v1150_v57 = vld [vmem:[#allocation10 + $0x1370] sm:$0xff] }
 0x2b8   :  { %2672 = vmatprep.subr.mxu0 %v1167_v63  ;;  %2749 = vmatprep.subr.mxu1 %v1423_v1  ;;  %v1334_v55 = vld [vmem:[#allocation10 + $0x1930] sm:$0xff]  ;;  %v1327_v62 = vld [vmem:[#allocation10 + $0x18f8] sm:$0xff] }
 0x2b9   :  { %2588 = vmatprep.mubr.f32.mxu0 %v3423_v12  ;;  %2665 = vmatprep.mubr.f32.mxu1 %v3436_v23  ;;  %v1143_v12 = vld [vmem:[#allocation10 + $0x1338] sm:$0xff]  ;;  %v1070_v63 = vld [vmem:[#allocation10 + $0x10f0] sm:$0xff] }
 0x2ba   :  { %2673 = vmatpush1.msra.mxu0 %v1166_v2  ;;  %2750 = vmatpush1.msra.mxu1 %v1422_v3  ;;  %v1399_v23 = vld [vmem:[#allocation10 + $0x1b38] sm:$0xff]  ;;  %v1326_v1 = vld [vmem:[#allocation10 + $0x18f0] sm:$0xff] }
 0x2bb   :  { %2674 = vmatprep.subr.mxu0 %v1159_v5  ;;  %2751 = vmatprep.subr.mxu1 %v1415_v6  ;;  %v1063_v2 = vld [vmem:[#allocation10 + $0x10b8] sm:$0xff]  ;;  %v1062_v5 = vld [vmem:[#allocation10 + $0x10b0] sm:$0xff] }
 0x2bc   :  { %2675 = vmatpush1.msra.mxu0 %v1158_v8  ;;  %2752 = vmatpush1.msra.mxu1 %v1414_v9  ;;  %v1319_v3 = vld [vmem:[#allocation10 + $0x18b8] sm:$0xff]  ;;  %v1318_v6 = vld [vmem:[#allocation10 + $0x18b0] sm:$0xff] }
 0x2bd   :  { %2589 = vmatmul.mubr.f32.gmra.mxu0 %v3428_v16  ;;  %2666 = vmatmul.mubr.f32.gmra.mxu1 %v3443_v28  ;;  %v1134_v16 = vld [vmem:[#allocation10 + $0x12f0] sm:$0xff]  ;;  %v1127_v28 = vld [vmem:[#allocation10 + $0x12b8] sm:$0xff] }
 0x2be   :  { %2676 = vmatprep.subr.mxu0 %v1151_v47  ;;  %2753 = vmatprep.subr.mxu1 %v1407_v60  ;;  %v1055_v8 = vld [vmem:[#allocation10 + $0x1078] sm:$0xff]  ;;  %v1054_v47 = vld [vmem:[#allocation10 + $0x1070] sm:$0xff] }
 0x2bf   :  { %2677 = vmatpush1.msra.mxu0 %v1150_v57  ;;  %2736 = vmatprep.mubr.f32.mxu0 %v3449_v51  ;;  %v1119_v51 = vld [vmem:[#allocation10 + $0x1278] sm:$0xff]  ;;  %v1310_v60 = vld [vmem:[#allocation10 + $0x1870] sm:$0xff] }
 0x2c0   :  { %2754 = vmatpush1.msra.mxu1 %v1406_v10  ;;  %2813 = vmatprep.mubr.f32.mxu1 %v3453_v61  ;;  %v1118_v61 = vld [vmem:[#allocation10 + $0x1270] sm:$0xff]  ;;  %v1311_v9 = vld [vmem:[#allocation10 + $0x1878] sm:$0xff] }
 0x2c1   :  { %2678 = vmatprep.subr.mxu0 %v1143_v12  ;;  %2755 = vmatprep.subr.mxu1 %v1399_v23  ;;  %v1047_v57 = vld [vmem:[#allocation10 + $0x1038] sm:$0xff]  ;;  %v1046_v12 = vld [vmem:[#allocation10 + $0x1030] sm:$0xff] }
 0x2c2   :  { %2679 = vmatpush1.msra.mxu0 %v1142_v14  ;;  %2756 = vmatpush1.msra.mxu1 %v1398_v17  ;;  %v1303_v10 = vld [vmem:[#allocation10 + $0x1838] sm:$0xff]  ;;  %v1302_v23 = vld [vmem:[#allocation10 + $0x1830] sm:$0xff] }
 0x2c3   :  { %2680 = vmatprep.subr.mxu0 %v1135_v19  ;;  %2757 = vmatprep.subr.mxu1 %v1391_v20  ;;  %v1295_v14 = vld [vmem:[#allocation10 + $0x17f8] sm:$0xff]  ;;  %v1294_v19 = vld [vmem:[#allocation10 + $0x17f0] sm:$0xff] }
 0x2c4   :  { %2681 = vmatpush1.msra.mxu0 %v1134_v16  ;;  %2758 = vmatpush1.msra.mxu1 %v1390_v22  ;;  %v1551_v17 = vld [vmem:[#allocation10 + $0x1ff8] sm:$0xff]  ;;  %v1550_v20 = vld [vmem:[#allocation10 + $0x1ff0] sm:$0xff] }
 0x2c5   :  { %2682 = vmatprep.subr.mxu0 %v1127_v28  ;;  %2759 = vmatprep.subr.mxu1 %v1383_v24  ;;  %v1287_v16 = vld [vmem:[#allocation10 + $0x17b8] sm:$0xff]  ;;  %v1286_v28 = vld [vmem:[#allocation10 + $0x17b0] sm:$0xff] }
 0x2c6   :  { %2683 = vmatpush1.msra.mxu0 %v1126_v45  ;;  %2760 = vmatpush1.msra.mxu1 %v1382_v25  ;;  %v1543_v22 = vld [vmem:[#allocation10 + $0x1fb8] sm:$0xff]  ;;  %v1542_v24 = vld [vmem:[#allocation10 + $0x1fb0] sm:$0xff] }
 0x2c7   :  { %2684 = vmatprep.subr.mxu0 %v1119_v51  ;;  %2761 = vmatprep.subr.mxu1 %v1375_v26  ;;  %v1279_v45 = vld [vmem:[#allocation10 + $0x1778] sm:$0xff]  ;;  %v1278_v51 = vld [vmem:[#allocation10 + $0x1770] sm:$0xff] }
 0x2c8   :  { %2685 = vmatpush1.msra.mxu0 %v1118_v61  ;;  %2762 = vmatpush1.msra.mxu1 %v1374_v27  ;;  %v1535_v25 = vld [vmem:[#allocation10 + $0x1f78] sm:$0xff]  ;;  %v1534_v26 = vld [vmem:[#allocation10 + $0x1f70] sm:$0xff] }
 0x2c9   :  { %2686 = vmatprep.subr.mxu0 %v1111_v39  ;;  %2763 = vmatprep.subr.mxu1 %v1367_v29  ;;  %v1271_v61 = vld [vmem:[#allocation10 + $0x1738] sm:$0xff]  ;;  %v1270_v39 = vld [vmem:[#allocation10 + $0x1730] sm:$0xff] }
 0x2ca   :  { %2687 = vmatpush1.msra.mxu0 %v1110_v58  ;;  %2764 = vmatpush1.msra.mxu1 %v1366_v30  ;;  %v1527_v27 = vld [vmem:[#allocation10 + $0x1f38] sm:$0xff]  ;;  %v1526_v29 = vld [vmem:[#allocation10 + $0x1f30] sm:$0xff] }
 0x2cb   :  { %2688 = vmatprep.subr.mxu0 %v1103_v59  ;;  %2765 = vmatprep.subr.mxu1 %v1359_v31  ;;  %v1263_v58 = vld [vmem:[#allocation10 + $0x16f8] sm:$0xff]  ;;  %v1262_v59 = vld [vmem:[#allocation10 + $0x16f0] sm:$0xff] }
 0x2cc   :  { %2689 = vmatpush1.msra.mxu0 %v1102_v32  ;;  %2766 = vmatpush1.msra.mxu1 %v1358_v33  ;;  %v1519_v30 = vld [vmem:[#allocation10 + $0x1ef8] sm:$0xff]  ;;  %v1518_v31 = vld [vmem:[#allocation10 + $0x1ef0] sm:$0xff] }
 0x2cd   :  { %2690 = vmatprep.subr.mxu0 %v1095_v34  ;;  %2767 = vmatprep.subr.mxu1 %v1351_v35  ;;  %v1255_v32 = vld [vmem:[#allocation10 + $0x16b8] sm:$0xff]  ;;  %v1254_v34 = vld [vmem:[#allocation10 + $0x16b0] sm:$0xff] }
 0x2ce   :  { %2691 = vmatpush1.msra.mxu0 %v1094_v36  ;;  %2768 = vmatpush1.msra.mxu1 %v1350_v37  ;;  %v1511_v33 = vld [vmem:[#allocation10 + $0x1eb8] sm:$0xff]  ;;  %v1510_v35 = vld [vmem:[#allocation10 + $0x1eb0] sm:$0xff] }
 0x2cf   :  { %2692 = vmatprep.subr.mxu0 %v1087_v38  ;;  %2769 = vmatprep.subr.mxu1 %v1343_v49  ;;  %v1247_v36 = vld [vmem:[#allocation10 + $0x1678] sm:$0xff]  ;;  %v1246_v38 = vld [vmem:[#allocation10 + $0x1670] sm:$0xff] }
 0x2d0   :  { %2693 = vmatpush1.msra.mxu0 %v1086_v50  ;;  %2770 = vmatpush1.msra.mxu1 %v1342_v42  ;;  %v1503_v37 = vld [vmem:[#allocation10 + $0x1e78] sm:$0xff]  ;;  %v1502_v49 = vld [vmem:[#allocation10 + $0x1e70] sm:$0xff] }
 0x2d1   :  { %2694 = vmatprep.subr.mxu0 %v1079_v52  ;;  %2771 = vmatprep.subr.mxu1 %v1335_v53  ;;  %v1239_v50 = vld [vmem:[#allocation10 + $0x1638] sm:$0xff]  ;;  %v1238_v52 = vld [vmem:[#allocation10 + $0x1630] sm:$0xff] }
 0x2d2   :  { %2695 = vmatpush1.msra.mxu0 %v1078_v54  ;;  %2772 = vmatpush1.msra.mxu1 %v1334_v55  ;;  %v1495_v42 = vld [vmem:[#allocation10 + $0x1e38] sm:$0xff]  ;;  %v1494_v53 = vld [vmem:[#allocation10 + $0x1e30] sm:$0xff] }
 0x2d3   :  { %2696 = vmatprep.subr.mxu0 %v1071_v56  ;;  %2773 = vmatprep.subr.mxu1 %v1327_v62  ;;  %v1231_v54 = vld [vmem:[#allocation10 + $0x15f8] sm:$0xff]  ;;  %v1230_v56 = vld [vmem:[#allocation10 + $0x15f0] sm:$0xff] }
 0x2d4   :  { %2697 = vmatpush1.msra.mxu0 %v1070_v63  ;;  %2774 = vmatpush1.msra.mxu1 %v1326_v1  ;;  %v1487_v55 = vld [vmem:[#allocation10 + $0x1df8] sm:$0xff]  ;;  %v1486_v62 = vld [vmem:[#allocation10 + $0x1df0] sm:$0xff] }
 0x2d5   :  { %2698 = vmatprep.subr.mxu0 %v1063_v2  ;;  %2775 = vmatprep.subr.mxu1 %v1319_v3  ;;  %v1223_v63 = vld [vmem:[#allocation10 + $0x15b8] sm:$0xff]  ;;  %v1222_v2 = vld [vmem:[#allocation10 + $0x15b0] sm:$0xff] }
 0x2d6   :  { %2699 = vmatpush1.msra.mxu0 %v1062_v5  ;;  %2776 = vmatpush1.msra.mxu1 %v1318_v6  ;;  %v1479_v1 = vld [vmem:[#allocation10 + $0x1db8] sm:$0xff]  ;;  %v1478_v3 = vld [vmem:[#allocation10 + $0x1db0] sm:$0xff] }
 0x2d7   :  { %2700 = vmatprep.subr.mxu0 %v1055_v8  ;;  %2777 = vmatprep.subr.mxu1 %v1311_v9  ;;  %v1215_v5 = vld [vmem:[#allocation10 + $0x1578] sm:$0xff]  ;;  %v1214_v8 = vld [vmem:[#allocation10 + $0x1570] sm:$0xff] }
 0x2d8   :  { %2701 = vmatpush1.msra.mxu0 %v1054_v47  ;;  %2778 = vmatpush1.msra.mxu1 %v1310_v60  ;;  %v1471_v6 = vld [vmem:[#allocation10 + $0x1d78] sm:$0xff]  ;;  %v1470_v9 = vld [vmem:[#allocation10 + $0x1d70] sm:$0xff] }
 0x2d9   :  { %2702 = vmatprep.subr.mxu0 %v1047_v57  ;;  %2779 = vmatprep.subr.mxu1 %v1303_v10  ;;  %v1207_v47 = vld [vmem:[#allocation10 + $0x1538] sm:$0xff]  ;;  %v1206_v57 = vld [vmem:[#allocation10 + $0x1530] sm:$0xff] }
 0x2da   :  { %2703 = vmatpush1.msra.mxu0 %v1046_v12  ;;  %2780 = vmatpush1.msra.mxu1 %v1302_v23  ;;  %v1463_v60 = vld [vmem:[#allocation10 + $0x1d38] sm:$0xff]  ;;  %v1462_v10 = vld [vmem:[#allocation10 + $0x1d30] sm:$0xff] }
 0x2db   :  { %2704 = vmatprep.subr.mxu0 %v1295_v14  ;;  %2781 = vmatprep.subr.mxu1 %v1551_v17  ;;  %v1199_v12 = vld [vmem:[#allocation10 + $0x14f8] sm:$0xff]  ;;  %v1198_v14 = vld [vmem:[#allocation10 + $0x14f0] sm:$0xff] }
 0x2dc   :  { %2705 = vmatpush2.msra.mxu0 %v1294_v19  ;;  %2782 = vmatpush2.msra.mxu1 %v1550_v20  ;;  %v1455_v23 = vld [vmem:[#allocation10 + $0x1cf8] sm:$0xff]  ;;  %v1454_v17 = vld [vmem:[#allocation10 + $0x1cf0] sm:$0xff] }
 0x2dd   :  { %2706 = vmatprep.subr.mxu0 %v1287_v16  ;;  %2783 = vmatprep.subr.mxu1 %v1543_v22  ;;  %v1191_v19 = vld [vmem:[#allocation10 + $0x14b8] sm:$0xff]  ;;  %v1190_v16 = vld [vmem:[#allocation10 + $0x14b0] sm:$0xff] }
 0x2de   :  { %2707 = vmatpush2.msra.mxu0 %v1286_v28  ;;  %2784 = vmatpush2.msra.mxu1 %v1542_v24  ;;  %v1447_v20 = vld [vmem:[#allocation10 + $0x1cb8] sm:$0xff]  ;;  %v1446_v22 = vld [vmem:[#allocation10 + $0x1cb0] sm:$0xff] }
 0x2df   :  { %2708 = vmatprep.subr.mxu0 %v1279_v45  ;;  %2785 = vmatprep.subr.mxu1 %v1535_v25  ;;  %v1183_v28 = vld [vmem:[#allocation10 + $0x1478] sm:$0xff]  ;;  %v1182_v45 = vld [vmem:[#allocation10 + $0x1470] sm:$0xff] }
 0x2e0   :  { %2709 = vmatpush2.msra.mxu0 %v1278_v51  ;;  %2786 = vmatpush2.msra.mxu1 %v1534_v26  ;;  %v1439_v24 = vld [vmem:[#allocation10 + $0x1c78] sm:$0xff]  ;;  %v1438_v25 = vld [vmem:[#allocation10 + $0x1c70] sm:$0xff] }
 0x2e1   :  { %2710 = vmatprep.subr.mxu0 %v1271_v61  ;;  %2787 = vmatprep.subr.mxu1 %v1527_v27  ;;  %v1175_v51 = vld [vmem:[#allocation10 + $0x1438] sm:$0xff]  ;;  %v1174_v61 = vld [vmem:[#allocation10 + $0x1430] sm:$0xff] }
 0x2e2   :  { %2711 = vmatpush2.msra.mxu0 %v1270_v39  ;;  %2788 = vmatpush2.msra.mxu1 %v1526_v29  ;;  %v1431_v26 = vld [vmem:[#allocation10 + $0x1c38] sm:$0xff]  ;;  %v1430_v27 = vld [vmem:[#allocation10 + $0x1c30] sm:$0xff]  ;;  %v1660_v39 = vpop.f32.mrf.mxu0  ;;  %v1737_v29 = vpop.f32.mrf.mxu1 }
 0x2e3   :  { %2712 = vmatprep.subr.mxu0 %v1263_v58  ;;  %2789 = vmatprep.subr.mxu1 %v1519_v30 }
 0x2e4   :  { %2713 = vmatpush2.msra.mxu0 %v1262_v59  ;;  %2790 = vmatpush2.msra.mxu1 %v1518_v31  ;;  %v1662_v58 = vpop.f32.mrf.mxu0  ;;  %v1739_v30 = vpop.f32.mrf.mxu1 }
 0x2e5   :  { %2714 = vmatprep.subr.mxu0 %v1255_v32  ;;  %2791 = vmatprep.subr.mxu1 %v1511_v33 }
 0x2e6   :  { %2715 = vmatpush2.msra.mxu0 %v1254_v34  ;;  %2792 = vmatpush2.msra.mxu1 %v1510_v35  ;;  %v1666_v59 = vpop.f32.mrf.mxu0  ;;  %v1743_v31 = vpop.f32.mrf.mxu1 }
 0x2e7   :  { %2716 = vmatprep.subr.mxu0 %v1247_v36  ;;  %2793 = vmatprep.subr.mxu1 %v1503_v37 }
 0x2e8   :  { %2717 = vmatpush2.msra.mxu0 %v1246_v38  ;;  %2794 = vmatpush2.msra.mxu1 %v1502_v49  ;;  %v1668_v32 = vpop.f32.mrf.mxu0  ;;  %v1745_v33 = vpop.f32.mrf.mxu1 }
 0x2e9   :  { %2718 = vmatprep.subr.mxu0 %v1239_v50  ;;  %2795 = vmatprep.subr.mxu1 %v1495_v42 }
 0x2ea   :  { %2719 = vmatpush2.msra.mxu0 %v1238_v52  ;;  %2796 = vmatpush2.msra.mxu1 %v1494_v53  ;;  %v1814_v34 = vpop.f32.mrf.mxu0 }
 0x2eb   :  { %2720 = vmatprep.subr.mxu0 %v1231_v54  ;;  %2797 = vmatprep.subr.mxu1 %v1487_v55 }
 0x2ec   :  { %2721 = vmatpush2.msra.mxu0 %v1230_v56  ;;  %2798 = vmatpush2.msra.mxu1 %v1486_v62 }
 0x2ed   :  { %2722 = vmatprep.subr.mxu0 %v1223_v63  ;;  %2799 = vmatprep.subr.mxu1 %v1479_v1 }
 0x2ee   :  { %2723 = vmatpush2.msra.mxu0 %v1222_v2  ;;  %2800 = vmatpush2.msra.mxu1 %v1478_v3 }
 0x2ef   :  { %2724 = vmatprep.subr.mxu0 %v1215_v5  ;;  %2801 = vmatprep.subr.mxu1 %v1471_v6 }
 0x2f0   :  { %2725 = vmatpush2.msra.mxu0 %v1214_v8  ;;  %2802 = vmatpush2.msra.mxu1 %v1470_v9 }
 0x2f1   :  { %2726 = vmatprep.subr.mxu0 %v1207_v47  ;;  %2803 = vmatprep.subr.mxu1 %v1463_v60  ;;  %v3543_v47 = vld [vmem:[#allocation12] sm:$0xff] }
 0x2f2   :  { %2727 = vmatpush2.msra.mxu0 %v1206_v57  ;;  %2804 = vmatpush2.msra.mxu1 %v1462_v10  ;;  %v1561_v10 = vrot.slane %v3543_v47, %v3375_v43 }
 0x2f3   :  { %2728 = vmatprep.subr.mxu0 %v1199_v12  ;;  %2805 = vmatprep.subr.mxu1 %v1455_v23  ;;  %v1557_v12 = vrot.slane %v3543_v47, %v3370_v41  ;;  %v1565_v23 = vrot.slane %v3543_v47, %v3367_v40 }
 0x2f4   :  { %2729 = vmatpush2.msra.mxu0 %v1198_v14  ;;  %2806 = vmatpush2.msra.mxu1 %v1454_v17 }
 0x2f5   :  { %2730 = vmatprep.subr.mxu0 %v1191_v19  ;;  %2807 = vmatprep.subr.mxu1 %v1447_v20  ;;  %v1663_v19 = vadd.f32 %v1662_v58, %v1561_v10  ;;  %v1661_v20 = vadd.f32 %v1660_v39, %v1557_v12 }
 0x2f6   :  { %2731 = vmatpush2.msra.mxu0 %v1190_v16  ;;  %2808 = vmatpush2.msra.mxu1 %v1446_v22 }
 0x2f7   :  { %2732 = vmatprep.subr.mxu0 %v1183_v28  ;;  %2809 = vmatprep.subr.mxu1 %v1439_v24  ;;  %v1569_v24 = vrot.slane %v3543_v47, %v3378_v44 }
 0x2f8   :  { %2733 = vmatpush2.msra.mxu0 %v1182_v45  ;;  %2810 = vmatpush2.msra.mxu1 %v1438_v25  ;;  %v1740_v45 = vadd.f32 %v1739_v30, %v1663_v19  ;;  %v1669_v25 = vadd.f32 %v1668_v32, %v1561_v10  ;;  %v1577_v30 = vrot.slane %v3543_v47, %v3417_v7 }
 0x2f9   :  { %2734 = vmatprep.subr.mxu0 %v1175_v51  ;;  %2811 = vmatprep.subr.mxu1 %v1431_v26  ;;  %v1738_v51 = vadd.f32 %v1737_v29, %v1661_v20  ;;  %v1667_v26 = vadd.f32 %v1666_v59, %v1557_v12 }
 0x2fa   :  { %2735 = vmatpush2.msra.mxu0 %v1174_v61  ;;  %2812 = vmatpush2.msra.mxu1 %v1430_v27  ;;  %v1573_v61 = vrot.slane %v3543_v47, %v3434_v21 }
 0x2fb   :  { %2737 = vmatmul.mubr.f32.vlgmr.msra.gmra.mxu0 %v3458_v4  ;;  %2814 = vmatmul.mubr.f32.vlgmr.msra.gmra.mxu1 %v3455_v0  ;;  %v3523_v4 = vpop.f32.mrf.mxu1  ;;  %v1816_v0 = vpop.f32.mrf.mxu0  ;;  %v1815_v15 = vadd.f32 %v1814_v34, %v1738_v51 }
 0x2fc   :  { %2742 = vmatprep.mubr.f32.mxu0 %v3461_v46  ;;  %2819 = vmatprep.mubr.f32.mxu1 %v3463_v13 }
 0x2fd   :  { %v1893_v35 = vpop.f32.mrf.mxu1  ;;  %v3525_v46 = vpop.f32.mrf.mxu0  ;;  %v1892_v20 = vadd.f32 %v3523_v4, %v1815_v15 }
 0x2ff   :  { %2743 = vmatmul.mubr.f32.gmra.mxu0 %v3467_v48  ;;  %2820 = vmatmul.mubr.f32.gmra.mxu1 %v3469_v18  ;;  %v3527_v13 = vpop.f32.mrf.mxu1  ;;  %v1822_v48 = vpop.f32.mrf.mxu0 }
 0x301   :  { %v3529_v36 = vpop.f32.mrf.mxu1  ;;  %v1968_v18 = vpop.f32.mrf.mxu0 }
 0x302   :  { %v1969_v28 = vadd.f32 %v1968_v18, %v1565_v23 }
 0x303   :  { %v2045_v37 = vpop.f32.mrf.mxu1  ;;  %v1970_v38 = vpop.f32.mrf.mxu0 }
 0x304   :  { %v1971_v58 = vadd.f32 %v1970_v38, %v1569_v24 }
 0x305   :  { %v2047_v49 = vpop.f32.mrf.mxu1  ;;  %v1974_v50 = vpop.f32.mrf.mxu0 }
 0x306   :  { %v1975_v39 = vadd.f32 %v1974_v50, %v1565_v23  ;;  %v2048_v12 = vadd.f32 %v2047_v49, %v1971_v58  ;;  %v2826_v49 = vmax.f32 %v1892_v20, 0.0 }
 0x307   :  { %v2051_v42 = vpop.f32.mrf.mxu1  ;;  %v1976_v52 = vpop.f32.mrf.mxu0 }
 0x308   :  { %v2052_v19 = vadd.f32 %v2051_v42, %v1975_v39  ;;  %v1977_v34 = vadd.f32 %v1976_v52, %v1569_v24 }
 0x309   :  { %v3531_v53 = vpop.f32.mrf.mxu1  ;;  %v2122_v54 = vpop.f32.mrf.mxu0 }
 0x30a   :  { %v2054_v42 = vadd.f32 %v3531_v53, %v1977_v34 }
 0x30b   :  { %v2199_v55 = vpop.f32.mrf.mxu1  ;;  %v2124_v56 = vpop.f32.mrf.mxu0 }
 0x30c   :  { %v2125_v38 = vadd.f32 %v2124_v56, %v2048_v12 }
 0x30d   :  { %v3533_v62 = vpop.f32.mrf.mxu1  ;;  %v2128_v63 = vpop.f32.mrf.mxu0 }
 0x30f   :  { %v3535_v1 = vpop.f32.mrf.mxu1  ;;  %v3537_v2 = vpop.f32.mrf.mxu0 }
 0x310   :  { %3619 = vst [vmem:[#allocation23_spill] sm:$0xff] %v3537_v2 }
 0x311   :  { %v3539_v3 = vpop.f32.mrf.mxu1  ;;  %v2276_v5 = vpop.f32.mrf.mxu0 }
 0x312   :  { %3620 = vst [vmem:[#allocation24_spill] sm:$0xff] %v3539_v3  ;;  %v1817_v3 = vadd.f32 %v1816_v0, %v1740_v45  ;;  %v2277_v2 = vadd.f32 %v2276_v5, %v1573_v61  ;;  %v3564_v0 = vld [vmem:[#allocation13] sm:$0xff] }
 0x313   :  { %v2353_v6 = vpop.f32.mrf.mxu1  ;;  %v2278_v8 = vpop.f32.mrf.mxu0  ;;  %v2851_v15 = vrot.slane %v3564_v0, %v3375_v43 }
 0x314   :  { %v1894_v32 = vadd.f32 %v1893_v35, %v1817_v3  ;;  %v2354_v50 = vadd.f32 %v2353_v6, %v2277_v2  ;;  %v2847_v35 = vrot.slane %v3564_v0, %v3370_v41  ;;  %v2855_v2 = vrot.slane %v3564_v0, %v3367_v40 }
 0x315   :  { %v3541_v9 = vpop.f32.mrf.mxu1  ;;  %v2282_v60 = vpop.f32.mrf.mxu0  ;;  %v2202_v41 = vadd.f32 %v3533_v62, %v2125_v38  ;;  %v2859_v62 = vrot.slane %v3564_v0, %v3378_v44 }
 0x316   :  { %3621 = vst [vmem:[#allocation25_spill] sm:$0xff] %v3541_v9  ;;  %v1744_v9 = vadd.f32 %v1743_v31, %v1667_v26  ;;  %v2129_v31 = vadd.f32 %v2128_v63, %v2052_v19  ;;  %v2283_v5 = vadd.f32 %v2282_v60, %v1573_v61 }
 0x317   :  { %v3545_v57 = vpop.f32.mrf.mxu1  ;;  %v2284_v14 = vpop.f32.mrf.mxu0  ;;  %v3624_v6 = vld [vmem:[#allocation23_spill] sm:$0xff]  ;;  %v2829_v58 = vmax.f32 %v2202_v41, 0.0 }
 0x318   :  { %3622 = vst [vmem:[#allocation26_spill] sm:$0xff] %v3545_v57  ;;  %v1746_v57 = vadd.f32 %v1745_v33, %v1669_v25  ;;  %v2206_v3 = vadd.f32 %v3535_v1, %v2129_v31  ;;  %v2131_v43 = vadd.f32 %v3624_v6, %v2054_v42  ;;  %v3627_v1 = vld [vmem:[#allocation22_spill] sm:$0xff] }
 0x319   :  { %v3553_v17 = vpop.f32.mrf.mxu1  ;;  %v1581_v61 = vrot.slane %v3543_v47, %v3627_v1 }
 0x31a   :  { %3623 = vst [vmem:[#allocation27_spill] sm:$0xff] %v3553_v17  ;;  %v2046_v17 = vadd.f32 %v2045_v37, %v1969_v28  ;;  %v1823_v10 = vadd.f32 %v1822_v48, %v1746_v57  ;;  %v1821_v37 = vadd.f32 %v3525_v46, %v1744_v9  ;;  %v2827_v48 = vmax.f32 %v1894_v32, 0.0 }
 0x31b   :  { %v2836_v39 = vmax.f32 %v2206_v3, 0.0 }
 0x31c   :  { %v2123_v18 = vadd.f32 %v2122_v54, %v2046_v17  ;;  %v2279_v54 = vadd.f32 %v2278_v8, %v1577_v30  ;;  %v1900_v4 = vadd.f32 %v3529_v36, %v1823_v10  ;;  %v1898_v46 = vadd.f32 %v3527_v13, %v1821_v37 }
 0x31d   :  { %v3625_v8 = vld [vmem:[#allocation25_spill] sm:$0xff]  ;;  %v2285_v13 = vadd.f32 %v2284_v14, %v1577_v30  ;;  %v2885_v57 = vmul.f32 %v2851_v15, %v2827_v48 }
 0x31e   :  { %v2200_v33 = vadd.f32 %v2199_v55, %v2123_v18  ;;  %v2356_v36 = vadd.f32 %v3625_v8, %v2279_v54  ;;  %v2835_v53 = vmax.f32 %v1900_v4, 0.0  ;;  %v2834_v40 = vmax.f32 %v1898_v46, 0.0  ;;  %v3628_v18 = vld [vmem:[#allocation24_spill] sm:$0xff] }
 0x31f   :  { %v3626_v9 = vld [vmem:[#allocation26_spill] sm:$0xff]  ;;  %v2208_v14 = vadd.f32 %v3628_v18, %v2131_v43  ;;  %v2887_v54 = vmul.f32 %v2859_v62, %v2829_v58 }
 0x320   :  { %v2828_v63 = vmax.f32 %v2200_v33, 0.0  ;;  %v2360_v60 = vadd.f32 %v3626_v9, %v2283_v5  ;;  %v2892_v38 = vmul.f32 %v2847_v35, %v2834_v40  ;;  %v2894_v5 = vmul.f32 %v2855_v2, %v2836_v39 }
 0x321   :  { %v3629_v30 = vld [vmem:[#allocation27_spill] sm:$0xff]  ;;  %v2837_v48 = vmax.f32 %v2208_v14, 0.0 }
 0x322   :  { %v2886_v26 = vmul.f32 %v2855_v2, %v2828_v63  ;;  %v2362_v32 = vadd.f32 %v3629_v30, %v2285_v13 }
 0x333   :  { %v2430_v16 = vpop.f32.mrf.mxu0  ;;  %v2507_v22 = vpop.f32.mrf.mxu1 }
 0x334   :  { %v2431_v52 = vadd.f32 %v2430_v16, %v2354_v50  ;;  %v2884_v16 = vmul.f32 %v2847_v35, %v2826_v49 }
 0x335   :  { %v2432_v27 = vpop.f32.mrf.mxu0  ;;  %v3559_v11 = vpop.f32.mrf.mxu1 }
 0x336   :  { %v2508_v28 = vadd.f32 %v2507_v22, %v2431_v52  ;;  %v2433_v24 = vadd.f32 %v2432_v27, %v2356_v36  ;;  %v2900_v10 = vadd.f32 %v2885_v57, %v2884_v16  ;;  %v2893_v22 = vmul.f32 %v2851_v15, %v2835_v53 }
 0x337   :  { %v2863_v27 = vrot.slane %v3564_v0, %v3434_v21  ;;  %v2867_v21 = vrot.slane %v3564_v0, %v3417_v7 }
 0x338   :  { %v2830_v19 = vmax.f32 %v2508_v28, 0.0  ;;  %v2510_v44 = vadd.f32 %v3559_v11, %v2433_v24  ;;  %v2901_v50 = vadd.f32 %v2900_v10, %v2886_v26  ;;  %v2909_v15 = vadd.f32 %v2893_v22, %v2892_v38 }
 0x339   :  { %v2436_v29 = vpop.f32.mrf.mxu0  ;;  %v2513_v59 = vpop.f32.mrf.mxu1 }
 0x33a   :  { %v2437_v45 = vadd.f32 %v2436_v29, %v2360_v60  ;;  %v3630_v29 = vld [vmem:[#allocation21_spill] sm:$0xff]  ;;  %v2888_v49 = vmul.f32 %v2863_v27, %v2830_v19  ;;  %v2902_v63 = vadd.f32 %v2901_v50, %v2887_v54  ;;  %v2910_v35 = vadd.f32 %v2909_v15, %v2894_v5 }
 0x33b   :  { %v2438_v23 = vpop.f32.mrf.mxu0  ;;  %v2515_v17 = vpop.f32.mrf.mxu1  ;;  %v1585_v12 = vrot.slane %v3543_v47, %v3630_v29  ;;  %v2831_v47 = vmax.f32 %v2510_v44, 0.0 }
 0x33c   :  { %v2514_v20 = vadd.f32 %v2513_v59, %v2437_v45  ;;  %v2439_v37 = vadd.f32 %v2438_v23, %v2362_v32  ;;  %v2903_v8 = vadd.f32 %v2902_v63, %v2888_v49  ;;  %v2875_v45 = vrot.slane %v3564_v0, %v3630_v29 }
 0x33d   :  { %v2889_v36 = vmul.f32 %v2867_v21, %v2831_v47 }
 0x33e   :  { %v2838_v46 = vmax.f32 %v2514_v20, 0.0  ;;  %v2516_v42 = vadd.f32 %v2515_v17, %v2439_v37 }
 0x33f   :  { %v2904_v39 = vadd.f32 %v2903_v8, %v2889_v36 }
 0x340   :  { %v2896_v7 = vmul.f32 %v2863_v27, %v2838_v46  ;;  %v2839_v9 = vmax.f32 %v2516_v42, 0.0 }
 0x377   :  { %v2584_v55 = vpop.f32.mrf.mxu0  ;;  %v2661_v56 = vpop.f32.mrf.mxu1 }
 0x378   :  { %v2585_v31 = vadd.f32 %v2584_v55, %v1581_v61  ;;  %v2895_v55 = vmul.f32 %v2859_v62, %v2837_v48 }
 0x379   :  { %v2586_v25 = vpop.f32.mrf.mxu0  ;;  %v2663_v51 = vpop.f32.mrf.mxu1 }
 0x37a   :  { %v2587_v4 = vadd.f32 %v2586_v25, %v1585_v12  ;;  %v2662_v23 = vadd.f32 %v2661_v56, %v2585_v31  ;;  %v2871_v56 = vrot.slane %v3564_v0, %v3627_v1  ;;  %v2911_v16 = vadd.f32 %v2910_v35, %v2895_v55 }
 0x37c   :  { %v2664_v2 = vadd.f32 %v2663_v51, %v2587_v4  ;;  %v2912_v62 = vadd.f32 %v2911_v16, %v2896_v7 }
 0x37d   :  { %v2590_v34 = vpop.f32.mrf.mxu0  ;;  %v2667_v33 = vpop.f32.mrf.mxu1 }
 0x37e   :  { %v2591_v52 = vadd.f32 %v2590_v34, %v1581_v61  ;;  %v2897_v61 = vmul.f32 %v2867_v21, %v2839_v9 }
 0x37f   :  { %v2592_v11 = vpop.f32.mrf.mxu0  ;;  %v2669_v59 = vpop.f32.mrf.mxu1 }
 0x380   :  { %v2593_v6 = vadd.f32 %v2592_v11, %v1585_v12  ;;  %v2668_v57 = vadd.f32 %v2667_v33, %v2591_v52  ;;  %v2913_v19 = vadd.f32 %v2912_v62, %v2897_v61  ;;  %v3099_v33 = vld [vmem:[#allocation3] ss:$0 sm:$0xff] }
 0x382   :  { %v2670_v25 = vadd.f32 %v2669_v59, %v2593_v6 }
 0x3bb   :  { %v2738_v41 = vpop.f32.mrf.mxu0  ;;  %v2815_v3 = vpop.f32.mrf.mxu1 }
 0x3bc   :  { %v2739_v43 = vadd.f32 %v2738_v41, %v2662_v23 }
 0x3bd   :  { %v2740_v60 = vpop.f32.mrf.mxu0  ;;  %v2817_v13 = vpop.f32.mrf.mxu1 }
 0x3be   :  { %v2816_v17 = vadd.f32 %v2815_v3, %v2739_v43  ;;  %v2741_v53 = vadd.f32 %v2740_v60, %v2664_v2 }
 0x3bf   :  { %v2744_v28 = vpop.f32.mrf.mxu0  ;;  %v2821_v24 = vpop.f32.mrf.mxu1 }
 0x3c0   :  { %v2832_v51 = vmax.f32 %v2816_v17, 0.0  ;;  %v2818_v40 = vadd.f32 %v2817_v13, %v2741_v53  ;;  %v2745_v26 = vadd.f32 %v2744_v28, %v2668_v57 }
 0x3c1   :  { %v2746_v58 = vpop.f32.mrf.mxu0  ;;  %v2823_v1 = vpop.f32.mrf.mxu1 }
 0x3c2   :  { %v2890_v18 = vmul.f32 %v2871_v56, %v2832_v51  ;;  %v2833_v14 = vmax.f32 %v2818_v40, 0.0  ;;  %v2822_v30 = vadd.f32 %v2821_v24, %v2745_v26  ;;  %v2747_v32 = vadd.f32 %v2746_v58, %v2670_v25 }
 0x3c4   :  { %v2840_v10 = vmax.f32 %v2822_v30, 0.0  ;;  %v2824_v22 = vadd.f32 %v2823_v1, %v2747_v32  ;;  %v2891_v27 = vmul.f32 %v2875_v45, %v2833_v14  ;;  %v2905_v12 = vadd.f32 %v2904_v39, %v2890_v18 }
 0x3c6   :  { %v2898_v44 = vmul.f32 %v2871_v56, %v2840_v10  ;;  %v2841_v0 = vmax.f32 %v2824_v22, 0.0  ;;  %v2906_v29 = vadd.f32 %v2905_v12, %v2891_v27 }
 0x3c8   :  { %v2899_v20 = vmul.f32 %v2875_v45, %v2841_v0  ;;  %2907 = vadd.xlane.f32.xlu0 %v2906_v29  ;;  %v2914_v37 = vadd.f32 %v2913_v19, %v2898_v44 }
 0x3ca   :  { %v2915_v34 = vadd.f32 %v2914_v37, %v2899_v20 }
 0x3cc   :  { %2916 = vadd.xlane.f32.xlu0 %v2915_v34 }
 0x451   :  { %v2908_v38 = vpop.xlane.xlu0 %2907 }
 0x452   :  { %v2925_v31 = vadd.f32 %v3099_v33, %v2908_v38 }
 0x454   :  { %v2943_v50 = vsub.f32 0.0, %v2925_v31  ;;  %v3020_v54 = vsel %vm2965_vm1, %v2925_v31, 0.0 }
 0x455   :  { %3023 = vadd.xlane.f32.xlu0 %v3020_v54  ;;  %v2917_v5 = vpop.xlane.xlu0 %2916 }
 0x456   :  { %v2947_v48 = vand.u32 2147483647, %v2943_v50  ;;  %v2926_v15 = vadd.f32 %v3099_v33, %v2917_v5  ;;  %v2945_v35 = vmax.f32 %v2943_v50, 0.0 }
 0x458   :  { %v2949_v21 = vsub.f32 0.0, %v2947_v48  ;;  %v2985_v4 = vand.u32 2147483647, %v2926_v15  ;;  %v3038_v52 = vmul.f32 1.442695, %v2926_v15  ;;  %v2983_v2 = vmax.f32 %v2926_v15, 0.0 }
 0x45a   :  { %v2951_v49 = vmul.f32 1.442695, %v2949_v21  ;;  %v2987_v47 = vsub.f32 0.0, %v2985_v4 }
 0x45c   :  { %3127 = vpow2.f32 %v2951_v49  ;;  %v2990_v46 = vmul.f32 1.442695, %v2987_v47 }
 0x45e   :  { %3129 = vpow2.f32 %v2990_v46 }
 0x469   :  { %v3128_v42 = vpop.eup %3127 }
 0x46a   :  { %v2955_v11 = vadd.f32 1.0, %v3128_v42 }
 0x46b   :  { %v3130_v59 = vpop.eup %3129 }
 0x46c   :  { %3131 = vlog2.f32 %v2955_v11  ;;  %v2993_v23 = vadd.f32 1.0, %v3130_v59 }
 0x46e   :  { %3133 = vlog2.f32 %v2993_v23 }
 0x46f   :  { %3135 = vpow2.f32 %v3038_v52 }
 0x479   :  { %v3132_v63 = vpop.eup %3131 }
 0x47a   :  { %v2958_v55 = vmul.f32 0.6931472, %v3132_v63 }
 0x47b   :  { %v3134_v41 = vpop.eup %3133 }
 0x47c   :  { %v2961_v3 = vadd.f32 %v2958_v55, %v2945_v35  ;;  %v2997_v6 = vmul.f32 0.6931472, %v3134_v41  ;;  %v3136_v7 = vpop.eup %3135 }
 0x47d   :  { %v3043_v9 = vsel %vm2965_vm1, %v3136_v7, 0.0 }
 0x47e   :  { %v2966_v43 = vsel %vm2965_vm1, %v2961_v3, 0.0  ;;  %v2999_v8 = vadd.f32 %v2997_v6, %v2983_v2 }
 0x47f   :  { %2969 = vadd.xlane.f32.xlu1 %v2966_v43 }
 0x480   :  { %v3003_v36 = vsel %vm2965_vm1, %v2999_v8, 0.0 }
 0x483   :  { %3005 = vadd.xlane.f32.xlu1 %v3003_v36 }
 0x487   :  { %3045 = vadd.xlane.f32.xlu1 %v3043_v9 }
 0x4de   :  { %v3024_v60 = vpop.xlane.xlu0 %3023 }
 0x4df   :  { %v3025_v13 = vrot.slane %v3024_v60, 4 }
 0x4e1   :  { %v3026_v57 = vadd.f32 %v3025_v13, %v3024_v60 }
 0x4e3   :  { %v3027_v16 = vrot.slane %v3026_v57, 2 }
 0x4e5   :  { %v3028_v40 = vadd.f32 %v3027_v16, %v3026_v57 }
 0x4e7   :  { %v3029_v30 = vrot.slane %v3028_v40, 1 }
 0x4e9   :  { %v3030_v27 = vadd.f32 %v3029_v30, %v3028_v40 }
 0x508   :  { %v2970_v17 = vpop.xlane.xlu1 %2969 }
 0x509   :  { %v2971_v56 = vrot.slane %v2970_v17, 4 }
 0x50b   :  { %v2972_v53 = vadd.f32 %v2971_v56, %v2970_v17 }
 0x50c   :  { %v3006_v28 = vpop.xlane.xlu1 %3005 }
 0x50d   :  { %v2973_v24 = vrot.slane %v2972_v53, 2  ;;  %v3007_v45 = vrot.slane %v3006_v28, 4 }
 0x50f   :  { %v3008_v25 = vadd.f32 %v3007_v45, %v3006_v28  ;;  %v2974_v51 = vadd.f32 %v2973_v24, %v2972_v53 }
 0x510   :  { %v3046_v26 = vpop.xlane.xlu1 %3045 }
 0x511   :  { %v3009_v62 = vrot.slane %v3008_v25, 2  ;;  %v3047_v61 = vrot.slane %v3046_v26, 4  ;;  %v2975_v58 = vrot.slane %v2974_v51, 1 }
 0x513   :  { %v3048_v39 = vadd.f32 %v3047_v61, %v3046_v26  ;;  %v2976_v18 = vadd.f32 %v2975_v58, %v2974_v51  ;;  %v3010_v14 = vadd.f32 %v3009_v62, %v3008_v25 }
 0x515   :  { %v3049_v32 = vrot.slane %v3048_v39, 2  ;;  %3106 = vpush %v2976_v18  ;;  %v3011_v1 = vrot.slane %v3010_v14, 1 }
 0x517   :  { %v3050_v10 = vadd.f32 %v3049_v32, %v3048_v39  ;;  %v3012_v22 = vadd.f32 %v3011_v1, %v3010_v14 }
 0x519   :  { %3108 = vpush %v3012_v22  ;;  %v3051_v12 = vrot.slane %v3050_v10, 1 }
 0x51a   :  { %3110 = vpush %v3030_v27 }
 0x51b   :  { %v3052_v19 = vadd.f32 %v3051_v12, %v3050_v10 }
 0x51d   :  { %3112 = vpush %v3052_v19 }
 0x546   :  { %s3107_s4 = spop %3106 }
 0x54a   :  { %s3109_s5 = spop %3108 }
 0x54b   :  { %s3062_s6 = sadd.f32 %s3109_s5, %s3107_s4  ;;  %s3111_s10 = spop %3110 }
 0x54d   :  { %s3063_s9 = ssub.f32 0.0, %s3062_s6 }
 0x54e   :  { %s3113_s11 = spop %3112 }
 0x54f   :  { %s3064_s12 = smul.f32 0.125, %s3063_s9  ;;  %s3069_s13 = ssub.f32 %s3111_s10, %s3113_s11 }
 0x551   :  { %s3070_s14 = smul.f32 0.125, %s3069_s13  ;;  %3066 = sst [smem:[#allocation15]] %s3064_s12 }
 0x553   :  { %s3071_s15 = sadd.f32 1.0, %s3070_s14 }
 0x555   :  { %3073 = sst [smem:[#allocation15 + $0x1]] %s3071_s15 }
 0x556   :  { %3081 = dma.smem_to_hbm %s3286_s16, 16, %s3612_s7, [#allocation6]  }
 0x557   :  { %3273 = dma.done.wait [#allocation6], 16  }
 0x558   :  { %3274 = vsyncadd [#allocation6], 4294967280 }
 0x559   :  { %3085 = sfence }
 0x55a   :  { %3086 = vsyncpa [#allocation5], 1 }
 0x55b   :  { %3087 = vsyncpa [#allocation8], 1 }
 0x55c   :  { %3088 = vsyncpa [#allocation11], 1 }
 0x55d   :  { %3089 = vsyncpa [#allocation14], 1 }
 0x55e   :  { %3090 = vsyncpa [#allocation6], 1 }

</bundles_post_ra>
